<compile_context>
chip_gen: v7x
topology: tpu7x:2x2x1
jax: 0.10.0
libtpu: 0.0.40
codegen_flags: <defaults>
</compile_context>

<pallas_src>
import functools

import jax
import jax.numpy as jnp
import numpy as np
from jax.experimental import pallas as pl
from jax.experimental.pallas import tpu as pltpu

NUM_GROUPS = 32
EPS = 1e-5  # torch.nn.GroupNorm default eps


def _round_up(v, m):
    return (v + m - 1) // m * m


def _group_matrix(C):
    """(C, C) block-diagonal group-membership matrix: M[i, j] = 1 iff same group."""
    cg = C // NUM_GROUPS
    gid = jnp.arange(C) // cg
    return (gid[:, None] == gid[None, :]).astype(jnp.float32)


# ------------------------------- fused kernel --------------------------------


def _fused_block_kernel(x_ref, mask_ref,
                        m1_ref, g1_ref, bt1_ref, w1_ref, cb1_ref,
                        m2_ref, g2_ref, bt2_ref, w2_ref, cb2_ref,
                        *rest, H, W, Wp, OFF, cg1, cg2, project):
    """GN1+SiLU -> Conv1(3x3) -> GN2+SiLU -> Conv2(3x3) + residual, one batch element.

    x_ref    : (1, H, W, Cin)
    mask_ref : (HWp, 1) f32, 1 on spread rows whose w-coordinate is a real pixel
    m*_ref   : group-membership matrices, g*/bt* : GN affine params (1, C)
    w*_ref   : conv weights reshaped to (3, 3*Cin_conv, Cout) bf16 (dy-major,
               rows within a dy block ordered (dx, cin)), cb*_ref : biases (1, Cout)
    Spread layout: real pixel (h, w) lives at scratch row OFF + h*Wp + w; every
    other row read by the conv taps stays zero.
    """
    if project:
        wres_ref, bres_ref, o_ref, scr1, scr2, acc_ref = rest
    else:
        o_ref, scr1, scr2, acc_ref = rest

    f32 = jnp.float32
    bf16 = jnp.bfloat16
    HWp = H * Wp
    Cin = x_ref.shape[-1]
    Cout = o_ref.shape[-1]

    # One-time zeroing of the padded scratch planes.  Pad/halo cells are never
    # written afterwards; interior cells are fully rewritten every grid step
    # (scr1 by the per-row scatter, scr2 by the masked window store).
    @pl.when(pl.program_id(0) == 0)
    def _zero_halo():
        scr1[...] = jnp.zeros_like(scr1)
        scr2[...] = jnp.zeros_like(scr2)

    # ------------------ GroupNorm 1 (f32 stats) + SiLU ------------------
    x3 = x_ref[0].astype(f32)                                          # (H, W, Cin)
    ch_sum = jnp.sum(x3, axis=(0, 1), keepdims=True).reshape(1, Cin)
    ch_sumsq = jnp.sum(x3 * x3, axis=(0, 1), keepdims=True).reshape(1, Cin)
    denom1 = float(H * W * cg1)
    mean1 = jnp.dot(ch_sum, m1_ref[...], preferred_element_type=f32) / denom1
    ex2_1 = jnp.dot(ch_sumsq, m1_ref[...], preferred_element_type=f32) / denom1
    inv1 = jax.lax.rsqrt(ex2_1 - mean1 * mean1 + EPS)
    a1 = inv1 * g1_ref[...]                                            # (1, Cin)
    b1 = bt1_ref[...] - mean1 * a1                                     # (1, Cin)
    z1 = x3 * a1 + b1
    y1 = z1 * jax.nn.sigmoid(z1)                                       # SiLU, (H, W, Cin)

    # Scatter image rows into the zero-padded spread scratch (bf16).
    # Row h starts at OFF + h*Wp which is a multiple of 8 -> aligned stores.
    for h in range(H):
        scr1[pl.ds(OFF + h * Wp, W), :] = y1[h].astype(bf16)

    # ------------------ 3x3 conv as 3 matmuls with K = 3*C ------------------
    # Tap for output spread row r = h*Wp + w and kernel offset (dy, dx):
    #   scr[r + OFF + (dy-1)*Wp + (dx-1)]  ==  pixel (h+dy-1, w+dx-1) or 0 (pad).
    def conv3x3(scr, w_ref, bias):
        for dy in range(3):
            base = OFF + (dy - 1) * Wp - 1
            operand = jnp.concatenate(
                [scr[pl.ds(base + dx, HWp), :] for dx in range(3)], axis=-1)
            part = jnp.dot(operand, w_ref[dy], preferred_element_type=f32)
            if dy == 0:
                acc_ref[...] = part + bias
            else:
                acc_ref[...] += part

    conv3x3(scr1, w1_ref, cb1_ref[...])                                # conv1

    # ------------------ GroupNorm 2 + SiLU, directly in spread layout ---------
    acc1 = acc_ref[...]                                                # (HWp, Cout) f32
    mask = mask_ref[...]                                               # (HWp, 1) f32
    acc1m = acc1 * mask
    denom2 = float(H * W * cg2)
    ch_sum2 = jnp.sum(acc1m, axis=0, keepdims=True)                    # (1, Cout)
    ch_sumsq2 = jnp.sum(acc1m * acc1, axis=0, keepdims=True)
    mean2 = jnp.dot(ch_sum2, m2_ref[...], preferred_element_type=f32) / denom2
    ex2_2 = jnp.dot(ch_sumsq2, m2_ref[...], preferred_element_type=f32) / denom2
    inv2 = jax.lax.rsqrt(ex2_2 - mean2 * mean2 + EPS)
    a2 = inv2 * g2_ref[...]
    b2 = bt2_ref[...] - mean2 * a2
    z2 = acc1 * a2 + b2
    y2 = (z2 * jax.nn.sigmoid(z2)) * mask   # junk rows -> 0 == scr2 pad cells
    # One aligned window store recreates the spread layout for conv2.
    scr2[pl.ds(OFF, HWp), :] = y2.astype(bf16)

    conv3x3(scr2, w2_ref, cb2_ref[...])                                # conv2

    # ------------------ residual add + per-row writeback ------------------
    if project:  # 1x1 residual projection
        xf = x_ref[0].astype(bf16).reshape(H * W, Cin)
        res = jnp.dot(xf, wres_ref[...], preferred_element_type=f32) + bres_ref[...]
    for h in range(H):
        row = acc_ref[pl.ds(h * Wp, W), :]                             # aligned slice
        if project:
            row = row + res[h * W:(h + 1) * W, :]
        else:
            row = row + x_ref[0, h].astype(f32)                        # Cin == Cout
        o_ref[0, h] = row.astype(o_ref.dtype)


# --------------------------- module-level wrappers ----------------------------


def vae_residual_block_nhwc(x, params):
    """Fused forward pass, NHWC in / NHWC out (no layout transposes)."""
    N, H, W, Cin = x.shape
    Cout = params["conv1_w"].shape[0]
    project = params.get("res_w", None) is not None
    assert Cin % NUM_GROUPS == 0 and Cout % NUM_GROUPS == 0

    f32 = jnp.float32
    bf16 = jnp.bfloat16

    Wp = _round_up(W + 2, 8)            # spread-layout row stride (8-aligned)
    OFF = Wp + 8                        # first real-pixel row (8-aligned, > Wp)
    HWp = H * Wp                        # output spread window length
    R = _round_up(HWp + OFF + Wp + 1, 8)  # scratch rows (covers every tap read)
    cg1 = Cin // NUM_GROUPS
    cg2 = Cout // NUM_GROUPS

    m1 = _group_matrix(Cin)
    m2 = _group_matrix(Cout)
    # validity mask in spread layout (1 where the w-coordinate is a real pixel)
    mask = (jnp.arange(HWp, dtype=jnp.int32) % Wp < W).astype(f32).reshape(HWp, 1)

    # Conv weights: (Cout, Cin, 3, 3) -> (ky, kx, Cin, Cout) -> (3, 3*Cin, Cout)
    # so that rows [dx*Cin:(dx+1)*Cin] of block dy hold w[:, :, dy, dx].T.
    w1 = jnp.transpose(params["conv1_w"], (2, 3, 1, 0)).astype(bf16).reshape(3, 3 * Cin, Cout)
    w2 = jnp.transpose(params["conv2_w"], (2, 3, 1, 0)).astype(bf16).reshape(3, 3 * Cout, Cout)
    cb1 = params["conv1_b"].reshape(1, Cout).astype(f32)
    cb2 = params["conv2_b"].reshape(1, Cout).astype(f32)
    g1 = params["gn1_gamma"].reshape(1, Cin).astype(f32)
    bt1 = params["gn1_beta"].reshape(1, Cin).astype(f32)
    g2 = params["gn2_gamma"].reshape(1, Cout).astype(f32)
    bt2 = params["gn2_beta"].reshape(1, Cout).astype(f32)

    args = [x, mask, m1, g1, bt1, w1, cb1, m2, g2, bt2, w2, cb2]
    in_specs = [
        pl.BlockSpec((1, H, W, Cin), lambda n: (n, 0, 0, 0)),
        pl.BlockSpec((HWp, 1), lambda n: (0, 0)),
        pl.BlockSpec((Cin, Cin), lambda n: (0, 0)),
        pl.BlockSpec((1, Cin), lambda n: (0, 0)),
        pl.BlockSpec((1, Cin), lambda n: (0, 0)),
        pl.BlockSpec((3, 3 * Cin, Cout), lambda n: (0, 0, 0)),
        pl.BlockSpec((1, Cout), lambda n: (0, 0)),
        pl.BlockSpec((Cout, Cout), lambda n: (0, 0)),
        pl.BlockSpec((1, Cout), lambda n: (0, 0)),
        pl.BlockSpec((1, Cout), lambda n: (0, 0)),
        pl.BlockSpec((3, 3 * Cout, Cout), lambda n: (0, 0, 0)),
        pl.BlockSpec((1, Cout), lambda n: (0, 0)),
    ]
    if project:  # nn.Conv2d(in, out, kernel_size=1) on the residual path
        wres = jnp.transpose(params["res_w"][:, :, 0, 0], (1, 0)).astype(bf16)  # (Cin, Cout)
        bres = params["res_b"].reshape(1, Cout).astype(f32)
        args += [wres, bres]
        in_specs += [
            pl.BlockSpec((Cin, Cout), lambda n: (0, 0)),
            pl.BlockSpec((1, Cout), lambda n: (0, 0)),
        ]

    # Explicit scoped-VMEM budget (raises the 16 MiB v5e default when needed).
    itemsize = x.dtype.itemsize
    vmem_bytes = (
        2 * H * W * (Cin + Cout) * itemsize          # double-buffered in/out blocks
        + R * Cin * 2 + R * Cout * 2                 # bf16 spread scratch planes
        + HWp * Cout * 4                             # f32 conv accumulator
        + 2 * (9 * Cin * Cout + 9 * Cout * Cout) * 2  # conv weights
        + (Cin * Cin + Cout * Cout) * 4              # group matrices
        + (Cin * Cout * 2 if project else 0)
        + (1 << 20)
    )
    vmem_limit = int(min(max(2 * vmem_bytes, 32 * 1024 * 1024), 64 * 1024 * 1024))

    kernel = functools.partial(_fused_block_kernel, H=H, W=W, Wp=Wp, OFF=OFF,
                               cg1=cg1, cg2=cg2, project=project)

    return pl.pallas_call(
        kernel,
        out_shape=jax.ShapeDtypeStruct((N, H, W, Cout), x.dtype),
        grid_spec=pltpu.PrefetchScalarGridSpec(
            num_scalar_prefetch=0,
            grid=(N,),
            in_specs=in_specs,
            out_specs=pl.BlockSpec((1, H, W, Cout), lambda n: (n, 0, 0, 0)),
            scratch_shapes=[
                pltpu.VMEM((R, Cin), bf16),    # zero-padded conv1 input plane
                pltpu.VMEM((R, Cout), bf16),   # zero-padded conv2 input plane
                pltpu.VMEM((HWp, Cout), f32),  # shared conv accumulator
            ],
        ),
        compiler_params=pltpu.CompilerParams(
            # "arbitrary": the zero-once scratch halo requires sequential grid
            # execution on a core; v7x parallelism should come from strip tiling.
            dimension_semantics=("arbitrary",),
            vmem_limit_bytes=vmem_limit),
    )(*args)


def vae_residual_block(x_nchw, params):
    """NCHW wrapper matching the PyTorch module interface."""
    # TODO(synk): keep the surrounding model NHWC (and optionally bf16) end-to-end
    # and call vae_residual_block_nhwc directly; these transposes are extra HBM passes.
    x = jnp.transpose(x_nchw, (0, 2, 3, 1))                    # NCHW -> NHWC
    out = vae_residual_block_nhwc(x, params)
    return jnp.transpose(out, (0, 3, 1, 2))                    # NHWC -> NCHW


# ------------------------------ pure-JAX reference ---------------------------


def reference(x, p):
    def gn(x, gamma, beta):
        N, C, H, W = x.shape
        xg = x.reshape(N, NUM_GROUPS, C // NUM_GROUPS, H, W)
        mean = xg.mean(axis=(2, 3, 4), keepdims=True)
        var = xg.var(axis=(2, 3, 4), keepdims=True)
        xn = ((xg - mean) / jnp.sqrt(var + EPS)).reshape(N, C, H, W)
        return xn * gamma[None, :, None, None] + beta[None, :, None, None]

    def silu(v):
        return v * jax.nn.sigmoid(v)

    def conv(v, w, b, padding):
        out = jax.lax.conv_general_dilated(
            v, w, (1, 1), padding, dimension_numbers=("NCHW", "OIHW", "NCHW"))
        return out + b[None, :, None, None]

    r = x
    h = conv(silu(gn(x, p["gn1_gamma"], p["gn1_beta"])), p["conv1_w"], p["conv1_b"], "SAME")
    h = conv(silu(gn(h, p["gn2_gamma"], p["gn2_beta"])), p["conv2_w"], p["conv2_b"], "SAME")
    if p.get("res_w") is not None:
        r = conv(r, p["res_w"], p["res_b"], "VALID")
    return r + h


# ----------------------------------- main -------------------------------------


if __name__ == "__main__":
    N, Cin, Cout, H, W = 2, 64, 128, 8, 8  # GroupNorm(32) needs channels % 32 == 0

    key = jax.random.PRNGKey(0)
    ks = jax.random.split(key, 12)
    params = {
        "gn1_gamma": 1.0 + 0.1 * jax.random.normal(ks[0], (Cin,), jnp.float32),
        "gn1_beta": 0.1 * jax.random.normal(ks[1], (Cin,), jnp.float32),
        "conv1_w": 0.05 * jax.random.normal(ks[2], (Cout, Cin, 3, 3), jnp.float32),
        "conv1_b": 0.05 * jax.random.normal(ks[3], (Cout,), jnp.float32),
        "gn2_gamma": 1.0 + 0.1 * jax.random.normal(ks[4], (Cout,), jnp.float32),
        "gn2_beta": 0.1 * jax.random.normal(ks[5], (Cout,), jnp.float32),
        "conv2_w": 0.05 * jax.random.normal(ks[6], (Cout, Cout, 3, 3), jnp.float32),
        "conv2_b": 0.05 * jax.random.normal(ks[7], (Cout,), jnp.float32),
    }
    if Cin != Cout:  # nn.Conv2d(in, out, kernel_size=1) residual projection
        params["res_w"] = 0.05 * jax.random.normal(ks[8], (Cout, Cin, 1, 1), jnp.float32)
        params["res_b"] = 0.05 * jax.random.normal(ks[9], (Cout,), jnp.float32)

    x = jax.random.normal(ks[10], (N, Cin, H, W), jnp.float32)

    out = vae_residual_block(x, params)
    out = jax.block_until_ready(out)

    ref = jax.block_until_ready(reference(x, params))
    assert out.shape == (N, Cout, H, W)
    np.testing.assert_allclose(np.asarray(out), np.asarray(ref), atol=3e-2, rtol=3e-2)

    print("KERNEL_OK")
</pallas_src>

<mosaic_0001>
module attributes {stable_mosaic.version = 11 : i64} {
  func.func @_fused_block_kernel(%arg0: i32, %arg1: memref<1x8x8x64xf32, #tpu.memory_space<vmem>>, %arg2: memref<128x1xf32, #tpu.memory_space<vmem>>, %arg3: memref<64x64xf32, #tpu.memory_space<vmem>>, %arg4: memref<1x64xf32, #tpu.memory_space<vmem>>, %arg5: memref<1x64xf32, #tpu.memory_space<vmem>>, %arg6: memref<3x192x128xbf16, #tpu.memory_space<vmem>>, %arg7: memref<1x128xf32, #tpu.memory_space<vmem>>, %arg8: memref<128x128xf32, #tpu.memory_space<vmem>>, %arg9: memref<1x128xf32, #tpu.memory_space<vmem>>, %arg10: memref<1x128xf32, #tpu.memory_space<vmem>>, %arg11: memref<3x384x128xbf16, #tpu.memory_space<vmem>>, %arg12: memref<1x128xf32, #tpu.memory_space<vmem>>, %arg13: memref<64x128xbf16, #tpu.memory_space<vmem>>, %arg14: memref<1x128xf32, #tpu.memory_space<vmem>>, %arg15: memref<1x8x8x128xf32, #tpu.memory_space<vmem>>, %arg16: memref<176x64xbf16, #tpu.memory_space<vmem>>, %arg17: memref<176x128xbf16, #tpu.memory_space<vmem>>, %arg18: memref<128x128xf32, #tpu.memory_space<vmem>>) attributes {dimension_semantics = [#tpu.dimension_semantics<arbitrary>], iteration_bounds = array<i64: 2>, scalar_prefetch = 0 : i64, scratch_operands = 3 : i64, tpu.core_type = #tpu.core_type<tc>, window_params = [{transform_indices = @transform_0, window_bounds = array<i64: 1, 8, 8, 64>}, {pipeline_mode = #tpu.pipeline_mode<synchronous>, transform_indices = @transform_1, window_bounds = array<i64: 128, 1>}, {pipeline_mode = #tpu.pipeline_mode<synchronous>, transform_indices = @transform_2, window_bounds = array<i64: 64, 64>}, {pipeline_mode = #tpu.pipeline_mode<synchronous>, transform_indices = @transform_3, window_bounds = array<i64: 1, 64>}, {pipeline_mode = #tpu.pipeline_mode<synchronous>, transform_indices = @transform_4, window_bounds = array<i64: 1, 64>}, {pipeline_mode = #tpu.pipeline_mode<synchronous>, transform_indices = @transform_5, window_bounds = array<i64: 3, 192, 128>}, {pipeline_mode = #tpu.pipeline_mode<synchronous>, transform_indices = @transform_6, window_bounds = array<i64: 1, 128>}, {pipeline_mode = #tpu.pipeline_mode<synchronous>, transform_indices = @transform_7, window_bounds = array<i64: 128, 128>}, {pipeline_mode = #tpu.pipeline_mode<synchronous>, transform_indices = @transform_8, window_bounds = array<i64: 1, 128>}, {pipeline_mode = #tpu.pipeline_mode<synchronous>, transform_indices = @transform_9, window_bounds = array<i64: 1, 128>}, {pipeline_mode = #tpu.pipeline_mode<synchronous>, transform_indices = @transform_10, window_bounds = array<i64: 3, 384, 128>}, {pipeline_mode = #tpu.pipeline_mode<synchronous>, transform_indices = @transform_11, window_bounds = array<i64: 1, 128>}, {pipeline_mode = #tpu.pipeline_mode<synchronous>, transform_indices = @transform_12, window_bounds = array<i64: 64, 128>}, {pipeline_mode = #tpu.pipeline_mode<synchronous>, transform_indices = @transform_13, window_bounds = array<i64: 1, 128>}, {transform_indices = @transform_14, window_bounds = array<i64: 1, 8, 8, 128>}]} {
    %c0_i32 = arith.constant 0 : i32
    %0 = arith.cmpi eq, %arg0, %c0_i32 : i32
    %1 = arith.extui %0 : i1 to i32
    %c0_i32_0 = arith.constant 0 : i32
    %2 = arith.cmpi ne, %1, %c0_i32_0 : i32
    scf.if %2 {
      %cst_170 = arith.constant 0.000000e+00 : bf16
      %234 = vector.broadcast %cst_170 : bf16 to vector<176x64xbf16>
      %c0_171 = arith.constant 0 : index
      %c0_172 = arith.constant 0 : index
      %235 = vector.load %arg16[%c0_171, %c0_172] : memref<176x64xbf16, #tpu.memory_space<vmem>>, vector<176x64xbf16>
      tpu.vector_store %arg16[%c0_171, %c0_172], %234 {strides = array<i32>} : memref<176x64xbf16, #tpu.memory_space<vmem>>, vector<176x64xbf16>,
      %cst_173 = arith.constant 0.000000e+00 : bf16
      %236 = vector.broadcast %cst_173 : bf16 to vector<176x128xbf16>
      %c0_174 = arith.constant 0 : index
      %c0_175 = arith.constant 0 : index
      %237 = vector.load %arg17[%c0_174, %c0_175] : memref<176x128xbf16, #tpu.memory_space<vmem>>, vector<176x128xbf16>
      tpu.vector_store %arg17[%c0_174, %c0_175], %236 {strides = array<i32>} : memref<176x128xbf16, #tpu.memory_space<vmem>>, vector<176x128xbf16>,
    } else {
    }
    %c0 = arith.constant 0 : index
    %c0_1 = arith.constant 0 : index
    %c0_2 = arith.constant 0 : index
    %c0_3 = arith.constant 0 : index
    %3 = vector.load %arg1[%c0, %c0_1, %c0_2, %c0_3] : memref<1x8x8x64xf32, #tpu.memory_space<vmem>>, vector<1x8x8x64xf32>
    %4 = vector.shape_cast %3 : vector<1x8x8x64xf32> to vector<8x8x64xf32>
    %cst = arith.constant dense<0.000000e+00> : vector<64xf32>
    %5 = vector.multi_reduction <add>, %4, %cst [0, 1] : vector<8x8x64xf32> to vector<64xf32>
    %6 = vector.shape_cast %5 : vector<64xf32> to vector<1x1x64xf32>
    %7 = vector.shape_cast %6 : vector<1x1x64xf32> to vector<1x64xf32>
    %8 = arith.mulf %4, %4 : vector<8x8x64xf32>
    %cst_4 = arith.constant dense<0.000000e+00> : vector<64xf32>
    %9 = vector.multi_reduction <add>, %8, %cst_4 [0, 1] : vector<8x8x64xf32> to vector<64xf32>
    %10 = vector.shape_cast %9 : vector<64xf32> to vector<1x1x64xf32>
    %11 = vector.shape_cast %10 : vector<1x1x64xf32> to vector<1x64xf32>
    %c0_5 = arith.constant 0 : index
    %c0_6 = arith.constant 0 : index
    %12 = vector.load %arg3[%c0_5, %c0_6] : memref<64x64xf32, #tpu.memory_space<vmem>>, vector<64x64xf32>
    %cst_7 = arith.constant dense<0.000000e+00> : vector<1x64xf32>
    %13 = tpu.matmul %7, %12, %cst_7 {dimension_numbers = #tpu.dot_dimension_numbers<[1], [0], [0], [1], [0, 0, 1, 1], [], []>} : vector<1x64xf32>, vector<64x64xf32>, vector<1x64xf32> -> vector<1x64xf32>
    %cst_8 = arith.constant 1.280000e+02 : f32
    %14 = vector.broadcast %cst_8 : f32 to vector<1x64xf32>
    %15 = arith.divf %13, %14 : vector<1x64xf32>
    %c0_9 = arith.constant 0 : index
    %c0_10 = arith.constant 0 : index
    %16 = vector.load %arg3[%c0_9, %c0_10] : memref<64x64xf32, #tpu.memory_space<vmem>>, vector<64x64xf32>
    %cst_11 = arith.constant dense<0.000000e+00> : vector<1x64xf32>
    %17 = tpu.matmul %11, %16, %cst_11 {dimension_numbers = #tpu.dot_dimension_numbers<[1], [0], [0], [1], [0, 0, 1, 1], [], []>} : vector<1x64xf32>, vector<64x64xf32>, vector<1x64xf32> -> vector<1x64xf32>
    %cst_12 = arith.constant 1.280000e+02 : f32
    %18 = vector.broadcast %cst_12 : f32 to vector<1x64xf32>
    %19 = arith.divf %17, %18 : vector<1x64xf32>
    %20 = arith.mulf %15, %15 : vector<1x64xf32>
    %21 = arith.subf %19, %20 : vector<1x64xf32>
    %cst_13 = arith.constant 9.99999974E-6 : f32
    %22 = vector.broadcast %cst_13 : f32 to vector<1x64xf32>
    %23 = arith.addf %21, %22 : vector<1x64xf32>
    %24 = math.rsqrt %23 : vector<1x64xf32>
    %c0_14 = arith.constant 0 : index
    %c0_15 = arith.constant 0 : index
    %25 = vector.load %arg4[%c0_14, %c0_15] : memref<1x64xf32, #tpu.memory_space<vmem>>, vector<1x64xf32>
    %26 = arith.mulf %24, %25 : vector<1x64xf32>
    %c0_16 = arith.constant 0 : index
    %c0_17 = arith.constant 0 : index
    %27 = vector.load %arg5[%c0_16, %c0_17] : memref<1x64xf32, #tpu.memory_space<vmem>>, vector<1x64xf32>
    %28 = arith.mulf %15, %26 : vector<1x64xf32>
    %29 = arith.subf %27, %28 : vector<1x64xf32>
    %30 = vector.shape_cast %26 : vector<1x64xf32> to vector<1x1x64xf32>
    %31 = vector.broadcast %30 : vector<1x1x64xf32> to vector<8x8x64xf32>
    %32 = arith.mulf %4, %31 : vector<8x8x64xf32>
    %33 = vector.shape_cast %29 : vector<1x64xf32> to vector<1x1x64xf32>
    %34 = vector.broadcast %33 : vector<1x1x64xf32> to vector<8x8x64xf32>
    %35 = arith.addf %32, %34 : vector<8x8x64xf32>
    %36 = arith.negf %35 : vector<8x8x64xf32>
    %37 = math.exp %36 : vector<8x8x64xf32>
    %cst_18 = arith.constant 1.000000e+00 : f32
    %38 = vector.broadcast %cst_18 : f32 to vector<8x8x64xf32>
    %39 = arith.addf %38, %37 : vector<8x8x64xf32>
    %40 = arith.divf %38, %39 : vector<8x8x64xf32>
    %41 = arith.mulf %35, %40 : vector<8x8x64xf32>
    %42 = vector.extract_strided_slice %41 {offsets = [0, 0, 0], sizes = [1, 8, 64], strides = [1, 1, 1]} : vector<8x8x64xf32> to vector<1x8x64xf32>
    %43 = vector.shape_cast %42 : vector<1x8x64xf32> to vector<8x64xf32>
    %44 = arith.truncf %43 : vector<8x64xf32> to vector<8x64xbf16>
    %c24 = arith.constant 24 : index
    %c0_19 = arith.constant 0 : index
    %45 = vector.load %arg16[%c24, %c0_19] : memref<176x64xbf16, #tpu.memory_space<vmem>>, vector<8x64xbf16>
    tpu.vector_store %arg16[%c24, %c0_19], %44 {strides = array<i32>} : memref<176x64xbf16, #tpu.memory_space<vmem>>, vector<8x64xbf16>,
    %46 = vector.extract_strided_slice %41 {offsets = [1, 0, 0], sizes = [1, 8, 64], strides = [1, 1, 1]} : vector<8x8x64xf32> to vector<1x8x64xf32>
    %47 = vector.shape_cast %46 : vector<1x8x64xf32> to vector<8x64xf32>
    %48 = arith.truncf %47 : vector<8x64xf32> to vector<8x64xbf16>
    %c40 = arith.constant 40 : index
    %c0_20 = arith.constant 0 : index
    %49 = vector.load %arg16[%c40, %c0_20] : memref<176x64xbf16, #tpu.memory_space<vmem>>, vector<8x64xbf16>
    tpu.vector_store %arg16[%c40, %c0_20], %48 {strides = array<i32>} : memref<176x64xbf16, #tpu.memory_space<vmem>>, vector<8x64xbf16>,
    %50 = vector.extract_strided_slice %41 {offsets = [2, 0, 0], sizes = [1, 8, 64], strides = [1, 1, 1]} : vector<8x8x64xf32> to vector<1x8x64xf32>
    %51 = vector.shape_cast %50 : vector<1x8x64xf32> to vector<8x64xf32>
    %52 = arith.truncf %51 : vector<8x64xf32> to vector<8x64xbf16>
    %c56 = arith.constant 56 : index
    %c0_21 = arith.constant 0 : index
    %53 = vector.load %arg16[%c56, %c0_21] : memref<176x64xbf16, #tpu.memory_space<vmem>>, vector<8x64xbf16>
    tpu.vector_store %arg16[%c56, %c0_21], %52 {strides = array<i32>} : memref<176x64xbf16, #tpu.memory_space<vmem>>, vector<8x64xbf16>,
    %54 = vector.extract_strided_slice %41 {offsets = [3, 0, 0], sizes = [1, 8, 64], strides = [1, 1, 1]} : vector<8x8x64xf32> to vector<1x8x64xf32>
    %55 = vector.shape_cast %54 : vector<1x8x64xf32> to vector<8x64xf32>
    %56 = arith.truncf %55 : vector<8x64xf32> to vector<8x64xbf16>
    %c72 = arith.constant 72 : index
    %c0_22 = arith.constant 0 : index
    %57 = vector.load %arg16[%c72, %c0_22] : memref<176x64xbf16, #tpu.memory_space<vmem>>, vector<8x64xbf16>
    tpu.vector_store %arg16[%c72, %c0_22], %56 {strides = array<i32>} : memref<176x64xbf16, #tpu.memory_space<vmem>>, vector<8x64xbf16>,
    %58 = vector.extract_strided_slice %41 {offsets = [4, 0, 0], sizes = [1, 8, 64], strides = [1, 1, 1]} : vector<8x8x64xf32> to vector<1x8x64xf32>
    %59 = vector.shape_cast %58 : vector<1x8x64xf32> to vector<8x64xf32>
    %60 = arith.truncf %59 : vector<8x64xf32> to vector<8x64xbf16>
    %c88 = arith.constant 88 : index
    %c0_23 = arith.constant 0 : index
    %61 = vector.load %arg16[%c88, %c0_23] : memref<176x64xbf16, #tpu.memory_space<vmem>>, vector<8x64xbf16>
    tpu.vector_store %arg16[%c88, %c0_23], %60 {strides = array<i32>} : memref<176x64xbf16, #tpu.memory_space<vmem>>, vector<8x64xbf16>,
    %62 = vector.extract_strided_slice %41 {offsets = [5, 0, 0], sizes = [1, 8, 64], strides = [1, 1, 1]} : vector<8x8x64xf32> to vector<1x8x64xf32>
    %63 = vector.shape_cast %62 : vector<1x8x64xf32> to vector<8x64xf32>
    %64 = arith.truncf %63 : vector<8x64xf32> to vector<8x64xbf16>
    %c104 = arith.constant 104 : index
    %c0_24 = arith.constant 0 : index
    %65 = vector.load %arg16[%c104, %c0_24] : memref<176x64xbf16, #tpu.memory_space<vmem>>, vector<8x64xbf16>
    tpu.vector_store %arg16[%c104, %c0_24], %64 {strides = array<i32>} : memref<176x64xbf16, #tpu.memory_space<vmem>>, vector<8x64xbf16>,
    %66 = vector.extract_strided_slice %41 {offsets = [6, 0, 0], sizes = [1, 8, 64], strides = [1, 1, 1]} : vector<8x8x64xf32> to vector<1x8x64xf32>
    %67 = vector.shape_cast %66 : vector<1x8x64xf32> to vector<8x64xf32>
    %68 = arith.truncf %67 : vector<8x64xf32> to vector<8x64xbf16>
    %c120 = arith.constant 120 : index
    %c0_25 = arith.constant 0 : index
    %69 = vector.load %arg16[%c120, %c0_25] : memref<176x64xbf16, #tpu.memory_space<vmem>>, vector<8x64xbf16>
    tpu.vector_store %arg16[%c120, %c0_25], %68 {strides = array<i32>} : memref<176x64xbf16, #tpu.memory_space<vmem>>, vector<8x64xbf16>,
    %70 = vector.extract_strided_slice %41 {offsets = [7, 0, 0], sizes = [1, 8, 64], strides = [1, 1, 1]} : vector<8x8x64xf32> to vector<1x8x64xf32>
    %71 = vector.shape_cast %70 : vector<1x8x64xf32> to vector<8x64xf32>
    %72 = arith.truncf %71 : vector<8x64xf32> to vector<8x64xbf16>
    %c136 = arith.constant 136 : index
    %c0_26 = arith.constant 0 : index
    %73 = vector.load %arg16[%c136, %c0_26] : memref<176x64xbf16, #tpu.memory_space<vmem>>, vector<8x64xbf16>
    tpu.vector_store %arg16[%c136, %c0_26], %72 {strides = array<i32>} : memref<176x64xbf16, #tpu.memory_space<vmem>>, vector<8x64xbf16>,
    %c0_27 = arith.constant 0 : index
    %c0_28 = arith.constant 0 : index
    %74 = vector.load %arg7[%c0_27, %c0_28] : memref<1x128xf32, #tpu.memory_space<vmem>>, vector<1x128xf32>
    %c7 = arith.constant 7 : index
    %c0_29 = arith.constant 0 : index
    %75 = vector.load %arg16[%c7, %c0_29] : memref<176x64xbf16, #tpu.memory_space<vmem>>, vector<128x64xbf16>
    %c8 = arith.constant 8 : index
    %c0_30 = arith.constant 0 : index
    %76 = vector.load %arg16[%c8, %c0_30] : memref<176x64xbf16, #tpu.memory_space<vmem>>, vector<128x64xbf16>
    %c9 = arith.constant 9 : index
    %c0_31 = arith.constant 0 : index
    %77 = vector.load %arg16[%c9, %c0_31] : memref<176x64xbf16, #tpu.memory_space<vmem>>, vector<128x64xbf16>
    %78 = tpu.concatenate %75, %76, %77 in 1 : vector<128x64xbf16>, vector<128x64xbf16>, vector<128x64xbf16> -> vector<128x192xbf16>
    %c0_32 = arith.constant 0 : index
    %c0_33 = arith.constant 0 : index
    %c0_34 = arith.constant 0 : index
    %79 = vector.load %arg6[%c0_32, %c0_33, %c0_34] : memref<3x192x128xbf16, #tpu.memory_space<vmem>>, vector<1x192x128xbf16>
    %80 = vector.shape_cast %79 : vector<1x192x128xbf16> to vector<192x128xbf16>
    %cst_35 = arith.constant dense<0.000000e+00> : vector<128x128xf32>
    %81 = tpu.matmul %78, %80, %cst_35 {dimension_numbers = #tpu.dot_dimension_numbers<[1], [0], [0], [1], [0, 0, 1, 1], [], []>} : vector<128x192xbf16>, vector<192x128xbf16>, vector<128x128xf32> -> vector<128x128xf32>
    %82 = vector.broadcast %74 : vector<1x128xf32> to vector<128x128xf32>
    %83 = arith.addf %81, %82 : vector<128x128xf32>
    %c0_36 = arith.constant 0 : index
    %c0_37 = arith.constant 0 : index
    %84 = vector.load %arg18[%c0_36, %c0_37] : memref<128x128xf32, #tpu.memory_space<vmem>>, vector<128x128xf32>
    tpu.vector_store %arg18[%c0_36, %c0_37], %83 {strides = array<i32>} : memref<128x128xf32, #tpu.memory_space<vmem>>, vector<128x128xf32>,
    %c23 = arith.constant 23 : index
    %c0_38 = arith.constant 0 : index
    %85 = vector.load %arg16[%c23, %c0_38] : memref<176x64xbf16, #tpu.memory_space<vmem>>, vector<128x64xbf16>
    %c24_39 = arith.constant 24 : index
    %c0_40 = arith.constant 0 : index
    %86 = vector.load %arg16[%c24_39, %c0_40] : memref<176x64xbf16, #tpu.memory_space<vmem>>, vector<128x64xbf16>
    %c25 = arith.constant 25 : index
    %c0_41 = arith.constant 0 : index
    %87 = vector.load %arg16[%c25, %c0_41] : memref<176x64xbf16, #tpu.memory_space<vmem>>, vector<128x64xbf16>
    %88 = tpu.concatenate %85, %86, %87 in 1 : vector<128x64xbf16>, vector<128x64xbf16>, vector<128x64xbf16> -> vector<128x192xbf16>
    %c1 = arith.constant 1 : index
    %c0_42 = arith.constant 0 : index
    %c0_43 = arith.constant 0 : index
    %89 = vector.load %arg6[%c1, %c0_42, %c0_43] : memref<3x192x128xbf16, #tpu.memory_space<vmem>>, vector<1x192x128xbf16>
    %90 = vector.shape_cast %89 : vector<1x192x128xbf16> to vector<192x128xbf16>
    %cst_44 = arith.constant dense<0.000000e+00> : vector<128x128xf32>
    %91 = tpu.matmul %88, %90, %cst_44 {dimension_numbers = #tpu.dot_dimension_numbers<[1], [0], [0], [1], [0, 0, 1, 1], [], []>} : vector<128x192xbf16>, vector<192x128xbf16>, vector<128x128xf32> -> vector<128x128xf32>
    %c0_45 = arith.constant 0 : index
    %c0_46 = arith.constant 0 : index
    %92 = vector.load %arg18[%c0_45, %c0_46] : memref<128x128xf32, #tpu.memory_space<vmem>>, vector<128x128xf32>
    %93 = arith.addf %92, %91 : vector<128x128xf32>
    %c0_47 = arith.constant 0 : index
    %c0_48 = arith.constant 0 : index
    %94 = vector.load %arg18[%c0_47, %c0_48] : memref<128x128xf32, #tpu.memory_space<vmem>>, vector<128x128xf32>
    tpu.vector_store %arg18[%c0_47, %c0_48], %93 {strides = array<i32>} : memref<128x128xf32, #tpu.memory_space<vmem>>, vector<128x128xf32>,
    %c39 = arith.constant 39 : index
    %c0_49 = arith.constant 0 : index
    %95 = vector.load %arg16[%c39, %c0_49] : memref<176x64xbf16, #tpu.memory_space<vmem>>, vector<128x64xbf16>
    %c40_50 = arith.constant 40 : index
    %c0_51 = arith.constant 0 : index
    %96 = vector.load %arg16[%c40_50, %c0_51] : memref<176x64xbf16, #tpu.memory_space<vmem>>, vector<128x64xbf16>
    %c41 = arith.constant 41 : index
    %c0_52 = arith.constant 0 : index
    %97 = vector.load %arg16[%c41, %c0_52] : memref<176x64xbf16, #tpu.memory_space<vmem>>, vector<128x64xbf16>
    %98 = tpu.concatenate %95, %96, %97 in 1 : vector<128x64xbf16>, vector<128x64xbf16>, vector<128x64xbf16> -> vector<128x192xbf16>
    %c2 = arith.constant 2 : index
    %c0_53 = arith.constant 0 : index
    %c0_54 = arith.constant 0 : index
    %99 = vector.load %arg6[%c2, %c0_53, %c0_54] : memref<3x192x128xbf16, #tpu.memory_space<vmem>>, vector<1x192x128xbf16>
    %100 = vector.shape_cast %99 : vector<1x192x128xbf16> to vector<192x128xbf16>
    %cst_55 = arith.constant dense<0.000000e+00> : vector<128x128xf32>
    %101 = tpu.matmul %98, %100, %cst_55 {dimension_numbers = #tpu.dot_dimension_numbers<[1], [0], [0], [1], [0, 0, 1, 1], [], []>} : vector<128x192xbf16>, vector<192x128xbf16>, vector<128x128xf32> -> vector<128x128xf32>
    %c0_56 = arith.constant 0 : index
    %c0_57 = arith.constant 0 : index
    %102 = vector.load %arg18[%c0_56, %c0_57] : memref<128x128xf32, #tpu.memory_space<vmem>>, vector<128x128xf32>
    %103 = arith.addf %102, %101 : vector<128x128xf32>
    %c0_58 = arith.constant 0 : index
    %c0_59 = arith.constant 0 : index
    %104 = vector.load %arg18[%c0_58, %c0_59] : memref<128x128xf32, #tpu.memory_space<vmem>>, vector<128x128xf32>
    tpu.vector_store %arg18[%c0_58, %c0_59], %103 {strides = array<i32>} : memref<128x128xf32, #tpu.memory_space<vmem>>, vector<128x128xf32>,
    %c0_60 = arith.constant 0 : index
    %c0_61 = arith.constant 0 : index
    %105 = vector.load %arg18[%c0_60, %c0_61] : memref<128x128xf32, #tpu.memory_space<vmem>>, vector<128x128xf32>
    %c0_62 = arith.constant 0 : index
    %c0_63 = arith.constant 0 : index
    %106 = vector.load %arg2[%c0_62, %c0_63] : memref<128x1xf32, #tpu.memory_space<vmem>>, vector<128x1xf32>
    %107 = vector.broadcast %106 : vector<128x1xf32> to vector<128x128xf32>
    %108 = arith.mulf %105, %107 : vector<128x128xf32>
    %cst_64 = arith.constant dense<0.000000e+00> : vector<128xf32>
    %109 = vector.multi_reduction <add>, %108, %cst_64 [0] : vector<128x128xf32> to vector<128xf32>
    %110 = vector.shape_cast %109 : vector<128xf32> to vector<1x128xf32>
    %111 = arith.mulf %108, %105 : vector<128x128xf32>
    %cst_65 = arith.constant dense<0.000000e+00> : vector<128xf32>
    %112 = vector.multi_reduction <add>, %111, %cst_65 [0] : vector<128x128xf32> to vector<128xf32>
    %113 = vector.shape_cast %112 : vector<128xf32> to vector<1x128xf32>
    %c0_66 = arith.constant 0 : index
    %c0_67 = arith.constant 0 : index
    %114 = vector.load %arg8[%c0_66, %c0_67] : memref<128x128xf32, #tpu.memory_space<vmem>>, vector<128x128xf32>
    %cst_68 = arith.constant dense<0.000000e+00> : vector<1x128xf32>
    %115 = tpu.matmul %110, %114, %cst_68 {dimension_numbers = #tpu.dot_dimension_numbers<[1], [0], [0], [1], [0, 0, 1, 1], [], []>} : vector<1x128xf32>, vector<128x128xf32>, vector<1x128xf32> -> vector<1x128xf32>
    %cst_69 = arith.constant 2.560000e+02 : f32
    %116 = vector.broadcast %cst_69 : f32 to vector<1x128xf32>
    %117 = arith.divf %115, %116 : vector<1x128xf32>
    %c0_70 = arith.constant 0 : index
    %c0_71 = arith.constant 0 : index
    %118 = vector.load %arg8[%c0_70, %c0_71] : memref<128x128xf32, #tpu.memory_space<vmem>>, vector<128x128xf32>
    %cst_72 = arith.constant dense<0.000000e+00> : vector<1x128xf32>
    %119 = tpu.matmul %113, %118, %cst_72 {dimension_numbers = #tpu.dot_dimension_numbers<[1], [0], [0], [1], [0, 0, 1, 1], [], []>} : vector<1x128xf32>, vector<128x128xf32>, vector<1x128xf32> -> vector<1x128xf32>
    %cst_73 = arith.constant 2.560000e+02 : f32
    %120 = vector.broadcast %cst_73 : f32 to vector<1x128xf32>
    %121 = arith.divf %119, %120 : vector<1x128xf32>
    %122 = arith.mulf %117, %117 : vector<1x128xf32>
    %123 = arith.subf %121, %122 : vector<1x128xf32>
    %cst_74 = arith.constant 9.99999974E-6 : f32
    %124 = vector.broadcast %cst_74 : f32 to vector<1x128xf32>
    %125 = arith.addf %123, %124 : vector<1x128xf32>
    %126 = math.rsqrt %125 : vector<1x128xf32>
    %c0_75 = arith.constant 0 : index
    %c0_76 = arith.constant 0 : index
    %127 = vector.load %arg9[%c0_75, %c0_76] : memref<1x128xf32, #tpu.memory_space<vmem>>, vector<1x128xf32>
    %128 = arith.mulf %126, %127 : vector<1x128xf32>
    %c0_77 = arith.constant 0 : index
    %c0_78 = arith.constant 0 : index
    %129 = vector.load %arg10[%c0_77, %c0_78] : memref<1x128xf32, #tpu.memory_space<vmem>>, vector<1x128xf32>
    %130 = arith.mulf %117, %128 : vector<1x128xf32>
    %131 = arith.subf %129, %130 : vector<1x128xf32>
    %132 = vector.broadcast %128 : vector<1x128xf32> to vector<128x128xf32>
    %133 = arith.mulf %105, %132 : vector<128x128xf32>
    %134 = vector.broadcast %131 : vector<1x128xf32> to vector<128x128xf32>
    %135 = arith.addf %133, %134 : vector<128x128xf32>
    %136 = arith.negf %135 : vector<128x128xf32>
    %137 = math.exp %136 : vector<128x128xf32>
    %cst_79 = arith.constant 1.000000e+00 : f32
    %138 = vector.broadcast %cst_79 : f32 to vector<128x128xf32>
    %139 = arith.addf %138, %137 : vector<128x128xf32>
    %140 = arith.divf %138, %139 : vector<128x128xf32>
    %141 = arith.mulf %135, %140 : vector<128x128xf32>
    %142 = vector.broadcast %106 : vector<128x1xf32> to vector<128x128xf32>
    %143 = arith.mulf %141, %142 : vector<128x128xf32>
    %144 = arith.truncf %143 : vector<128x128xf32> to vector<128x128xbf16>
    %c24_80 = arith.constant 24 : index
    %c0_81 = arith.constant 0 : index
    %145 = vector.load %arg17[%c24_80, %c0_81] : memref<176x128xbf16, #tpu.memory_space<vmem>>, vector<128x128xbf16>
    tpu.vector_store %arg17[%c24_80, %c0_81], %144 {strides = array<i32>} : memref<176x128xbf16, #tpu.memory_space<vmem>>, vector<128x128xbf16>,
    %c0_82 = arith.constant 0 : index
    %c0_83 = arith.constant 0 : index
    %146 = vector.load %arg12[%c0_82, %c0_83] : memref<1x128xf32, #tpu.memory_space<vmem>>, vector<1x128xf32>
    %c7_84 = arith.constant 7 : index
    %c0_85 = arith.constant 0 : index
    %147 = vector.load %arg17[%c7_84, %c0_85] : memref<176x128xbf16, #tpu.memory_space<vmem>>, vector<128x128xbf16>
    %c8_86 = arith.constant 8 : index
    %c0_87 = arith.constant 0 : index
    %148 = vector.load %arg17[%c8_86, %c0_87] : memref<176x128xbf16, #tpu.memory_space<vmem>>, vector<128x128xbf16>
    %c9_88 = arith.constant 9 : index
    %c0_89 = arith.constant 0 : index
    %149 = vector.load %arg17[%c9_88, %c0_89] : memref<176x128xbf16, #tpu.memory_space<vmem>>, vector<128x128xbf16>
    %150 = tpu.concatenate %147, %148, %149 in 1 : vector<128x128xbf16>, vector<128x128xbf16>, vector<128x128xbf16> -> vector<128x384xbf16>
    %c0_90 = arith.constant 0 : index
    %c0_91 = arith.constant 0 : index
    %c0_92 = arith.constant 0 : index
    %151 = vector.load %arg11[%c0_90, %c0_91, %c0_92] : memref<3x384x128xbf16, #tpu.memory_space<vmem>>, vector<1x384x128xbf16>
    %152 = vector.shape_cast %151 : vector<1x384x128xbf16> to vector<384x128xbf16>
    %cst_93 = arith.constant dense<0.000000e+00> : vector<128x128xf32>
    %153 = tpu.matmul %150, %152, %cst_93 {dimension_numbers = #tpu.dot_dimension_numbers<[1], [0], [0], [1], [0, 0, 1, 1], [], []>} : vector<128x384xbf16>, vector<384x128xbf16>, vector<128x128xf32> -> vector<128x128xf32>
    %154 = vector.broadcast %146 : vector<1x128xf32> to vector<128x128xf32>
    %155 = arith.addf %153, %154 : vector<128x128xf32>
    %c0_94 = arith.constant 0 : index
    %c0_95 = arith.constant 0 : index
    %156 = vector.load %arg18[%c0_94, %c0_95] : memref<128x128xf32, #tpu.memory_space<vmem>>, vector<128x128xf32>
    tpu.vector_store %arg18[%c0_94, %c0_95], %155 {strides = array<i32>} : memref<128x128xf32, #tpu.memory_space<vmem>>, vector<128x128xf32>,
    %c23_96 = arith.constant 23 : index
    %c0_97 = arith.constant 0 : index
    %157 = vector.load %arg17[%c23_96, %c0_97] : memref<176x128xbf16, #tpu.memory_space<vmem>>, vector<128x128xbf16>
    %c24_98 = arith.constant 24 : index
    %c0_99 = arith.constant 0 : index
    %158 = vector.load %arg17[%c24_98, %c0_99] : memref<176x128xbf16, #tpu.memory_space<vmem>>, vector<128x128xbf16>
    %c25_100 = arith.constant 25 : index
    %c0_101 = arith.constant 0 : index
    %159 = vector.load %arg17[%c25_100, %c0_101] : memref<176x128xbf16, #tpu.memory_space<vmem>>, vector<128x128xbf16>
    %160 = tpu.concatenate %157, %158, %159 in 1 : vector<128x128xbf16>, vector<128x128xbf16>, vector<128x128xbf16> -> vector<128x384xbf16>
    %c1_102 = arith.constant 1 : index
    %c0_103 = arith.constant 0 : index
    %c0_104 = arith.constant 0 : index
    %161 = vector.load %arg11[%c1_102, %c0_103, %c0_104] : memref<3x384x128xbf16, #tpu.memory_space<vmem>>, vector<1x384x128xbf16>
    %162 = vector.shape_cast %161 : vector<1x384x128xbf16> to vector<384x128xbf16>
    %cst_105 = arith.constant dense<0.000000e+00> : vector<128x128xf32>
    %163 = tpu.matmul %160, %162, %cst_105 {dimension_numbers = #tpu.dot_dimension_numbers<[1], [0], [0], [1], [0, 0, 1, 1], [], []>} : vector<128x384xbf16>, vector<384x128xbf16>, vector<128x128xf32> -> vector<128x128xf32>
    %c0_106 = arith.constant 0 : index
    %c0_107 = arith.constant 0 : index
    %164 = vector.load %arg18[%c0_106, %c0_107] : memref<128x128xf32, #tpu.memory_space<vmem>>, vector<128x128xf32>
    %165 = arith.addf %164, %163 : vector<128x128xf32>
    %c0_108 = arith.constant 0 : index
    %c0_109 = arith.constant 0 : index
    %166 = vector.load %arg18[%c0_108, %c0_109] : memref<128x128xf32, #tpu.memory_space<vmem>>, vector<128x128xf32>
    tpu.vector_store %arg18[%c0_108, %c0_109], %165 {strides = array<i32>} : memref<128x128xf32, #tpu.memory_space<vmem>>, vector<128x128xf32>,
    %c39_110 = arith.constant 39 : index
    %c0_111 = arith.constant 0 : index
    %167 = vector.load %arg17[%c39_110, %c0_111] : memref<176x128xbf16, #tpu.memory_space<vmem>>, vector<128x128xbf16>
    %c40_112 = arith.constant 40 : index
    %c0_113 = arith.constant 0 : index
    %168 = vector.load %arg17[%c40_112, %c0_113] : memref<176x128xbf16, #tpu.memory_space<vmem>>, vector<128x128xbf16>
    %c41_114 = arith.constant 41 : index
    %c0_115 = arith.constant 0 : index
    %169 = vector.load %arg17[%c41_114, %c0_115] : memref<176x128xbf16, #tpu.memory_space<vmem>>, vector<128x128xbf16>
    %170 = tpu.concatenate %167, %168, %169 in 1 : vector<128x128xbf16>, vector<128x128xbf16>, vector<128x128xbf16> -> vector<128x384xbf16>
    %c2_116 = arith.constant 2 : index
    %c0_117 = arith.constant 0 : index
    %c0_118 = arith.constant 0 : index
    %171 = vector.load %arg11[%c2_116, %c0_117, %c0_118] : memref<3x384x128xbf16, #tpu.memory_space<vmem>>, vector<1x384x128xbf16>
    %172 = vector.shape_cast %171 : vector<1x384x128xbf16> to vector<384x128xbf16>
    %cst_119 = arith.constant dense<0.000000e+00> : vector<128x128xf32>
    %173 = tpu.matmul %170, %172, %cst_119 {dimension_numbers = #tpu.dot_dimension_numbers<[1], [0], [0], [1], [0, 0, 1, 1], [], []>} : vector<128x384xbf16>, vector<384x128xbf16>, vector<128x128xf32> -> vector<128x128xf32>
    %c0_120 = arith.constant 0 : index
    %c0_121 = arith.constant 0 : index
    %174 = vector.load %arg18[%c0_120, %c0_121] : memref<128x128xf32, #tpu.memory_space<vmem>>, vector<128x128xf32>
    %175 = arith.addf %174, %173 : vector<128x128xf32>
    %c0_122 = arith.constant 0 : index
    %c0_123 = arith.constant 0 : index
    %176 = vector.load %arg18[%c0_122, %c0_123] : memref<128x128xf32, #tpu.memory_space<vmem>>, vector<128x128xf32>
    tpu.vector_store %arg18[%c0_122, %c0_123], %175 {strides = array<i32>} : memref<128x128xf32, #tpu.memory_space<vmem>>, vector<128x128xf32>,
    %c0_124 = arith.constant 0 : index
    %c0_125 = arith.constant 0 : index
    %c0_126 = arith.constant 0 : index
    %c0_127 = arith.constant 0 : index
    %177 = vector.load %arg1[%c0_124, %c0_125, %c0_126, %c0_127] : memref<1x8x8x64xf32, #tpu.memory_space<vmem>>, vector<1x8x8x64xf32>
    %178 = vector.shape_cast %177 : vector<1x8x8x64xf32> to vector<8x8x64xf32>
    %179 = arith.truncf %178 : vector<8x8x64xf32> to vector<8x8x64xbf16>
    %180 = vector.shape_cast %179 : vector<8x8x64xbf16> to vector<64x64xbf16>
    %c0_128 = arith.constant 0 : index
    %c0_129 = arith.constant 0 : index
    %181 = vector.load %arg13[%c0_128, %c0_129] : memref<64x128xbf16, #tpu.memory_space<vmem>>, vector<64x128xbf16>
    %cst_130 = arith.constant dense<0.000000e+00> : vector<64x128xf32>
    %182 = tpu.matmul %180, %181, %cst_130 {dimension_numbers = #tpu.dot_dimension_numbers<[1], [0], [0], [1], [0, 0, 1, 1], [], []>} : vector<64x64xbf16>, vector<64x128xbf16>, vector<64x128xf32> -> vector<64x128xf32>
    %c0_131 = arith.constant 0 : index
    %c0_132 = arith.constant 0 : index
    %183 = vector.load %arg14[%c0_131, %c0_132] : memref<1x128xf32, #tpu.memory_space<vmem>>, vector<1x128xf32>
    %184 = vector.broadcast %183 : vector<1x128xf32> to vector<64x128xf32>
    %185 = arith.addf %182, %184 : vector<64x128xf32>
    %c0_133 = arith.constant 0 : index
    %c0_134 = arith.constant 0 : index
    %186 = vector.load %arg18[%c0_133, %c0_134] : memref<128x128xf32, #tpu.memory_space<vmem>>, vector<8x128xf32>
    %187 = vector.extract_strided_slice %185 {offsets = [0, 0], sizes = [8, 128], strides = [1, 1]} : vector<64x128xf32> to vector<8x128xf32>
    %188 = arith.addf %186, %187 : vector<8x128xf32>
    %c0_135 = arith.constant 0 : index
    %c0_136 = arith.constant 0 : index
    %c0_137 = arith.constant 0 : index
    %c0_138 = arith.constant 0 : index
    %189 = vector.load %arg15[%c0_135, %c0_136, %c0_137, %c0_138] : memref<1x8x8x128xf32, #tpu.memory_space<vmem>>, vector<1x1x8x128xf32>
    %190 = vector.shape_cast %189 : vector<1x1x8x128xf32> to vector<8x128xf32>
    %191 = vector.shape_cast %188 : vector<8x128xf32> to vector<1x1x8x128xf32>
    tpu.vector_store %arg15[%c0_135, %c0_136, %c0_137, %c0_138], %191 {strides = array<i32>} : memref<1x8x8x128xf32, #tpu.memory_space<vmem>>, vector<1x1x8x128xf32>,
    %c16 = arith.constant 16 : index
    %c0_139 = arith.constant 0 : index
    %192 = vector.load %arg18[%c16, %c0_139] : memref<128x128xf32, #tpu.memory_space<vmem>>, vector<8x128xf32>
    %193 = vector.extract_strided_slice %185 {offsets = [8, 0], sizes = [8, 128], strides = [1, 1]} : vector<64x128xf32> to vector<8x128xf32>
    %194 = arith.addf %192, %193 : vector<8x128xf32>
    %c0_140 = arith.constant 0 : index
    %c1_141 = arith.constant 1 : index
    %c0_142 = arith.constant 0 : index
    %c0_143 = arith.constant 0 : index
    %195 = vector.load %arg15[%c0_140, %c1_141, %c0_142, %c0_143] : memref<1x8x8x128xf32, #tpu.memory_space<vmem>>, vector<1x1x8x128xf32>
    %196 = vector.shape_cast %195 : vector<1x1x8x128xf32> to vector<8x128xf32>
    %197 = vector.shape_cast %194 : vector<8x128xf32> to vector<1x1x8x128xf32>
    tpu.vector_store %arg15[%c0_140, %c1_141, %c0_142, %c0_143], %197 {strides = array<i32>} : memref<1x8x8x128xf32, #tpu.memory_space<vmem>>, vector<1x1x8x128xf32>,
    %c32 = arith.constant 32 : index
    %c0_144 = arith.constant 0 : index
    %198 = vector.load %arg18[%c32, %c0_144] : memref<128x128xf32, #tpu.memory_space<vmem>>, vector<8x128xf32>
    %199 = vector.extract_strided_slice %185 {offsets = [16, 0], sizes = [8, 128], strides = [1, 1]} : vector<64x128xf32> to vector<8x128xf32>
    %200 = arith.addf %198, %199 : vector<8x128xf32>
    %c0_145 = arith.constant 0 : index
    %c2_146 = arith.constant 2 : index
    %c0_147 = arith.constant 0 : index
    %c0_148 = arith.constant 0 : index
    %201 = vector.load %arg15[%c0_145, %c2_146, %c0_147, %c0_148] : memref<1x8x8x128xf32, #tpu.memory_space<vmem>>, vector<1x1x8x128xf32>
    %202 = vector.shape_cast %201 : vector<1x1x8x128xf32> to vector<8x128xf32>
    %203 = vector.shape_cast %200 : vector<8x128xf32> to vector<1x1x8x128xf32>
    tpu.vector_store %arg15[%c0_145, %c2_146, %c0_147, %c0_148], %203 {strides = array<i32>} : memref<1x8x8x128xf32, #tpu.memory_space<vmem>>, vector<1x1x8x128xf32>,
    %c48 = arith.constant 48 : index
    %c0_149 = arith.constant 0 : index
    %204 = vector.load %arg18[%c48, %c0_149] : memref<128x128xf32, #tpu.memory_space<vmem>>, vector<8x128xf32>
    %205 = vector.extract_strided_slice %185 {offsets = [24, 0], sizes = [8, 128], strides = [1, 1]} : vector<64x128xf32> to vector<8x128xf32>
    %206 = arith.addf %204, %205 : vector<8x128xf32>
    %c0_150 = arith.constant 0 : index
    %c3 = arith.constant 3 : index
    %c0_151 = arith.constant 0 : index
    %c0_152 = arith.constant 0 : index
    %207 = vector.load %arg15[%c0_150, %c3, %c0_151, %c0_152] : memref<1x8x8x128xf32, #tpu.memory_space<vmem>>, vector<1x1x8x128xf32>
    %208 = vector.shape_cast %207 : vector<1x1x8x128xf32> to vector<8x128xf32>
    %209 = vector.shape_cast %206 : vector<8x128xf32> to vector<1x1x8x128xf32>
    tpu.vector_store %arg15[%c0_150, %c3, %c0_151, %c0_152], %209 {strides = array<i32>} : memref<1x8x8x128xf32, #tpu.memory_space<vmem>>, vector<1x1x8x128xf32>,
    %c64 = arith.constant 64 : index
    %c0_153 = arith.constant 0 : index
    %210 = vector.load %arg18[%c64, %c0_153] : memref<128x128xf32, #tpu.memory_space<vmem>>, vector<8x128xf32>
    %211 = vector.extract_strided_slice %185 {offsets = [32, 0], sizes = [8, 128], strides = [1, 1]} : vector<64x128xf32> to vector<8x128xf32>
    %212 = arith.addf %210, %211 : vector<8x128xf32>
    %c0_154 = arith.constant 0 : index
    %c4 = arith.constant 4 : index
    %c0_155 = arith.constant 0 : index
    %c0_156 = arith.constant 0 : index
    %213 = vector.load %arg15[%c0_154, %c4, %c0_155, %c0_156] : memref<1x8x8x128xf32, #tpu.memory_space<vmem>>, vector<1x1x8x128xf32>
    %214 = vector.shape_cast %213 : vector<1x1x8x128xf32> to vector<8x128xf32>
    %215 = vector.shape_cast %212 : vector<8x128xf32> to vector<1x1x8x128xf32>
    tpu.vector_store %arg15[%c0_154, %c4, %c0_155, %c0_156], %215 {strides = array<i32>} : memref<1x8x8x128xf32, #tpu.memory_space<vmem>>, vector<1x1x8x128xf32>,
    %c80 = arith.constant 80 : index
    %c0_157 = arith.constant 0 : index
    %216 = vector.load %arg18[%c80, %c0_157] : memref<128x128xf32, #tpu.memory_space<vmem>>, vector<8x128xf32>
    %217 = vector.extract_strided_slice %185 {offsets = [40, 0], sizes = [8, 128], strides = [1, 1]} : vector<64x128xf32> to vector<8x128xf32>
    %218 = arith.addf %216, %217 : vector<8x128xf32>
    %c0_158 = arith.constant 0 : index
    %c5 = arith.constant 5 : index
    %c0_159 = arith.constant 0 : index
    %c0_160 = arith.constant 0 : index
    %219 = vector.load %arg15[%c0_158, %c5, %c0_159, %c0_160] : memref<1x8x8x128xf32, #tpu.memory_space<vmem>>, vector<1x1x8x128xf32>
    %220 = vector.shape_cast %219 : vector<1x1x8x128xf32> to vector<8x128xf32>
    %221 = vector.shape_cast %218 : vector<8x128xf32> to vector<1x1x8x128xf32>
    tpu.vector_store %arg15[%c0_158, %c5, %c0_159, %c0_160], %221 {strides = array<i32>} : memref<1x8x8x128xf32, #tpu.memory_space<vmem>>, vector<1x1x8x128xf32>,
    %c96 = arith.constant 96 : index
    %c0_161 = arith.constant 0 : index
    %222 = vector.load %arg18[%c96, %c0_161] : memref<128x128xf32, #tpu.memory_space<vmem>>, vector<8x128xf32>
    %223 = vector.extract_strided_slice %185 {offsets = [48, 0], sizes = [8, 128], strides = [1, 1]} : vector<64x128xf32> to vector<8x128xf32>
    %224 = arith.addf %222, %223 : vector<8x128xf32>
    %c0_162 = arith.constant 0 : index
    %c6 = arith.constant 6 : index
    %c0_163 = arith.constant 0 : index
    %c0_164 = arith.constant 0 : index
    %225 = vector.load %arg15[%c0_162, %c6, %c0_163, %c0_164] : memref<1x8x8x128xf32, #tpu.memory_space<vmem>>, vector<1x1x8x128xf32>
    %226 = vector.shape_cast %225 : vector<1x1x8x128xf32> to vector<8x128xf32>
    %227 = vector.shape_cast %224 : vector<8x128xf32> to vector<1x1x8x128xf32>
    tpu.vector_store %arg15[%c0_162, %c6, %c0_163, %c0_164], %227 {strides = array<i32>} : memref<1x8x8x128xf32, #tpu.memory_space<vmem>>, vector<1x1x8x128xf32>,
    %c112 = arith.constant 112 : index
    %c0_165 = arith.constant 0 : index
    %228 = vector.load %arg18[%c112, %c0_165] : memref<128x128xf32, #tpu.memory_space<vmem>>, vector<8x128xf32>
    %229 = vector.extract_strided_slice %185 {offsets = [56, 0], sizes = [8, 128], strides = [1, 1]} : vector<64x128xf32> to vector<8x128xf32>
    %230 = arith.addf %228, %229 : vector<8x128xf32>
    %c0_166 = arith.constant 0 : index
    %c7_167 = arith.constant 7 : index
    %c0_168 = arith.constant 0 : index
    %c0_169 = arith.constant 0 : index
    %231 = vector.load %arg15[%c0_166, %c7_167, %c0_168, %c0_169] : memref<1x8x8x128xf32, #tpu.memory_space<vmem>>, vector<1x1x8x128xf32>
    %232 = vector.shape_cast %231 : vector<1x1x8x128xf32> to vector<8x128xf32>
    %233 = vector.shape_cast %230 : vector<8x128xf32> to vector<1x1x8x128xf32>
    tpu.vector_store %arg15[%c0_166, %c7_167, %c0_168, %c0_169], %233 {strides = array<i32>} : memref<1x8x8x128xf32, #tpu.memory_space<vmem>>, vector<1x1x8x128xf32>,
    return
  }
  func.func @transform_0(%arg0: i32) -> (i32, i32, i32, i32) {
    %c0_i32 = arith.constant 0 : i32
    %c0_i32_0 = arith.constant 0 : i32
    %c0_i32_1 = arith.constant 0 : i32
    %c0_i32_2 = arith.constant 0 : i32
    return %arg0, %c0_i32, %c0_i32_0, %c0_i32_1 : i32, i32, i32, i32
  }
  func.func @transform_1(%arg0: i32) -> (i32, i32) {
    %c0_i32 = arith.constant 0 : i32
    %c0_i32_0 = arith.constant 0 : i32
    %c0_i32_1 = arith.constant 0 : i32
    return %c0_i32, %c0_i32_0 : i32, i32
  }
  func.func @transform_2(%arg0: i32) -> (i32, i32) {
    %c0_i32 = arith.constant 0 : i32
    %c0_i32_0 = arith.constant 0 : i32
    %c0_i32_1 = arith.constant 0 : i32
    return %c0_i32, %c0_i32_0 : i32, i32
  }
  func.func @transform_3(%arg0: i32) -> (i32, i32) {
    %c0_i32 = arith.constant 0 : i32
    %c0_i32_0 = arith.constant 0 : i32
    %c0_i32_1 = arith.constant 0 : i32
    return %c0_i32, %c0_i32_0 : i32, i32
  }
  func.func @transform_4(%arg0: i32) -> (i32, i32) {
    %c0_i32 = arith.constant 0 : i32
    %c0_i32_0 = arith.constant 0 : i32
    %c0_i32_1 = arith.constant 0 : i32
    return %c0_i32, %c0_i32_0 : i32, i32
  }
  func.func @transform_5(%arg0: i32) -> (i32, i32, i32) {
    %c0_i32 = arith.constant 0 : i32
    %c0_i32_0 = arith.constant 0 : i32
    %c0_i32_1 = arith.constant 0 : i32
    %c0_i32_2 = arith.constant 0 : i32
    return %c0_i32, %c0_i32_0, %c0_i32_1 : i32, i32, i32
  }
  func.func @transform_6(%arg0: i32) -> (i32, i32) {
    %c0_i32 = arith.constant 0 : i32
    %c0_i32_0 = arith.constant 0 : i32
    %c0_i32_1 = arith.constant 0 : i32
    return %c0_i32, %c0_i32_0 : i32, i32
  }
  func.func @transform_7(%arg0: i32) -> (i32, i32) {
    %c0_i32 = arith.constant 0 : i32
    %c0_i32_0 = arith.constant 0 : i32
    %c0_i32_1 = arith.constant 0 : i32
    return %c0_i32, %c0_i32_0 : i32, i32
  }
  func.func @transform_8(%arg0: i32) -> (i32, i32) {
    %c0_i32 = arith.constant 0 : i32
    %c0_i32_0 = arith.constant 0 : i32
    %c0_i32_1 = arith.constant 0 : i32
    return %c0_i32, %c0_i32_0 : i32, i32
  }
  func.func @transform_9(%arg0: i32) -> (i32, i32) {
    %c0_i32 = arith.constant 0 : i32
    %c0_i32_0 = arith.constant 0 : i32
    %c0_i32_1 = arith.constant 0 : i32
    return %c0_i32, %c0_i32_0 : i32, i32
  }
  func.func @transform_10(%arg0: i32) -> (i32, i32, i32) {
    %c0_i32 = arith.constant 0 : i32
    %c0_i32_0 = arith.constant 0 : i32
    %c0_i32_1 = arith.constant 0 : i32
    %c0_i32_2 = arith.constant 0 : i32
    return %c0_i32, %c0_i32_0, %c0_i32_1 : i32, i32, i32
  }
  func.func @transform_11(%arg0: i32) -> (i32, i32) {
    %c0_i32 = arith.constant 0 : i32
    %c0_i32_0 = arith.constant 0 : i32
    %c0_i32_1 = arith.constant 0 : i32
    return %c0_i32, %c0_i32_0 : i32, i32
  }
  func.func @transform_12(%arg0: i32) -> (i32, i32) {
    %c0_i32 = arith.constant 0 : i32
    %c0_i32_0 = arith.constant 0 : i32
    %c0_i32_1 = arith.constant 0 : i32
    return %c0_i32, %c0_i32_0 : i32, i32
  }
  func.func @transform_13(%arg0: i32) -> (i32, i32) {
    %c0_i32 = arith.constant 0 : i32
    %c0_i32_0 = arith.constant 0 : i32
    %c0_i32_1 = arith.constant 0 : i32
    return %c0_i32, %c0_i32_0 : i32, i32
  }
  func.func @transform_14(%arg0: i32) -> (i32, i32, i32, i32) {
    %c0_i32 = arith.constant 0 : i32
    %c0_i32_0 = arith.constant 0 : i32
    %c0_i32_1 = arith.constant 0 : i32
    %c0_i32_2 = arith.constant 0 : i32
    return %arg0, %c0_i32, %c0_i32_0, %c0_i32_1 : i32, i32, i32, i32
  }
}

</mosaic_0001>

<bundles_post_ra>
// kernel: tpu_custom_call.1
= control target key start
LH: loop header
LB: loop body
LE: loop exit
PB: predicated region body
PF: predicated region fallthrough
CT: control target
= control target key end

     0   :  { %s9259_s0 = inlined_call_operand.vmem [shape: f32[2,8,8,64], index: 0, kind: input, shape index: {}]   ;;  %s9260_s1 = inlined_call_operand.vmem [shape: f32[128,1], index: 1, kind: input, shape index: {}]   ;;  %s9261_s2 = inlined_call_operand.hbm [shape: f32[64,64], index: 2, kind: input, shape index: {}]   ;;  %s9262_s3 = inlined_call_operand.vmem [shape: f32[1,64], index: 3, kind: input, shape index: {}]   ;;  %s9263_s4 = inlined_call_operand.vmem [shape: f32[1,64], index: 4, kind: input, shape index: {}]   ;;  %s9264_s5 = inlined_call_operand.hbm [shape: bf16[3,192,128], index: 5, kind: input, shape index: {}]   ;;  %s9265_s6 = inlined_call_operand.hbm [shape: f32[1,128], index: 6, kind: input, shape index: {}]   ;;  %s9266_s7 = inlined_call_operand.hbm [shape: f32[128,128], index: 7, kind: input, shape index: {}]   ;;  %s9267_s8 = inlined_call_operand.hbm [shape: f32[1,128], index: 8, kind: input, shape index: {}]   ;;  %s9268_s9 = inlined_call_operand.hbm [shape: f32[1,128], index: 9, kind: input, shape index: {}]   ;;  %s9269_s10 = inlined_call_operand.hbm [shape: bf16[3,384,128], index: 10, kind: input, shape index: {}]   ;;  %s9270_s11 = inlined_call_operand.vmem [shape: f32[1,128], index: 11, kind: input, shape index: {}]   ;;  %s9271_s12 = inlined_call_operand.vmem [shape: bf16[64,128], index: 12, kind: input, shape index: {}]   ;;  %s9272_s13 = inlined_call_operand.vmem [shape: f32[1,128], index: 13, kind: input, shape index: {}]   ;;  %s9273_s14 = inlined_call_operand.hbm [shape: f32[2,8,8,128], index: 14, kind: output, shape index: {}]  }
   0x1   :  { %9302 = sst [smem:[#allocation32_spill]] %s9270_s11 }
   0x2   :  { %9303 = sst [smem:[#allocation33_spill]] %s9271_s12 }
   0x3   :  { %9304 = sst [smem:[#allocation34_spill]] %s9272_s13 }
   0x4   :  { %9305 = sst [smem:[#allocation35_spill]] %s9273_s14 }
   0x5   :  { %19 = vsyncpa [#allocation6], 0 }
   0x6   :  { %20 = vsyncpa [#allocation9], 0 }
   0x7   :  { %21 = vsyncpa [#allocation12], 0 }
   0x8   :  { %22 = vsyncpa [#allocation15], 0 }
   0x9   :  { %23 = vsyncpa [#allocation7], 0 }
   0xa   :  { %25 = vsyncpa [#allocation7 + $0x1], 0  ;;  %s7452_s29 = smov 0   ;;  %s7454_s30 = smov 0  }
   0xb   :  { %s7456_s15 = smov 0   ;;  %s7458_s16 = smov 0  }
   0xc LB: > { %9306 = sst [smem:[#allocation23_spill]] %s7343_s29  ;;  %s7473_s17 = sadd.s32 4294967295, %s7355_s16   ;;  %s7355_s16 = sphi %s7458_s16, %s9357_s16   ;;  %s7351_s15 = sphi %s7456_s15, %s9359_s15   ;;  %s7347_s30 = sphi %s7454_s30, %s9361_s30   ;;  %s7343_s29 = sphi %s7452_s29, %s9360_s29  }
   0xd   : > { %9307 = sst [smem:[#allocation24_spill]] %s7351_s15  ;;  %s5802_s18 = sadd.s32 4294967294, %s7355_s16  }
   0xe   : > { %9308 = sst [smem:[#allocation25_spill]] %s7355_s16  ;;  %s7477_s19 = sadd.s32 1, %s7355_s16  }
   0xf   : > { %9309 = sst [smem:[#allocation26_spill]] %s7477_s19  ;;  %s337_s20 = sadd.s32 1, %s7351_s15 }
  0x10   : > { %s334_s21 = ssub.s32 %s7355_s16, %s7477_s19  ;;  %p347_p0 = scmp.ne.s32.totalorder %s7351_s15, %s7347_s30 }
  0x11   : > { %p335_p1 = scmp.eq.s32.totalorder %s334_s21, 0  ;;  %p348_p2 = scmp.eq.s32.totalorder %s7473_s17, 1 }
  0x12   : > { %p353_p3 = scmp.ne.s32.totalorder %s7347_s30, %s7343_s29  ;;  %p354_p4 = scmp.eq.s32.totalorder %s5802_s18, 1 }
  0x13   : > { %s7488_s22 = scalar_select %p335_p1, %s7351_s15, %s337_s20  }
  0x14   : > { %p7490_p5 = por %p348_p2, %p347_p0  ;;  %p7494_p6 = por %p354_p4, %p353_p3 }
  0x15   : > { %9310 = sst [smem:[#allocation27_spill]] %s7488_s22  ;;  %p5803_p7 = scmp.ge.s32.totalorder %s7355_s16, 1 }
  0x16   : > { %s9311_s23 = scalar_select %p7490_p5, 1, 0 }
  0x17   : > { %s9313_s24 = scalar_select %p7494_p6, 1, 0 }
  0x18   : > { %9312 = sst [smem:[#allocation28_spill]] %s9311_s23  ;;  %p361_p8 = scmp.lt.s32.totalorder %s7355_s16, 3 }
  0x19   : > { %9314 = sst [smem:[#allocation29_spill]] %s9313_s24  ;;  %p9280_p10 = scmp.eq.s32.totalorder %s7473_s17, 0 }
  0x1a   : > { %p7502_p11 = pnand %p5803_p7, %p361_p8  ;;  %s7357_s26 = smov [#allocation8]  }
  0x1b   : > { %s395_s27 = sshll.u32 %s7357_s26, 4  ;;  %s7358_s18 = smov [#allocation11]   ;;  %s396_s27 = int_to_ptr.vmem [resolvable:$true] %s395_s27 }
  0x1c   : > { %s9315_s25 = scalar_select %p7502_p11, 1, 0 }
  0x1d   : > { %p6773_p12 = pneg %p7502_p11  ;;  %s419_s20 = sshll.u32 %s7358_s18, 4  ;;  %s420_s20 = int_to_ptr.vmem [resolvable:$true] %s419_s20 }
  0x1e   : > { %s7081_s15 = scalar_lea.hbm %s9264_s5, 4608 }
  0x1f   : > { %p7510_p13 = pnand %p9280_p10, %p6773_p12  ;;  %p7082_p0 = scmp.ne.s32.totalorder %s9264_s5, %s7081_s15 }
  0x20   : > { %p7088_p4 = scmp.lt.u32.totalorder %s7081_s15, %s9264_s5 }
  0x21   : > { %p7522_p1 = pneg %p7510_p13 }
  0x23   : > { %p7084_p2 = pnand %p7522_p1, %p7082_p0 }
  0x25   : > { %p7085_p3 = pneg %p7084_p2 }
  0x27   : > { %p7090_p7 = pnand %p7088_p4, %p7085_p3 }
  0x29   : > { %7093 = shalt.err (!%p7090_p7)
}
  0x2a   : > { %s7094_s22 = scalar_lea.vmem %s396_s27, 4608  ;;  %p7102_p10 = scmp.lt.s32.totalorder %s396_s27, %s396_s27 }
  0x2b   : > { %p7095_p8 = scmp.ne.s32.totalorder %s396_s27, %s7094_s22  ;;  %p7103_p6 = scmp.lt.s32.totalorder %s7094_s22, %s7094_s22 }
  0x2d   : > { %p7097_p12 = pnand %p7095_p8, %p7522_p1  ;;  %p7104_p5 = por %p7103_p6, %p7102_p10 }
  0x2f   : > { %p7098_p9 = pneg %p7097_p12 }
  0x31   : > { %p7105_p11 = pnand %p7104_p5, %p7098_p9 }
  0x33   : > { %7108 = shalt.err (!%p7105_p11)
}
  0x34   : > { %s9287_s19 = smov 64   ;;  %s9288_s24 = smov 4  }
  0x35   : > { %6779 = dma.hbm_to_vmem [thread:$0]  (!%p7510_p13), %s9264_s5, 4608, %s396_s27, [#allocation9], %s9287_s19, %s9287_s19, %s9288_s24  }
  0x36   : > { %s7361_s16 = smov [#allocation14]   ;;  %s7109_s14 = scalar_lea.hbm %s9266_s7, 2048 }
  0x37   : > { %s444_s18 = sshll.u32 %s7361_s16, 4  ;;  %p7110_p5 = scmp.ne.s32.totalorder %s9266_s7, %s7109_s14  ;;  %s445_s18 = int_to_ptr.vmem [resolvable:$true] %s444_s18 }
  0x38   : > { %p7116_p10 = scmp.lt.u32.totalorder %s7109_s14, %s9266_s7 }
  0x39   : > { %p7112_p6 = pnand %p7110_p5, %p7522_p1 }
  0x3b   : > { %p7113_p9 = pneg %p7112_p6 }
  0x3d   : > { %p7118_p11 = pnand %p7116_p10, %p7113_p9 }
  0x3f   : > { %7121 = shalt.err (!%p7118_p11)
}
  0x40   : > { %s7122_s27 = scalar_lea.vmem %s420_s20, 2048  ;;  %p7130_p4 = scmp.lt.s32.totalorder %s420_s20, %s420_s20 }
  0x41   : > { %p7123_p0 = scmp.ne.s32.totalorder %s420_s20, %s7122_s27  ;;  %p7131_p7 = scmp.lt.s32.totalorder %s7122_s27, %s7122_s27 }
  0x43   : > { %p7125_p2 = pnand %p7123_p0, %p7522_p1  ;;  %p7132_p8 = por %p7131_p7, %p7130_p4 }
  0x45   : > { %p7126_p3 = pneg %p7125_p2 }
  0x47   : > { %p7133_p12 = pnand %p7132_p8, %p7126_p3 }
  0x49   : > { %7136 = shalt.err (!%p7133_p12)
}
  0x4a   : > { %s7362_s13 = smov 128   ;;  %s7363_s23 = smov 8  }
  0x4b   : > { %6785 = dma.hbm_to_vmem [thread:$0]  (!%p7510_p13), %s9266_s7, 2048, %s420_s20, [#allocation12], %s7362_s13, %s7362_s13, %s7363_s23  }
  0x4c   : > { %s7137_s15 = scalar_lea.hbm %s9268_s9, 16 }
  0x4d   : > { %p7138_p5 = scmp.ne.s32.totalorder %s9268_s9, %s7137_s15  ;;  %p7144_p10 = scmp.lt.u32.totalorder %s7137_s15, %s9268_s9 }
  0x4f   : > { %p7140_p6 = pnand %p7138_p5, %p7522_p1 }
  0x51   : > { %p7141_p9 = pneg %p7140_p6 }
  0x53   : > { %p7146_p11 = pnand %p7144_p10, %p7141_p9 }
  0x55   : > { %7149 = shalt.err (!%p7146_p11)
}
  0x56   : > { %s7150_s11 = scalar_lea.vmem %s445_s18, 16  ;;  %s7157_s20 = scalar_lea.vmem %s445_s18, 32 }
  0x57   : > { %p7151_p0 = scmp.ne.s32.totalorder %s445_s18, %s7150_s11  ;;  %p7158_p4 = scmp.lt.s32.totalorder %s445_s18, %s445_s18 }
  0x58   : > { %p7159_p7 = scmp.lt.s32.totalorder %s7157_s20, %s7150_s11 }
  0x59   : > { %p7153_p2 = pnand %p7151_p0, %p7522_p1 }
  0x5a   : > { %p7160_p8 = por %p7159_p7, %p7158_p4 }
  0x5b   : > { %p7154_p3 = pneg %p7153_p2 }
  0x5d   : > { %p7161_p12 = pnand %p7160_p8, %p7154_p3 }
  0x5f   : > { %7164 = shalt.err (!%p7161_p12)
}
  0x60   : > { %6791 = dma.hbm_to_vmem [thread:$0]  (!%p7510_p13), %s9268_s9, 16, %s445_s18, [#allocation15]  }
  0x61   : > { %s7364_s29 = smov [#allocation5]   ;;  %s7365_s16 = smov [#allocation10]  }
  0x62   : > { %s376_s15 = sshll.u32 %s7364_s29, 4  ;;  %s409_s21 = sshll.u32 %s7365_s16, 4  ;;  %s377_s15 = int_to_ptr.vmem [resolvable:$true] %s376_s15  ;;  %s410_s21 = int_to_ptr.vmem [resolvable:$true] %s409_s21 }
  0x63   : > { %s7165_s19 = scalar_lea.hbm %s9261_s2, 1024 }
  0x64   : > { %p7166_p5 = scmp.ne.s32.totalorder %s9261_s2, %s7165_s19  ;;  %p7172_p10 = scmp.lt.u32.totalorder %s7165_s19, %s9261_s2 }
  0x66   : > { %p7168_p6 = pnand %p7166_p5, %p7522_p1 }
  0x68   : > { %p7169_p9 = pneg %p7168_p6 }
  0x6a   : > { %p7174_p11 = pnand %p7172_p10, %p7169_p9 }
  0x6c   : > { %7177 = shalt.err (!%p7174_p11)
}
  0x6d   : > { %s7178_s18 = scalar_lea.vmem %s377_s15, 1024  ;;  %p7186_p4 = scmp.lt.s32.totalorder %s377_s15, %s377_s15 }
  0x6e   : > { %p7179_p0 = scmp.ne.s32.totalorder %s377_s15, %s7178_s18  ;;  %p7187_p7 = scmp.lt.s32.totalorder %s7178_s18, %s7178_s18 }
  0x70   : > { %p7181_p2 = pnand %p7179_p0, %p7522_p1  ;;  %p7188_p8 = por %p7187_p7, %p7186_p4 }
  0x72   : > { %p7182_p3 = pneg %p7181_p2 }
  0x74   : > { %p7189_p12 = pnand %p7188_p8, %p7182_p3 }
  0x76   : > { %7192 = shalt.err (!%p7189_p12)
}
  0x77   : > { %6776 = dma.hbm_to_vmem [thread:$0]  (!%p7510_p13), %s9261_s2, 1024, %s377_s15, [#allocation6], %s7362_s13, %s7362_s13, %s7363_s23  }
  0x78   : > { %s7193_s16 = scalar_lea.hbm %s9265_s6, 16 }
  0x79   : > { %p7194_p5 = scmp.ne.s32.totalorder %s9265_s6, %s7193_s16  ;;  %p7200_p10 = scmp.lt.u32.totalorder %s7193_s16, %s9265_s6 }
  0x7b   : > { %p7196_p6 = pnand %p7194_p5, %p7522_p1 }
  0x7d   : > { %p7197_p9 = pneg %p7196_p6 }
  0x7f   : > { %p7202_p11 = pnand %p7200_p10, %p7197_p9 }
  0x81   : > { %7205 = shalt.err (!%p7202_p11)
}
  0x82   : > { %s7206_s12 = scalar_lea.vmem %s410_s21, 16  ;;  %s7213_s13 = scalar_lea.vmem %s410_s21, 32 }
  0x83   : > { %p7207_p0 = scmp.ne.s32.totalorder %s410_s21, %s7206_s12  ;;  %p7214_p4 = scmp.lt.s32.totalorder %s410_s21, %s410_s21 }
  0x84   : > { %p7215_p7 = scmp.lt.s32.totalorder %s7213_s13, %s7206_s12 }
  0x85   : > { %p7209_p2 = pnand %p7207_p0, %p7522_p1 }
  0x86   : > { %p7216_p8 = por %p7215_p7, %p7214_p4 }
  0x87   : > { %p7210_p3 = pneg %p7209_p2 }
  0x89   : > { %p7217_p12 = pnand %p7216_p8, %p7210_p3 }
  0x8b   : > { %7220 = shalt.err (!%p7217_p12)
}
  0x8c   : > { %6782 = dma.hbm_to_vmem [thread:$0]  (!%p7510_p13), %s9265_s6, 16, %s410_s21, [#allocation9]  }
  0x8d   : > { %s7366_s18 = smov [#allocation13]   ;;  %s7367_s19 = smov [#allocation16]  }
  0x8e   : > { %s433_s24 = sshll.u32 %s7366_s18, 4  ;;  %s454_s14 = sshll.u32 %s7367_s19, 4  ;;  %s434_s24 = int_to_ptr.vmem [resolvable:$true] %s433_s24  ;;  %s455_s14 = int_to_ptr.vmem [resolvable:$true] %s454_s14 }
  0x8f   : > { %s7221_s22 = scalar_lea.hbm %s9267_s8, 16 }
  0x90   : > { %p7222_p5 = scmp.ne.s32.totalorder %s9267_s8, %s7221_s22  ;;  %p7228_p10 = scmp.lt.u32.totalorder %s7221_s22, %s9267_s8 }
  0x92   : > { %p7224_p6 = pnand %p7222_p5, %p7522_p1 }
  0x94   : > { %p7225_p9 = pneg %p7224_p6 }
  0x96   : > { %p7230_p11 = pnand %p7228_p10, %p7225_p9 }
  0x98   : > { %7233 = shalt.err (!%p7230_p11)
}
  0x99   : > { %s7234_s21 = scalar_lea.vmem %s434_s24, 16  ;;  %s7241_s13 = scalar_lea.vmem %s434_s24, 32 }
  0x9a   : > { %p7235_p0 = scmp.ne.s32.totalorder %s434_s24, %s7234_s21  ;;  %p7242_p4 = scmp.lt.s32.totalorder %s434_s24, %s434_s24 }
  0x9b   : > { %p7243_p7 = scmp.lt.s32.totalorder %s7241_s13, %s7234_s21 }
  0x9c   : > { %p7237_p2 = pnand %p7235_p0, %p7522_p1 }
  0x9d   : > { %p7244_p8 = por %p7243_p7, %p7242_p4 }
  0x9e   : > { %p7238_p3 = pneg %p7237_p2 }
  0xa0   : > { %p7245_p12 = pnand %p7244_p8, %p7238_p3 }
  0xa2   : > { %7248 = shalt.err (!%p7245_p12)
}
  0xa3   : > { %6788 = dma.hbm_to_vmem [thread:$0]  (!%p7510_p13), %s9267_s8, 16, %s434_s24, [#allocation12]  }
  0xa4   : > { %s7249_s29 = scalar_lea.hbm %s9269_s10, 9216 }
  0xa5   : > { %p7250_p5 = scmp.ne.s32.totalorder %s9269_s10, %s7249_s29  ;;  %p7256_p10 = scmp.lt.u32.totalorder %s7249_s29, %s9269_s10 }
  0xa7   : > { %p7252_p6 = pnand %p7250_p5, %p7522_p1 }
  0xa9   : > { %p7253_p9 = pneg %p7252_p6 }
  0xab   : > { %p7258_p11 = pnand %p7256_p10, %p7253_p9 }
  0xad   : > { %7261 = shalt.err (!%p7258_p11)
}
  0xae   : > { %s7262_s20 = scalar_lea.vmem %s455_s14, 9216  ;;  %p7270_p4 = scmp.lt.s32.totalorder %s455_s14, %s455_s14 }
  0xaf   : > { %p7263_p0 = scmp.ne.s32.totalorder %s455_s14, %s7262_s20  ;;  %p7271_p7 = scmp.lt.s32.totalorder %s7262_s20, %s7262_s20 }
  0xb1   : > { %p7265_p2 = pnand %p7263_p0, %p7522_p1  ;;  %p7272_p8 = por %p7271_p7, %p7270_p4 }
  0xb3   : > { %p7266_p3 = pneg %p7265_p2 }
  0xb5   : > { %p7273_p12 = pnand %p7272_p8, %p7266_p3 }
  0xb7   : > { %7276 = shalt.err (!%p7273_p12)
}
  0xb8   : > { %s9318_s24 = smov 4   ;;  %s9319_s12 = smov 64  }
  0xb9   : > { %6794 = dma.hbm_to_vmem [thread:$0]  (!%p7510_p13), %s9269_s10, 9216, %s455_s14, [#allocation15], %s9319_s12, %s9319_s12, %s9318_s24  }
  0xba   : > { %p9320_p5 = scmp.ne.s32.totalorder %s9315_s25, 0 }
  0xbc   : > { %487 = sbr.rel (%p9320_p5) target bundleno = 1861 (0x745), region = 76 }
  0xc3   : > { %p9321_p1 = scmp.eq.s32.totalorder %s7473_s17, 0 }
  0xc5   : > { %7322 = dma.done.wait (%p9321_p1), [#allocation6], 1024   ;;  %p9322_p6 = pmov %p9321_p1 }
  0xc6   : > { %p9323_p9 = pmov %p9321_p1 }
  0xc7   : > { %7324 = vsyncadd (%p9322_p6), [#allocation6], 4294966272 }
  0xc8   : > { %7326 = dma.done.wait (%p9323_p9), [#allocation9], 4624   ;;  %p9324_p10 = pmov %p9321_p1 }
  0xc9   : > { %p9325_p11 = pmov %p9321_p1 }
  0xca   : > { %7328 = vsyncadd (%p9324_p10), [#allocation9], 4294962672 }
  0xcb   : > { %7330 = dma.done.wait (%p9325_p11), [#allocation12], 2064   ;;  %p9326_p13 = pmov %p9321_p1 }
  0xcc   : > { %p9327_p0 = pmov %p9321_p1 }
  0xcd   : > { %7332 = vsyncadd (%p9326_p13), [#allocation12], 4294965232 }
  0xce   : > { %7334 = dma.done.wait (%p9327_p0), [#allocation15], 9232   ;;  %p9328_p2 = pmov %p9327_p0 }
  0xcf   : > { %s554_s25 = sand.u32 1, %s7347_s30   ;;  %p557_p3 = scmp.lt.s32.totalorder %s7473_s17, 1 }
  0xd0   : > { %7336 = vsyncadd (%p9328_p2), [#allocation15], 4294958064  ;;  %s5820_s28 = sshll.u32 %s554_s25, 6  ;;  %p9329_p4 = scmp.ne.s32.totalorder %s7473_s17, 0 }
  0xd1   : > { %s558_s26 = scalar_select %p557_p3, %s7473_s17, 1 }
  0xd2   : > { %s7686_s19 = scalar_lea.vmem [#allocation17], %s5820_s28  ;;  %566 = sbr.rel (%p9329_p4) target bundleno = 221 (0xdd), region = 108  ;;  %vm567_vm0 = vcmask (!%p9329_p4), 523264   ;;  %v7368_v0 = vmov (!%p9329_p4), 0  }
  0xd3   : > { %s6009_s14 = sshll.u32 %s558_s26, 6  ;;  %568 = vst.msk [vmem:[#allocation2] sm:$0xff] (!%p9329_p4), %vm567_vm0, %v7368_v0  ;;  %569 = vst.msk [vmem:[#allocation2 + $0x8] sm:$0xff] (!%p9329_p4), %vm567_vm0, %v7368_v0 }
  0xd4   : > { %s7684_s18 = scalar_lea.vmem %s9259_s0, %s6009_s14  ;;  %570 = vst.msk [vmem:[#allocation2 + $0x10] sm:$0xff] (!%p9329_p4), %vm567_vm0, %v7368_v0  ;;  %571 = vst.msk [vmem:[#allocation2 + $0x18] sm:$0xff] (!%p9329_p4), %vm567_vm0, %v7368_v0 }
  0xd5   : > { %572 = vst.msk [vmem:[#allocation2 + $0x20] sm:$0xff] (!%p9329_p4), %vm567_vm0, %v7368_v0  ;;  %573 = vst.msk [vmem:[#allocation2 + $0x28] sm:$0xff] (!%p9329_p4), %vm567_vm0, %v7368_v0 }
  0xd6   : > { %574 = vst.msk [vmem:[#allocation2 + $0x30] sm:$0xff] (!%p9329_p4), %vm567_vm0, %v7368_v0  ;;  %575 = vst.msk [vmem:[#allocation2 + $0x38] sm:$0xff] (!%p9329_p4), %vm567_vm0, %v7368_v0 }
  0xd7   : > { %576 = vst.msk [vmem:[#allocation2 + $0x40] sm:$0xff] (!%p9329_p4), %vm567_vm0, %v7368_v0  ;;  %577 = vst.msk [vmem:[#allocation2 + $0x48] sm:$0xff] (!%p9329_p4), %vm567_vm0, %v7368_v0 }
  0xd8   : > { %578 = vst.msk [vmem:[#allocation2 + $0x50] sm:$0xff] (!%p9329_p4), %vm567_vm0, %v7368_v0  ;;  %579 = vst [vmem:[#allocation3] sm:$0xff] (!%p9329_p4), %v7368_v0 }
  0xd9   : > { %580 = vst [vmem:[#allocation3 + $0x8] sm:$0xff] %v7368_v0  ;;  %581 = vst [vmem:[#allocation3 + $0x10] sm:$0xff] %v7368_v0 }
  0xda   : > { %582 = vst [vmem:[#allocation3 + $0x18] sm:$0xff] %v7368_v0  ;;  %583 = vst [vmem:[#allocation3 + $0x20] sm:$0xff] %v7368_v0 }
  0xdb   : > { %584 = vst [vmem:[#allocation3 + $0x28] sm:$0xff] %v7368_v0  ;;  %587 = vst [vmem:[#allocation3 + $0x40] sm:$0xff] %v7368_v0 }
  0xdc   : > { %588 = vst [vmem:[#allocation3 + $0x48] sm:$0xff] %v7368_v0  ;;  %589 = vst [vmem:[#allocation3 + $0x50] sm:$0xff] %v7368_v0 }
  0xdd PF: > { %v649_v1 = vld [vmem:[#allocation5] sm:$0xff]  ;;  %v650_v2 = vld [vmem:[#allocation5 + $0x8] sm:$0xff]  ;;  %v651_v3 = vld [vmem:[#allocation5 + $0x10] sm:$0xff]  ;;  %v9289_v4 = vmov 0.0|0.0   ;;  %vm598_vm1 = vcmask 523264   ;;  %vm7370_vm2 = vmmov 0  }
  0xde   : > { %6535 = vmatprep.subr.bf16.mxu0 %v9289_v4  ;;  %v6536_v5 = vpack.c.bf16 %v650_v2, %v649_v1  ;;  %6547 = vmatprep.subr.bf16.mxu1 %v9289_v4  ;;  %v652_v6 = vld [vmem:[#allocation5 + $0x18] sm:$0xff]  ;;  %v653_v7 = vld [vmem:[#allocation5 + $0x20] sm:$0xff]  ;;  %v654_v8 = vld [vmem:[#allocation5 + $0x28] sm:$0xff]  ;;  %v9291_v9 = vmov 0.0   ;;  %vm901_vm3 = vcmask 523268   ;;  %vm1049_vm5 = vcmask 1046528  }
  0xdf   : > { %6331 = vmatprep.mubr.msk.f32.mxu0 %vm7370_vm2, %v9291_v9  ;;  %v7695_v10 = vld [vmem:[%s7684_s18] sm:$0xff]  ;;  %6350 = vmatprep.mubr.msk.f32.mxu1 %vm7370_vm2, %v9291_v9  ;;  %v6539_v11 = vpack.c.bf16 %v652_v6, %v651_v3  ;;  %v6542_v12 = vpack.c.bf16 %v654_v8, %v653_v7  ;;  %v7700_v13 = vld [vmem:[%s7684_s18 + $0x8] sm:$0xff]  ;;  %v7703_v14 = vld [vmem:[%s7684_s18 + $0x10] sm:$0xff]  ;;  %vm950_vm4 = vsmask.f32 7424  ;;  %s7373_s11 = smov 64  }
  0xe0   : > { %6537 = vmatpush3.bf16.msra.mxu0 %v6536_v5  ;;  %6549 = vmatpush3.bf16.msra.mxu1 %v6536_v5  ;;  %v7706_v15 = vld [vmem:[%s7684_s18 + $0x18] sm:$0xff]  ;;  %v599_v16 = vsel %vm598_vm1, %v7695_v10, 0.0  ;;  %v620_v17 = vmul.f32 %v7695_v10, %v7695_v10  ;;  %v7715_v18 = vld [vmem:[%s7684_s18 + $0x20] sm:$0xff]  ;;  %v7718_v19 = vld [vmem:[%s7684_s18 + $0x28] sm:$0xff]  ;;  %v600_v21 = vsel %vm598_vm1, %v7700_v13, 0.0  ;;  %v602_v22 = vsel %vm598_vm1, %v7703_v14, 0.0 }
  0xe1   : > { %6538 = vmatprep.subr.bf16.mxu0 %v9289_v4  ;;  %6550 = vmatprep.subr.bf16.mxu1 %v9289_v4  ;;  %v7721_v20 = vld [vmem:[%s7684_s18 + $0x30] sm:$0xff]  ;;  %v604_v23 = vsel %vm598_vm1, %v7706_v15, 0.0  ;;  %v621_v24 = vmul.f32 %v7700_v13, %v7700_v13  ;;  %v7732_v25 = vld [vmem:[%s7684_s18 + $0x38] sm:$0xff]  ;;  %v601_v26 = vadd.f32 %v600_v21, %v599_v16  ;;  %v606_v27 = vsel %vm598_vm1, %v7715_v18, 0.0  ;;  %v655_v34 = vld [vmem:[#allocation5 + $0x30] sm:$0xff]  ;;  %s9334_s13 = sld [smem:[#allocation33_spill]] }
  0xe2   : > { %v608_v28 = vsel %vm598_vm1, %v7718_v19, 0.0  ;;  %v610_v29 = vsel %vm598_vm1, %v7721_v20, 0.0  ;;  %v612_v30 = vsel %vm598_vm1, %v7732_v25, 0.0  ;;  %v622_v31 = vmul.f32 %v7703_v14, %v7703_v14  ;;  %v656_v39 = vld [vmem:[#allocation5 + $0x38] sm:$0xff]  ;;  %v6867_v16 = vld [vmem:[#allocation8] sm:$0xff]   ;;  %s9348_s22 = sld [smem:[#allocation32_spill]] }
  0xe3   : > { %v623_v32 = vmul.f32 %v7706_v15, %v7706_v15  ;;  %v624_v33 = vmul.f32 %v7715_v18, %v7715_v18  ;;  %v603_v35 = vadd.f32 %v602_v22, %v601_v26  ;;  %v625_v36 = vmul.f32 %v7718_v19, %v7718_v19  ;;  %s9349_s20 = sld [smem:[#allocation34_spill]]  ;;  %s6014_s24 = sshll.u32 %s7473_s17, 10 }
  0xe4   : > { %6540 = vmatpush3.bf16.msra.mxu0 %v6539_v11  ;;  %6552 = vmatpush3.bf16.msra.mxu1 %v6539_v11  ;;  %v626_v37 = vmul.f32 %v7721_v20, %v7721_v20  ;;  %v628_v38 = vsel %vm598_vm1, %v620_v17, 0.0  ;;  %v627_v40 = vmul.f32 %v7732_v25, %v7732_v25  ;;  %v629_v41 = vsel %vm598_vm1, %v621_v24, 0.0  ;;  %s5671_s12 = sshll.u32 %s7686_s19, 4  ;;  %s9350_s21 = sld [smem:[#allocation28_spill]]  ;;  %s9212_s12 = int_to_ptr.vmem [resolvable:$true] %s5671_s12 }
  0xe5   : > { %6541 = vmatprep.subr.bf16.mxu0 %v9289_v4  ;;  %6553 = vmatprep.subr.bf16.mxu1 %v9289_v4  ;;  %v631_v42 = vsel %vm598_vm1, %v622_v31, 0.0  ;;  %v633_v43 = vsel %vm598_vm1, %v623_v32, 0.0  ;;  %v605_v44 = vadd.f32 %v604_v23, %v603_v35  ;;  %v630_v45 = vadd.f32 %v629_v41, %v628_v38  ;;  %v6868_v23 = vld [vmem:[#allocation8 + $0x8] sm:$0xff]   ;;  %v6870_v32 = vld [vmem:[#allocation8 + $0x18] sm:$0xff]   ;;  %v6873_v41 = vld [vmem:[#allocation8 + $0x30] sm:$0xff]   ;;  %s9351_s14 = sld [smem:[#allocation35_spill]] }
  0xe6   : > { %v635_v46 = vsel %vm598_vm1, %v624_v33, 0.0  ;;  %v637_v47 = vsel %vm598_vm1, %v625_v36, 0.0  ;;  %v639_v48 = vsel %vm598_vm1, %v626_v37, 0.0  ;;  %v641_v49 = vsel %vm598_vm1, %v627_v40, 0.0  ;;  %v6872_v36 = vld [vmem:[#allocation8 + $0x28] sm:$0xff]   ;;  %s9218_s17 = scalar_lea.sflag [#allocation7], %s554_s25 }
  0xe7   : > { %v6545_v50 = vpack.c.bf16 %v656_v39, %v655_v34  ;;  %v607_v51 = vadd.f32 %v606_v27, %v605_v44  ;;  %v632_v52 = vadd.f32 %v631_v42, %v630_v45  ;;  %v7372_v22 = vmov 0   ;;  %v6871_v34 = vld [vmem:[#allocation8 + $0x20] sm:$0xff]   ;;  %v810_v37 = vld [vmem:[%s9262_s3] sm:$0x1]  ;;  %s7277_s15 = scalar_lea.vmem %s9212_s12, 1024  ;;  %s7374_s29 = smov [#allocation17]  }
  0xe8   : > { %6543 = vmatpush3.bf16.msra.mxu0 %v6542_v12  ;;  %6555 = vmatpush3.bf16.msra.mxu1 %v6542_v12  ;;  %v815_v33 = vlaneseq  ;;  %v812_v42 = vld [vmem:[%s9263_s4] sm:$0x1]  ;;  %vm1116_vm6 = vsmask.f32 4352  ;;  %vm3165_vm7 = vcmask 1043456   ;;  %p7278_p7 = scmp.ne.s32.totalorder %s9212_s12, %s7277_s15 }
  0xe9   : > { %6544 = vmatprep.subr.bf16.mxu0 %v9289_v4  ;;  %6556 = vmatprep.subr.bf16.mxu1 %v9289_v4  ;;  %v609_v53 = vadd.f32 %v608_v28, %v607_v51  ;;  %v634_v54 = vadd.f32 %v633_v43, %v632_v52 }
  0xea   : > { %6865 = vset.pattern.permute.xlu1 %v7372_v22  ;;  %6866 = vset.pattern.permute.xlu0 %v7372_v22  ;;  %v816_v35 = vshrl.u32 %v815_v33, 7  ;;  %p9352_p8 = scmp.ne.s32.totalorder %s9350_s21, 0 }
  0xeb   : > { %v611_v55 = vadd.f32 %v610_v29, %v609_v53  ;;  %v636_v56 = vadd.f32 %v635_v46, %v634_v54  ;;  %v6869_v29 = vld [vmem:[#allocation8 + $0x10] sm:$0xff]   ;;  %v6874_v46 = vld [vmem:[#allocation8 + $0x38] sm:$0xff]   ;;  %s9210_s23 = scalar_lea.hbm %s9351_s14, %s6014_s24 }
  0xec   : > { %6546 = vmatpush3.bf16.msra.mxu0 %v6545_v50  ;;  %6558 = vmatpush3.bf16.msra.mxu1 %v6545_v50  ;;  %v7782_v38 = vsub.s32 0, %v816_v35  ;;  %p7279_p12 = pnand %p7278_p7, %p9352_p8 }
  0xed   : > { %6559 = vmatprep.subr.bf16.mxu1 %v9289_v4  ;;  %v613_v57 = vadd.f32 %v612_v30, %v611_v55  ;;  %v638_v58 = vadd.f32 %v637_v47, %v636_v56  ;;  %1372 = vmatprep.subr.bf16.mxu0 %v7372_v22 }
  0xee   : > { %p7280_p5 = pneg %p7279_p12 }
  0xef   : > { %v614_v59 = vrot.slane %v613_v57, 4  ;;  %v640_v60 = vadd.f32 %v639_v48, %v638_v58 }
  0xf1   : > { %v615_v61 = vadd.f32 %v614_v59, %v613_v57  ;;  %v642_v62 = vadd.f32 %v641_v49, %v640_v60 }
  0xf3   : > { %v616_v63 = vrot.slane %v615_v61, 2  ;;  %v643_v0 = vrot.slane %v642_v62, 4 }
  0xf5   : > { %v617_v1 = vadd.f32 %v616_v63, %v615_v61  ;;  %v644_v2 = vadd.f32 %v643_v0, %v642_v62 }
  0xf7   : > { %v618_v3 = vrot.slane %v617_v1, 1  ;;  %v645_v5 = vrot.slane %v644_v2, 2 }
  0xf9   : > { %v619_v6 = vadd.f32 %v618_v3, %v617_v1  ;;  %v646_v7 = vadd.f32 %v645_v5, %v644_v2 }
  0xfb   : > { %6332 = vmatmul.mubr.msk.f32.vlgmr.msra.gmra.mrb[0].mxu0 %vm598_vm1, %v619_v6  ;;  %v647_v8 = vrot.slane %v646_v7, 1 }
  0xfc   : > { %1373 = vmatpush1.bf16.msra.mxu0 %v6867_v16 }
  0xfd   : > { %v648_v11 = vadd.f32 %v647_v8, %v646_v7  ;;  %1374 = vmatprep.subr.bf16.mxu0 %v7372_v22 }
  0xff   : > { %6351 = vmatmul.mubr.msk.f32.vlgmr.msra.gmra.mrb[0].mxu1 %vm598_vm1, %v648_v11 }
 0x100   : > { %6385 = vmatprep.mubr.msk.f32.mxu1 %vm7370_vm2, %v9291_v9  ;;  %1375 = vmatpush1.bf16.msra.mxu0 %v6868_v23 }
 0x101   : > { %1376 = vmatprep.subr.bf16.mxu0 %v7372_v22 }
 0x104   : > { %1377 = vmatpush1.bf16.msra.mxu0 %v6869_v29 }
 0x105   : > { %1378 = vmatprep.subr.bf16.mxu0 %v7372_v22 }
 0x108   : > { %1379 = vmatpush1.bf16.msra.mxu0 %v6870_v32 }
 0x109   : > { %1380 = vmatprep.subr.bf16.mxu0 %v7372_v22 }
 0x10c   : > { %1381 = vmatpush1.bf16.msra.mxu0 %v6871_v34 }
 0x10d   : > { %1382 = vmatprep.subr.bf16.mxu0 %v7372_v22 }
 0x110   : > { %1383 = vmatpush1.bf16.msra.mxu0 %v6872_v36 }
 0x111   : > { %1384 = vmatprep.subr.bf16.mxu0 %v7372_v22 }
 0x114   : > { %1385 = vmatpush1.bf16.msra.mxu0 %v6873_v41 }
 0x115   : > { %1386 = vmatprep.subr.bf16.mxu0 %v7372_v22 }
 0x118   : > { %1387 = vmatpush1.bf16.msra.mxu0 %v6874_v46 }
 0x119   : > { %1388 = vmatprep.subr.bf16.mxu0 %v7372_v22 }
 0x1ce   : > { %v726_v12 = vpop.f32.mrb[0].mxu0 }
 0x1cf   : > { %v731_v17 = vmul.f32 0.0078125, %v726_v12  ;;  %v6333_v21 = vpop.f32.mrb[1].mxu0 }
 0x1d1   : > { %v806_v24 = vmul.f32 %v731_v17, %v731_v17 }
 0x1d2   : > { %v801_v26 = vpop.f32.mrb[0].mxu1 }
 0x1d3   : > { %v805_v27 = vmul.f32 0.0078125, %v801_v26  ;;  %v6352_v28 = vpop.f32.mrb[1].mxu1 }
 0x1d5   : > { %v807_v30 = vsub.f32 %v805_v27, %v806_v24 }
 0x1d7   : > { %v808_v31 = vadd.f32 1e-05, %v807_v30 }
 0x1d9   : > { %6979 = vrsqrt.f32 %v808_v31 }
 0x1e3   : > { %v6980_v39 = vpop.eup %6979 }
 0x1e4   : > { %v811_v40 = vmul.f32 %v6980_v39, %v810_v37  ;;  %v948_v37 = vld [vmem:[#allocation2] sm:$0xf0] }
 0x1e6   : > { %v813_v43 = vmul.f32 %v811_v40, %v731_v17  ;;  %v818_v44 = vrot.slane %v811_v40, %v7782_v38 }
 0x1e8   : > { %v814_v45 = vsub.f32 %v812_v42, %v813_v43  ;;  %v820_v47 = vmul.f32 %v818_v44, %v7700_v13  ;;  %v822_v48 = vmul.f32 %v818_v44, %v7706_v15  ;;  %v819_v50 = vmul.f32 %v818_v44, %v7695_v10  ;;  %v6875_v15 = vld [vmem:[#allocation8 + $0x40] sm:$0xff]  }
 0x1e9   : > { %v821_v51 = vmul.f32 %v818_v44, %v7703_v14  ;;  %v823_v52 = vmul.f32 %v818_v44, %v7715_v18  ;;  %v824_v53 = vmul.f32 %v818_v44, %v7718_v19  ;;  %v825_v54 = vmul.f32 %v818_v44, %v7721_v20  ;;  %1389 = vmatpush1.bf16.msra.mxu0 %v6875_v15 }
 0x1ea   : > { %v831_v49 = vrot.slane %v814_v45, %v7782_v38  ;;  %v826_v55 = vmul.f32 %v818_v44, %v7732_v25  ;;  %1390 = vmatprep.subr.bf16.mxu0 %v7372_v22 }
 0x1ec   : > { %v833_v56 = vadd.f32 %v831_v49, %v819_v50  ;;  %v834_v13 = vadd.f32 %v831_v49, %v820_v47  ;;  %v835_v57 = vadd.f32 %v831_v49, %v821_v51  ;;  %v836_v58 = vadd.f32 %v831_v49, %v822_v48 }
 0x1ed   : > { %v7799_v59 = vadd.f32 %v831_v49, %v823_v52  ;;  %v7801_v60 = vadd.f32 %v831_v49, %v824_v53  ;;  %v7803_v10 = vadd.f32 %v831_v49, %v825_v54  ;;  %v7805_v14 = vadd.f32 %v831_v49, %v826_v55 }
 0x1ee   : > { %v5826_v18 = vmul.f32 -1.442695, %v833_v56  ;;  %v5827_v19 = vmul.f32 -1.442695, %v834_v13  ;;  %v5828_v20 = vmul.f32 -1.442695, %v835_v57 }
 0x1ef   : > { %v5829_v25 = vmul.f32 -1.442695, %v836_v58  ;;  %v5830_v61 = vmul.f32 -1.442695, %v7799_v59  ;;  %v5831_v62 = vmul.f32 -1.442695, %v7801_v60 }
 0x1f0   : > { %6981 = vpow2.f32 %v5826_v18  ;;  %v5832_v63 = vmul.f32 -1.442695, %v7803_v10  ;;  %v5833_v0 = vmul.f32 -1.442695, %v7805_v14  ;;  %v954_v50 = vshll.u32 %v948_v37, 16 }
 0x1f1   : > { %6983 = vpow2.f32 %v5827_v19  ;;  %v6876_v19 = vld [vmem:[#allocation8 + $0x48] sm:$0xff]  }
 0x1f2   : > { %6985 = vpow2.f32 %v5828_v20  ;;  %v1050_v20 = vrot.slane %v948_v37, 1  ;;  %1391 = vmatpush1.bf16.msra.mxu0 %v6876_v19 }
 0x1f3   : > { %6987 = vpow2.f32 %v5829_v25  ;;  %1392 = vmatprep.subr.bf16.mxu0 %v7372_v22 }
 0x1f4   : > { %6989 = vpow2.f32 %v5830_v61 }
 0x1f5   : > { %6991 = vpow2.f32 %v5831_v62 }
 0x1f6   : > { %6993 = vpow2.f32 %v5832_v63 }
 0x1f7   : > { %6995 = vpow2.f32 %v5833_v0 }
 0x1fa   : > { %v6982_v1 = vpop.eup %6981 }
 0x1fb   : > { %v6984_v2 = vpop.eup %6983  ;;  %v865_v3 = vadd.f32 1.0, %v6982_v1 }
 0x1fc   : > { %v6986_v5 = vpop.eup %6985  ;;  %v866_v6 = vadd.f32 1.0, %v6984_v2 }
 0x1fd   : > { %v6988_v7 = vpop.eup %6987  ;;  %6997 = vrcp.f32 %v865_v3  ;;  %v867_v8 = vadd.f32 1.0, %v6986_v5  ;;  %v6877_v5 = vld [vmem:[#allocation8 + $0x50] sm:$0xff]  }
 0x1fe   : > { %v6990_v11 = vpop.eup %6989  ;;  %6999 = vrcp.f32 %v866_v6  ;;  %v868_v12 = vadd.f32 1.0, %v6988_v7  ;;  %1393 = vmatpush1.bf16.msra.mxu0 %v6877_v5 }
 0x1ff   : > { %v6992_v16 = vpop.eup %6991  ;;  %7001 = vrcp.f32 %v867_v8  ;;  %v869_v17 = vadd.f32 1.0, %v6990_v11  ;;  %1394 = vmatprep.subr.bf16.mxu0 %v7372_v22 }
 0x200   : > { %v6994_v21 = vpop.eup %6993  ;;  %7003 = vrcp.f32 %v868_v12  ;;  %v870_v23 = vadd.f32 1.0, %v6992_v16 }
 0x201   : > { %v6996_v24 = vpop.eup %6995  ;;  %7005 = vrcp.f32 %v869_v17  ;;  %v871_v26 = vadd.f32 1.0, %v6994_v21 }
 0x202   : > { %7007 = vrcp.f32 %v870_v23  ;;  %v872_v27 = vadd.f32 1.0, %v6996_v24 }
 0x203   : > { %7009 = vrcp.f32 %v871_v26 }
 0x204   : > { %7011 = vrcp.f32 %v872_v27 }
 0x207   : > { %v6998_v28 = vpop.eup %6997 }
 0x208   : > { %v7000_v29 = vpop.eup %6999  ;;  %v889_v30 = vmul.f32 %v6998_v28, %v833_v56 }
 0x209   : > { %v7002_v31 = vpop.eup %7001  ;;  %v890_v32 = vmul.f32 %v7000_v29, %v834_v13  ;;  %v7851_v29 = vld [vmem:[#allocation2 + $0x40] sm:$0xf] }
 0x20a   : > { %v7004_v33 = vpop.eup %7003  ;;  %v897_v34 = vpack.c.bf16 %v889_v30, %v889_v30  ;;  %v891_v35 = vmul.f32 %v7002_v31, %v835_v57 }
 0x20b   : > { %v7006_v36 = vpop.eup %7005  ;;  %v903_v39 = vpack.c.bf16 %v890_v32, %v890_v32  ;;  %v892_v40 = vmul.f32 %v7004_v33, %v836_v58 }
 0x20c   : > { %v7008_v41 = vpop.eup %7007  ;;  %v899_v42 = vrot.slane %v897_v34, 4  ;;  %v908_v43 = vpack.c.bf16 %v891_v35, %v891_v35  ;;  %v893_v44 = vmul.f32 %v7006_v36, %v7799_v59  ;;  %v952_v59 = vshrl.u32 %v948_v37, 16  ;;  %v6878_v35 = vld [vmem:[#allocation8 + $0x58] sm:$0xff]  }
 0x20d   : > { %v7010_v45 = vpop.eup %7009  ;;  %v905_v46 = vrot.slane %v903_v39, 4  ;;  %v913_v47 = vpack.c.bf16 %v892_v40, %v892_v40  ;;  %v894_v48 = vmul.f32 %v7008_v41, %v7801_v60  ;;  %v956_v60 = vrot.slane %v954_v50, 1  ;;  %1395 = vmatpush1.bf16.msra.mxu0 %v6878_v35 }
 0x20e   : > { %v7012_v49 = vpop.eup %7011  ;;  %902 = vst.msk [vmem:[#allocation2 + $0x8] sm:$0xf0] %vm901_vm3, %v899_v42  ;;  %v910_v51 = vrot.slane %v908_v43, 4  ;;  %v918_v52 = vpack.c.bf16 %v893_v44, %v893_v44  ;;  %v895_v53 = vmul.f32 %v7010_v45, %v7803_v10  ;;  %1910 = vmatprep.subr.bf16.mxu0 %v7372_v22 }
 0x20f   : > { %907 = vst.msk [vmem:[#allocation2 + $0x10] sm:$0xf0] %vm901_vm3, %v905_v46  ;;  %v915_v54 = vrot.slane %v913_v47, 4  ;;  %v923_v55 = vpack.c.bf16 %v894_v48, %v894_v48  ;;  %v896_v56 = vmul.f32 %v7012_v49, %v7805_v14  ;;  %v957_v25 = vor.u32 %v956_v60, %v952_v59 }
 0x210   : > { %912 = vst.msk [vmem:[#allocation2 + $0x18] sm:$0xf0] %vm901_vm3, %v910_v51  ;;  %v920_v13 = vrot.slane %v918_v52, 4  ;;  %v928_v57 = vpack.c.bf16 %v895_v53, %v895_v53  ;;  %v1015_v53 = vshll.u32 %v7851_v29, 16 }
 0x211   : > { %917 = vst.msk [vmem:[#allocation2 + $0x20] sm:$0xf0] %vm901_vm3, %v915_v54  ;;  %v925_v58 = vrot.slane %v923_v55, 4  ;;  %v933_v15 = vpack.c.bf16 %v896_v56, %v896_v56 }
 0x212   : > { %922 = vst.msk [vmem:[#allocation2 + $0x28] sm:$0xf0] %vm901_vm3, %v920_v13  ;;  %v930_v18 = vrot.slane %v928_v57, 4  ;;  %v1017_v5 = vrot.slane %v1015_v53, 1 }
 0x213   : > { %927 = vst.msk [vmem:[#allocation2 + $0x30] sm:$0xf0] %vm901_vm3, %v925_v58  ;;  %v935_v10 = vrot.slane %v933_v15, 4 }
 0x214   : > { %932 = vst.msk [vmem:[#allocation2 + $0x38] sm:$0xf0] %vm901_vm3, %v930_v18 }
 0x215   : > { %v7824_v14 = vld [vmem:[#allocation2 + $0x8] sm:$0xff]  ;;  %937 = vst.msk [vmem:[#allocation2 + $0x40] sm:$0xf0] %vm901_vm3, %v935_v10 }
 0x216   : > { %v959_v61 = vshll.u32 %v7824_v14, 16  ;;  %v1051_v62 = vrot.slane %v7824_v14, 1  ;;  %v7829_v63 = vld [vmem:[#allocation2 + $0x10] sm:$0xff]  ;;  %v963_v3 = vshrl.u32 %v7824_v14, 16  ;;  %v7862_v41 = vld [vmem:[#allocation2 + $0x8] sm:$0xf0] }
 0x217   : > { %v7832_v0 = vld [vmem:[#allocation2 + $0x18] sm:$0xff]  ;;  %v967_v1 = vshll.u32 %v7829_v63, 16  ;;  %v7836_v2 = vrot.slane %v7829_v63, 1  ;;  %v971_v7 = vshrl.u32 %v7829_v63, 16  ;;  %v1499_v54 = vshll.u32 %v7862_v41, 16 }
 0x218   : > { %v961_v6 = vrot.slane %v959_v61, 1  ;;  %v975_v8 = vshll.u32 %v7832_v0, 16  ;;  %v1052_v11 = vsel %vm1049_vm5, %v1050_v20, %v1051_v62  ;;  %v7846_v23 = vld [vmem:[#allocation2 + $0x20] sm:$0xff]  ;;  %v979_v37 = vshrl.u32 %v7832_v0, 16 }
 0x219   : > { %v7842_v12 = vrot.slane %v967_v1, 1  ;;  %v1054_v16 = vsel %vm1049_vm5, %v1051_v62, %v7836_v2  ;;  %v1133_v17 = vshrl.u32 %v1052_v11, 16  ;;  %v1136_v21 = vshll.u32 %v1052_v11, 16  ;;  %v7856_v34 = vld [vmem:[#allocation2 + $0x28] sm:$0xff] }
 0x21a   : > { %v962_v24 = vsel %vm950_vm4, %v957_v25, %v961_v6  ;;  %v7849_v26 = vrot.slane %v975_v8, 1  ;;  %v965_v27 = vor.u32 %v963_v3, %v961_v6  ;;  %v1141_v28 = vshrl.u32 %v1054_v16, 16  ;;  %v7860_v40 = vld [vmem:[#allocation2 + $0x30] sm:$0xff] }
 0x21b   : > { %1022 = vrot.lane.b32.xlu0 %v962_v24, %s7373_s11  ;;  %v973_v30 = vor.u32 %v971_v7, %v7842_v12  ;;  %v1135_v31 = vrot.slane %v1133_v17, 3  ;;  %v1138_v32 = vrot.slane %v1136_v21, 4  ;;  %v1144_v33 = vshll.u32 %v1054_v16, 16  ;;  %v7875_v50 = vld [vmem:[#allocation2 + $0x38] sm:$0xff] }
 0x21c   : > { %v1143_v36 = vrot.slane %v1141_v28, 3  ;;  %v983_v39 = vshll.u32 %v7846_v23, 16  ;;  %v970_v43 = vsel %vm950_vm4, %v965_v27, %v7842_v12  ;;  %v981_v46 = vor.u32 %v979_v37, %v7849_v26 }
 0x21d   : > { %v7866_v42 = vsel %vm950_vm4, %v973_v30, %v7849_v26  ;;  %v1139_v44 = vor.u32 %v1138_v32, %v1135_v31  ;;  %v1146_v45 = vrot.slane %v1144_v33, 4  ;;  %v987_v48 = vshrl.u32 %v7846_v23, 16  ;;  %v7925_v33 = vld [vmem:[#allocation2 + $0x40] sm:$0xff] }
 0x21e   : > { %1026 = vrot.lane.b32.xlu1 %v7866_v42, %s7373_s11  ;;  %v985_v47 = vrot.slane %v983_v39, 1  ;;  %v991_v49 = vshll.u32 %v7856_v34, 16  ;;  %v999_v52 = vshll.u32 %v7860_v40, 16  ;;  %v995_v57 = vshrl.u32 %v7856_v34, 16 }
 0x21f   : > { %1024 = vrot.lane.b32.xlu0 %v970_v43, %s7373_s11  ;;  %v1147_v51 = vor.u32 %v1146_v45, %v1143_v36  ;;  %v1003_v59 = vshrl.u32 %v7860_v40, 16  ;;  %v1007_v60 = vshll.u32 %v7875_v50, 16  ;;  %v7890_v18 = vrot.slane %v7832_v0, 1  ;;  %v7929_v36 = vld [vmem:[#allocation2 + $0x48] sm:$0xf] }
 0x220   : > { %v7883_v55 = vsel %vm950_vm4, %v981_v46, %v985_v47  ;;  %v989_v56 = vor.u32 %v987_v48, %v985_v47  ;;  %v993_v13 = vrot.slane %v991_v49, 1  ;;  %v1001_v15 = vrot.slane %v999_v52, 1  ;;  %v2064_v47 = vld [vmem:[#allocation2 + $0x10] sm:$0xf0] }
 0x221   : > { %v1148_v58 = vsel %vm1116_vm6, %v1139_v44, %v1147_v51  ;;  %v1009_v25 = vrot.slane %v1007_v60, 1  ;;  %v1011_v61 = vshrl.u32 %v7875_v50, 16  ;;  %v1019_v62 = vshrl.u32 %v7851_v29, 16 }
 0x222   : > { %5847 = vmatprep.mubr.msk.bf16.mxu0 %vm598_vm1, %v1148_v58  ;;  %1028 = vrot.lane.b32.xlu1 %v7883_v55, %s7373_s11  ;;  %v7896_v10 = vsel %vm950_vm4, %v989_v56, %v993_v13  ;;  %v997_v19 = vor.u32 %v995_v57, %v993_v13  ;;  %v1005_v20 = vor.u32 %v1003_v59, %v1001_v15  ;;  %v1501_v6 = vrot.slane %v1499_v54, 1 }
 0x223   : > { %1030 = vrot.lane.b32.xlu0 %v7896_v10, %s7373_s11  ;;  %v7905_v3 = vor.u32 %v1011_v61, %v1009_v25  ;;  %v1056_v8 = vsel %vm1049_vm5, %v7836_v2, %v7890_v18  ;;  %v1021_v11 = vor.u32 %v1019_v62, %v1017_v5  ;;  %v1497_v16 = vshrl.u32 %v7862_v41, 16 }
 0x224   : > { %v7903_v1 = vsel %vm950_vm4, %v997_v19, %v1001_v15  ;;  %v7910_v7 = vsel %vm950_vm4, %v1005_v20, %v1009_v25  ;;  %v1158_v17 = vshrl.u32 %v1056_v8, 16  ;;  %v1161_v21 = vshll.u32 %v1056_v8, 16 }
 0x225   : > { %v1061_v24 = vrot.slane %v7860_v40, 1  ;;  %v7920_v27 = vrot.slane %v7875_v50, 1  ;;  %v1018_v28 = vsel %vm950_vm4, %v7905_v3, %v1017_v5  ;;  %v1502_v30 = vor.u32 %v1501_v6, %v1497_v16 }
 0x226   : > { %1032 = vrot.lane.b32.xlu1 %v7903_v1, %s7373_s11  ;;  %v1160_v31 = vrot.slane %v1158_v17, 3  ;;  %v1163_v32 = vrot.slane %v1161_v21, 4  ;;  %v1594_v35 = vrot.slane %v7862_v41, 1  ;;  %v1057_v39 = vrot.slane %v7846_v23, 1 }
 0x227   : > { %1034 = vrot.lane.b32.xlu0 %v7910_v7, %s7373_s11  ;;  %v1507_v43 = vsel %vm950_vm4, %v1502_v30, %v7842_v12  ;;  %v1552_v44 = vshll.u32 %v7925_v33, 16  ;;  %v1064_v41 = vsel %vm1049_vm5, %v1061_v24, %v7920_v27  ;;  %v1560_v46 = vshll.u32 %v7929_v36, 16  ;;  %v7949_v12 = vld [vmem:[#allocation2 + $0x48] sm:$0xff] }
 0x228   : > { %v7931_v37 = vor.u32 %v1163_v32, %v1160_v31  ;;  %v1596_v48 = vsel %vm1049_vm5, %v1594_v35, %v7836_v2  ;;  %v1564_v49 = vshrl.u32 %v7929_v36, 16  ;;  %v1226_v52 = vshrl.u32 %v1064_v41, 16 }
 0x229   : > { %v1229_v53 = vshll.u32 %v1064_v41, 16  ;;  %v1554_v54 = vrot.slane %v1552_v44, 1  ;;  %v7959_v56 = vrot.slane %v7925_v33, 1  ;;  %v2069_v13 = vshll.u32 %v2064_v47, 16 }
 0x22a   : > { %1036 = vrot.lane.b32.xlu1 %v1018_v28, %s7373_s11  ;;  %v7939_v45 = vsel %vm1116_vm6, %v1147_v51, %v7931_v37  ;;  %v1058_v51 = vsel %vm1049_vm5, %v7890_v18, %v1057_v39  ;;  %v1562_v57 = vrot.slane %v1560_v46, 1  ;;  %v2177_v2 = vrot.slane %v7949_v12, 1 }
 0x22b   : > { %1038 = vrot.lane.b32.xlu0 %v1021_v11, %s7373_s11  ;;  %v1556_v58 = vshrl.u32 %v7925_v33, 16  ;;  %v2164_v15 = vrot.slane %v2064_v47, 1  ;;  %v1175_v59 = vshrl.u32 %v1058_v51, 16  ;;  %v1178_v60 = vshll.u32 %v1058_v51, 16 }
 0x22c   : > { %v1228_v19 = vrot.slane %v1226_v52, 3  ;;  %v1231_v20 = vrot.slane %v1229_v53, 4  ;;  %v1674_v61 = vshll.u32 %v1596_v48, 16  ;;  %v1566_v5 = vor.u32 %v1564_v49, %v1562_v57 }
 0x22d   : > { %v1558_v62 = vor.u32 %v1556_v58, %v1554_v54  ;;  %v2071_v6 = vrot.slane %v2069_v13, 1  ;;  %v1608_v8 = vsel %vm1049_vm5, %v7920_v27, %v7959_v56  ;;  %v2067_v11 = vshrl.u32 %v2064_v47, 16 }
 0x22e   : > { %1567 = vrot.lane.b32.xlu1 %v1507_v43, %s7373_s11  ;;  %v1676_v16 = vrot.slane %v1674_v61, 4  ;;  %v1764_v17 = vshrl.u32 %v1608_v8, 16  ;;  %v1767_v21 = vshll.u32 %v1608_v8, 16  ;;  %v1177_v28 = vrot.slane %v1175_v59, 3 }
 0x22f   : > { %1569 = vrot.lane.b32.xlu0 %v7866_v42, %s7373_s11  ;;  %v1671_v42 = vshrl.u32 %v1596_v48, 16  ;;  %v1180_v30 = vrot.slane %v1178_v60, 4  ;;  %v2166_v31 = vsel %vm1049_vm5, %v2164_v15, %v7890_v18  ;;  %v2178_v32 = vsel %vm1049_vm5, %v7959_v56, %v2177_v2 }
 0x230   : > { %v7980_v35 = vor.u32 %v1231_v20, %v1228_v19  ;;  %v1766_v44 = vrot.slane %v1764_v17, 3  ;;  %v1769_v41 = vrot.slane %v1767_v21, 4  ;;  %v1555_v46 = vsel %vm950_vm4, %v7905_v3, %v1554_v54  ;;  %v8006_v20 = vld [vmem:[#allocation2 + $0x50] sm:$0xf] }
 0x231   : > { %v1673_v25 = vrot.slane %v1671_v42, 3  ;;  %v1563_v47 = vsel %vm950_vm4, %v1558_v62, %v1562_v57  ;;  %v2072_v48 = vor.u32 %v2071_v6, %v2067_v11  ;;  %v2241_v49 = vshrl.u32 %v2166_v31, 16 }
 0x232   : > { %1571 = vrot.lane.b32.xlu1 %v7883_v55, %s7373_s11  ;;  %v7990_v51 = vor.u32 %v1769_v41, %v1766_v44  ;;  %v2244_v52 = vshll.u32 %v2166_v31, 16  ;;  %v2334_v53 = vshrl.u32 %v2178_v32, 16  ;;  %v2337_v42 = vshll.u32 %v2178_v32, 16 }
 0x233   : > { %1573 = vrot.lane.b32.xlu0 %v7896_v10, %s7373_s11  ;;  %v1677_v43 = vor.u32 %v1676_v16, %v1673_v25  ;;  %v2243_v13 = vrot.slane %v2241_v49, 3  ;;  %v7993_v58 = vor.u32 %v1180_v30, %v1177_v28  ;;  %v2077_v59 = vsel %vm950_vm4, %v2072_v48, %v7849_v26 }
 0x234   : > { %v7998_v3 = vsel %vm1116_vm6, %v7980_v35, %v7990_v51  ;;  %v2246_v54 = vrot.slane %v2244_v52, 4  ;;  %v2336_v57 = vrot.slane %v2334_v53, 3  ;;  %v2339_v15 = vrot.slane %v2337_v42, 4 }
 0x235   : > { %v7988_v18 = vsel %vm1116_vm6, %v1677_v43, %v7931_v37  ;;  %v2122_v61 = vshll.u32 %v7949_v12, 16  ;;  %v2126_v26 = vshrl.u32 %v7949_v12, 16  ;;  %v2130_v6 = vshll.u32 %v8006_v20, 16 }
 0x236   : > { %1575 = vrot.lane.b32.xlu1 %v7903_v1, %s7373_s11  ;;  %v2247_v60 = vor.u32 %v2246_v54, %v2243_v13  ;;  %v8004_v19 = vor.u32 %v2339_v15, %v2336_v57  ;;  %v2134_v17 = vshrl.u32 %v8006_v20, 16  ;;  %v1059_v53 = vrot.slane %v7856_v34, 1 }
 0x237   : > { %1577 = vrot.lane.b32.xlu0 %v7910_v7, %s7373_s11  ;;  %v2124_v8 = vrot.slane %v2122_v61, 1  ;;  %v2132_v16 = vrot.slane %v2130_v6, 1  ;;  %v6880_v6 = vld [vmem:[#allocation8 + $0x68] sm:$0xff]  }
 0x238   : > { %v8010_v25 = vsel %vm1116_vm6, %v2247_v60, %v7993_v58 }
 0x239   : > { %v2128_v11 = vor.u32 %v2126_v26, %v2124_v8  ;;  %v2136_v21 = vor.u32 %v2134_v17, %v2132_v16 }
 0x23a   : > { %1579 = vrot.lane.b32.xlu1 %v1555_v46, %s7373_s11 }
 0x23b   : > { %1581 = vrot.lane.b32.xlu0 %v1563_v47, %s7373_s11 }
 0x23e   : > { %1583 = vrot.lane.b32.xlu1 %v1566_v5, %s7373_s11  ;;  %v8016_v5 = vsel %vm1116_vm6, %v7990_v51, %v8004_v19 }
 0x23f   : > { %2137 = vrot.lane.b32.xlu0 %v2077_v59, %s7373_s11  ;;  %v6879_v59 = vld [vmem:[#allocation8 + $0x60] sm:$0xff]  }
 0x242   : > { %2139 = vrot.lane.b32.xlu1 %v7883_v55, %s7373_s11  ;;  %v2125_v55 = vsel %vm950_vm4, %v1558_v62, %v2124_v8  ;;  %v1060_v8 = vsel %vm1049_vm5, %v1057_v39, %v1059_v53  ;;  %v8057_v39 = vsel %vm1116_vm6, %v7931_v37, %v7993_v58 }
 0x243   : > { %2141 = vrot.lane.b32.xlu0 %v7896_v10, %s7373_s11  ;;  %v2133_v10 = vsel %vm950_vm4, %v2128_v11, %v2132_v16 }
 0x246   : > { %2143 = vrot.lane.b32.xlu1 %v7903_v1, %s7373_s11  ;;  %v939_v1 = vld [vmem:[#allocation2] sm:$0xf8] }
 0x247   : > { %2145 = vrot.lane.b32.xlu0 %v7910_v7, %s7373_s11 }
 0x24a   : > { %2147 = vrot.lane.b32.xlu1 %v1555_v46, %s7373_s11 }
 0x24b   : > { %2149 = vrot.lane.b32.xlu0 %v2125_v55, %s7373_s11  ;;  %v1192_v55 = vshrl.u32 %v1060_v8, 16 }
 0x24e   : > { %2151 = vrot.lane.b32.xlu1 %v2133_v10, %s7373_s11  ;;  %v1195_v10 = vshll.u32 %v1060_v8, 16 }
 0x24f   : > { %2153 = vrot.lane.b32.xlu0 %v2136_v21, %s7373_s11 }
 0x28d   : > { %v1023_v28 = vpop.permute.xlu0 %1022 }
 0x28e   : > { %v1069_v7 = vsel %vm598_vm1, %v939_v1, %v1023_v28  ;;  %v6881_v1 = vld [vmem:[#allocation8 + $0x70] sm:$0xff]  }
 0x28f   : > { %v1117_v30 = vshrl.u32 %v1069_v7, 16  ;;  %v1120_v31 = vshll.u32 %v1069_v7, 16 }
 0x290   : > { %v1027_v32 = vpop.permute.xlu1 %1026 }
 0x291   : > { %v1025_v43 = vpop.permute.xlu0 %1024  ;;  %v1119_v44 = vrot.slane %v1117_v30, 3  ;;  %v1122_v41 = vrot.slane %v1120_v31, 4  ;;  %v1073_v48 = vsel %vm598_vm1, %v7829_v63, %v1027_v32  ;;  %v1194_v31 = vrot.slane %v1192_v55, 3 }
 0x292   : > { %v1071_v62 = vsel %vm598_vm1, %v7824_v14, %v1025_v43  ;;  %v1149_v42 = vshrl.u32 %v1073_v48, 16  ;;  %v1152_v54 = vshll.u32 %v1073_v48, 16  ;;  %v1197_v32 = vrot.slane %v1195_v10, 4  ;;  %v6882_v43 = vld [vmem:[#allocation8 + $0x78] sm:$0xff]  }
 0x293   : > { %v1124_v46 = vshrl.u32 %v1071_v62, 16  ;;  %v1127_v47 = vshll.u32 %v1071_v62, 16  ;;  %v1123_v13 = vor.u32 %v1122_v41, %v1119_v44  ;;  %v1062_v62 = vsel %vm1049_vm5, %v1059_v53, %v1061_v24 }
 0x294   : > { %v1029_v15 = vpop.permute.xlu1 %1028  ;;  %v1151_v61 = vrot.slane %v1149_v42, 3  ;;  %v1154_v26 = vrot.slane %v1152_v54, 4  ;;  %v1209_v48 = vshrl.u32 %v1062_v62, 16  ;;  %v1212_v37 = vshll.u32 %v1062_v62, 16  ;;  %v6887_v62 = vld [vmem:[#allocation8 + $0xa0] sm:$0xff]  }
 0x295   : > { %v1126_v49 = vrot.slane %v1124_v46, 3  ;;  %v1129_v52 = vrot.slane %v1127_v47, 4  ;;  %v1075_v14 = vsel %vm598_vm1, %v7832_v0, %v1029_v15  ;;  %v1031_v21 = vpop.permute.xlu0 %1030  ;;  %v1198_v47 = vor.u32 %v1197_v32, %v1194_v31 }
 0x296   : > { %v1166_v11 = vshrl.u32 %v1075_v14, 16  ;;  %v1169_v16 = vshll.u32 %v1075_v14, 16  ;;  %v1155_v17 = vor.u32 %v1154_v26, %v1151_v61  ;;  %v1077_v30 = vsel %vm598_vm1, %v7846_v23, %v1031_v21 }
 0x297   : > { %v1130_v57 = vor.u32 %v1129_v52, %v1126_v49  ;;  %v1183_v41 = vshrl.u32 %v1077_v30, 16  ;;  %v1186_v46 = vshll.u32 %v1077_v30, 16  ;;  %v6883_v52 = vld [vmem:[#allocation8 + $0x80] sm:$0xff]   ;;  %v8071_v53 = vsel %vm1116_vm6, %v7993_v58, %v1198_v47 }
 0x298   : > { %v1168_v28 = vrot.slane %v1166_v11, 3  ;;  %v1171_v7 = vrot.slane %v1169_v16, 4  ;;  %v1033_v49 = vpop.permute.xlu1 %1032  ;;  %v1214_v15 = vrot.slane %v1212_v37, 4  ;;  %v6885_v11 = vld [vmem:[#allocation8 + $0x90] sm:$0xff]  }
 0x299   : > { %v1131_v60 = vsel %vm1116_vm6, %v1123_v13, %v1130_v57  ;;  %v1185_v13 = vrot.slane %v1183_v41, 3  ;;  %v1188_v42 = vrot.slane %v1186_v46, 4  ;;  %v1079_v24 = vsel %vm598_vm1, %v7856_v34, %v1033_v49  ;;  %v1035_v8 = vpop.permute.xlu0 %1034  ;;  %v6888_v49 = vld [vmem:[#allocation8 + $0xa8] sm:$0xff]  }
 0x29a   : > { %1405 = vmatmul.mubr.bf16.vlgmr.msra.gmra.mrb[4].mxu0 %v1131_v60  ;;  %v1172_v44 = vor.u32 %v1171_v7, %v1168_v28  ;;  %v949_v60 = vld [vmem:[#allocation2 + $0x40] sm:$0x1f]  ;;  %v1200_v61 = vshrl.u32 %v1079_v24, 16  ;;  %v1203_v26 = vshll.u32 %v1079_v24, 16 }
 0x29b   : > { %1911 = vmatpush1.bf16.msra.mxu0 %v6879_v59  ;;  %5848 = vmatprep.mubr.msk.bf16.mxu0 %vm598_vm1, %v7939_v45  ;;  %v1156_v45 = vsel %vm1116_vm6, %v1130_v57, %v1155_v17  ;;  %v1211_v57 = vrot.slane %v1209_v48, 3  ;;  %v6884_v59 = vld [vmem:[#allocation8 + $0x88] sm:$0xff]   ;;  %v1189_v14 = vor.u32 %v1188_v42, %v1185_v13  ;;  %v1065_v16 = vrot.slane %v949_v60, 1 }
 0x29c   : > { %1912 = vmatprep.subr.bf16.mxu0 %v7372_v22  ;;  %v1173_v54 = vsel %vm1116_vm6, %v1155_v17, %v1172_v44  ;;  %v1202_v58 = vrot.slane %v1200_v61, 3  ;;  %v1205_v55 = vrot.slane %v1203_v26, 4  ;;  %v1081_v17 = vsel %vm598_vm1, %v7860_v40, %v1035_v8 }
 0x29d   : > { %v1190_v10 = vsel %vm1116_vm6, %v1172_v44, %v1189_v14  ;;  %v1066_v28 = vsel %vm1049_vm5, %v7920_v27, %v1065_v16  ;;  %v1220_v30 = vshll.u32 %v1081_v17, 16  ;;  %v1260_v24 = vshrl.u32 %v1065_v16, 16 }
 0x29e   : > { %v1206_v7 = vor.u32 %v1205_v55, %v1202_v58  ;;  %v1243_v31 = vshrl.u32 %v1066_v28, 16  ;;  %v1246_v32 = vshll.u32 %v1066_v28, 16 }
 0x29f   : > { %1913 = vmatpush1.bf16.msra.mxu0 %v6880_v6  ;;  %v1215_v6 = vor.u32 %v1214_v15, %v1211_v57  ;;  %v1222_v41 = vrot.slane %v1220_v30, 4  ;;  %v1263_v57 = vshll.u32 %v1065_v16, 16  ;;  %v1039_v15 = vpop.permute.xlu0 %1038  ;;  %v1262_v8 = vrot.slane %v1260_v24, 3  ;;  %v6890_v16 = vld [vmem:[#allocation8 + $0xb8] sm:$0xff]   ;;  %v2643_v24 = vld [vmem:[%s9260_s1 + $0x10] sm:$0xff] }
 0x2a0   : > { %1914 = vmatprep.subr.bf16.mxu0 %v7372_v22  ;;  %v1207_v46 = vsel %vm1116_vm6, %v1189_v14, %v1206_v7  ;;  %v1245_v48 = vrot.slane %v1243_v31, 3  ;;  %v1248_v37 = vrot.slane %v1246_v32, 4  ;;  %v1085_v26 = vsel %vm598_vm1, %v7851_v29, %v1039_v15  ;;  %v1485_v31 = vld [vmem:[#allocation2 + $0x8] sm:$0xf8] }
 0x2a1   : > { %v8081_v21 = vsel %vm1116_vm6, %v1198_v47, %v1215_v6  ;;  %v8094_v27 = vsel %vm1116_vm6, %v1215_v6, %v7980_v35  ;;  %v1251_v55 = vshrl.u32 %v1085_v26, 16 }
 0x2a2   : > { %1413 = vmatmul.mubr.bf16.gmra.mrb[8].mxu0 %v1156_v45  ;;  %v1217_v45 = vshrl.u32 %v1081_v17, 16 }
 0x2a3   : > { %5849 = vmatprep.mubr.msk.bf16.mxu0 %vm598_vm1, %v8057_v39  ;;  %1915 = vmatpush1.bf16.msra.mxu0 %v6881_v1  ;;  %v6886_v1 = vld [vmem:[#allocation8 + $0x98] sm:$0xff]   ;;  %v1253_v29 = vrot.slane %v1251_v55, 3  ;;  %v6892_v55 = vld [vmem:[#allocation8 + $0xc8] sm:$0xff]  }
 0x2a4   : > { %1916 = vmatprep.subr.bf16.mxu0 %v7372_v22  ;;  %v1219_v44 = vrot.slane %v1217_v45, 3 }
 0x2a7   : > { %1917 = vmatpush1.bf16.msra.mxu0 %v6882_v43  ;;  %v1037_v43 = vpop.permute.xlu1 %1036 }
 0x2a8   : > { %1918 = vmatprep.subr.bf16.mxu0 %v7372_v22  ;;  %v1083_v47 = vsel %vm598_vm1, %v7875_v50, %v1037_v43 }
 0x2a9   : > { %v1234_v13 = vshrl.u32 %v1083_v47, 16  ;;  %v1237_v42 = vshll.u32 %v1083_v47, 16 }
 0x2aa   : > { %1421 = vmatmul.mubr.bf16.gmra.mrb[12].mxu0 %v1173_v54  ;;  %v1249_v54 = vor.u32 %v1248_v37, %v1245_v48 }
 0x2ab   : > { %5850 = vmatprep.mubr.msk.bf16.mxu0 %vm598_vm1, %v8071_v53  ;;  %1919 = vmatpush1.bf16.msra.mxu0 %v6883_v52  ;;  %v1223_v52 = vor.u32 %v1222_v41, %v1219_v44  ;;  %v1236_v60 = vrot.slane %v1234_v13, 3  ;;  %v1239_v14 = vrot.slane %v1237_v42, 4 }
 0x2ac   : > { %1920 = vmatprep.subr.bf16.mxu0 %v7372_v22  ;;  %v1250_v6 = vsel %vm1116_vm6, %v7980_v35, %v1249_v54 }
 0x2ad   : > { %v1224_v61 = vsel %vm1116_vm6, %v1206_v7, %v1223_v52  ;;  %v1240_v58 = vor.u32 %v1239_v14, %v1236_v60  ;;  %v1568_v7 = vpop.permute.xlu1 %1567  ;;  %v2645_v60 = vld [vmem:[%s9260_s1 + $0x20] sm:$0xff] }
 0x2ae   : > { %v1613_v32 = vsel %vm598_vm1, %v1485_v31, %v1568_v7  ;;  %v2648_v31 = vld [vmem:[%s9260_s1 + $0x38] sm:$0xff] }
 0x2af   : > { %1921 = vmatpush1.bf16.msra.mxu0 %v6884_v59  ;;  %v6889_v59 = vld [vmem:[#allocation8 + $0xb0] sm:$0xff]   ;;  %v1241_v35 = vsel %vm1116_vm6, %v1223_v52, %v1240_v58  ;;  %v1655_v41 = vshrl.u32 %v1613_v32, 16 }
 0x2b0   : > { %1922 = vmatprep.subr.bf16.mxu0 %v7372_v22  ;;  %v2641_v52 = vld [vmem:[%s9260_s1] sm:$0xff] }
 0x2b1   : > { %v1572_v47 = vpop.permute.xlu1 %1571  ;;  %v1657_v13 = vrot.slane %v1655_v41, 3  ;;  %2659 = vperm.xlu1 %6865, %v2641_v52  }
 0x2b2   : > { %1429 = vmatmul.mubr.bf16.gmra.mrb[16].mxu0 %v1190_v10  ;;  %v1254_v10 = vshll.u32 %v1085_v26, 16 }
 0x2b3   : > { %5851 = vmatprep.mubr.msk.bf16.mxu0 %vm598_vm1, %v8081_v21  ;;  %1923 = vmatpush1.bf16.msra.mxu0 %v6885_v11  ;;  %v1265_v11 = vrot.slane %v1263_v57, 4 }
 0x2b4   : > { %1924 = vmatprep.subr.bf16.mxu0 %v7372_v22  ;;  %v1256_v28 = vrot.slane %v1254_v10, 4 }
 0x2b5   : > { %v1266_v17 = vor.u32 %v1265_v11, %v1262_v8  ;;  %2669 = vperm.xlu1 %6865, %v2643_v24   ;;  %v2644_v11 = vld [vmem:[%s9260_s1 + $0x18] sm:$0xff]  ;;  %v1576_v7 = vpop.permute.xlu1 %1575  ;;  %v2655_v24 = vld [vmem:[%s9260_s1 + $0x70] sm:$0xff] }
 0x2b6   : > { %v1257_v43 = vor.u32 %v1256_v28, %v1253_v29  ;;  %v2646_v29 = vld [vmem:[%s9260_s1 + $0x28] sm:$0xff]  ;;  %v2649_v28 = vld [vmem:[%s9260_s1 + $0x40] sm:$0xff] }
 0x2b7   : > { %1925 = vmatpush1.bf16.msra.mxu0 %v6886_v1  ;;  %v1570_v1 = vpop.permute.xlu0 %1569  ;;  %v1267_v30 = vsel %vm1116_vm6, %v1249_v54, %v1266_v17  ;;  %v2642_v54 = vld [vmem:[%s9260_s1 + $0x8] sm:$0xff] }
 0x2b8   : > { %1926 = vmatprep.subr.bf16.mxu0 %v7372_v22  ;;  %v1615_v45 = vsel %vm598_vm1, %v7829_v63, %v1570_v1  ;;  %v1617_v63 = vsel %vm598_vm1, %v7832_v0, %v1572_v47  ;;  %2664 = vperm.xlu0 %6866, %v2642_v54   ;;  %v2650_v47 = vld [vmem:[%s9260_s1 + $0x48] sm:$0xff] }
 0x2b9   : > { %v1665_v44 = vshll.u32 %v1615_v45, 16  ;;  %v1687_v15 = vshrl.u32 %v1617_v63, 16  ;;  %2674 = vperm.xlu1 %6865, %v2644_v11  }
 0x2ba   : > { %1437 = vmatmul.mubr.bf16.gmra.mrb[20].mxu0 %v1207_v46  ;;  %v1658_v46 = vshll.u32 %v1613_v32, 16  ;;  %v1621_v32 = vsel %vm598_vm1, %v7856_v34, %v1576_v7 }
 0x2bb   : > { %5852 = vmatprep.mubr.msk.bf16.mxu0 %vm598_vm1, %v8094_v27  ;;  %1927 = vmatpush1.bf16.msra.mxu0 %v6887_v62  ;;  %v1662_v62 = vshrl.u32 %v1615_v45, 16  ;;  %v1667_v37 = vrot.slane %v1665_v44, 4  ;;  %v1689_v26 = vrot.slane %v1687_v15, 3  ;;  %v1721_v41 = vshrl.u32 %v1621_v32, 16  ;;  %v1495_v15 = vld [vmem:[#allocation2 + $0x48] sm:$0x1f] }
 0x2bc   : > { %1928 = vmatprep.subr.bf16.mxu0 %v7372_v22  ;;  %v1660_v42 = vrot.slane %v1658_v46, 4  ;;  %2679 = vperm.xlu0 %6866, %v2645_v60   ;;  %v1724_v46 = vshll.u32 %v1621_v32, 16 }
 0x2bd   : > { %v1664_v48 = vrot.slane %v1662_v62, 3  ;;  %2684 = vperm.xlu1 %6865, %v2646_v29   ;;  %v6894_v62 = vld [vmem:[#allocation8 + $0xd8] sm:$0xff]  }
 0x2be   : > { %v1661_v14 = vor.u32 %v1660_v42, %v1657_v13  ;;  %v1726_v52 = vrot.slane %v1724_v46, 4  ;;  %v2652_v42 = vld [vmem:[%s9260_s1 + $0x58] sm:$0xff] }
 0x2bf   : > { %1929 = vmatpush1.bf16.msra.mxu0 %v6888_v49  ;;  %v1258_v49 = vsel %vm1116_vm6, %v1240_v58, %v1257_v43  ;;  %v1668_v57 = vor.u32 %v1667_v37, %v1664_v48  ;;  %v2647_v58 = vld [vmem:[%s9260_s1 + $0x30] sm:$0xff]  ;;  %v2653_v48 = vld [vmem:[%s9260_s1 + $0x60] sm:$0xff] }
 0x2c0   : > { %1930 = vmatprep.subr.bf16.mxu0 %v7372_v22  ;;  %2689 = vperm.xlu0 %6866, %v2647_v58   ;;  %v2651_v43 = vld [vmem:[%s9260_s1 + $0x50] sm:$0xff] }
 0x2c1   : > { %v1669_v8 = vsel %vm1116_vm6, %v1661_v14, %v1668_v57  ;;  %2694 = vperm.xlu1 %6865, %v2648_v31  }
 0x2c2   : > { %1445 = vmatmul.mubr.bf16.gmra.mrb[24].mxu0 %v1224_v61  ;;  %v1574_v61 = vpop.permute.xlu0 %1573 }
 0x2c3   : > { %5853 = vmatprep.mubr.msk.bf16.mxu0 %vm598_vm1, %v1250_v6  ;;  %1931 = vmatpush1.bf16.msra.mxu0 %v6889_v59  ;;  %v1690_v59 = vshll.u32 %v1617_v63, 16  ;;  %v1723_v63 = vrot.slane %v1721_v41, 3 }
 0x2c4   : > { %1932 = vmatprep.subr.bf16.mxu0 %v7372_v22  ;;  %2699 = vperm.xlu0 %6866, %v2649_v28  }
 0x2c5   : > { %v1692_v6 = vrot.slane %v1690_v59, 4  ;;  %2704 = vperm.xlu1 %6865, %v2650_v47   ;;  %v1727_v59 = vor.u32 %v1726_v52, %v1723_v63  ;;  %v6901_v63 = vld [vmem:[#allocation8 + $0x110] sm:$0xff]  }
 0x2c6   : > { %v1578_v37 = vpop.permute.xlu0 %1577 }
 0x2c7   : > { %1933 = vmatpush1.bf16.msra.mxu0 %v6890_v16  ;;  %v1619_v16 = vsel %vm598_vm1, %v7846_v23, %v1574_v61  ;;  %v1693_v10 = vor.u32 %v1692_v6, %v1689_v26  ;;  %v1623_v54 = vsel %vm598_vm1, %v7860_v40, %v1578_v37  ;;  %v2654_v40 = vld [vmem:[%s9260_s1 + $0x68] sm:$0xff]  ;;  %v1580_v61 = vpop.permute.xlu1 %1579  ;;  %v1609_v26 = vrot.slane %v1495_v15, 1 }
 0x2c8   : > { %2480 = vmatprep.subr.bf16.mxu0 %v7372_v22  ;;  %v1704_v17 = vshrl.u32 %v1619_v16, 16  ;;  %v1707_v1 = vshll.u32 %v1619_v16, 16  ;;  %2709 = vperm.xlu0 %6866, %v2651_v43   ;;  %v1738_v60 = vshrl.u32 %v1623_v54, 16  ;;  %v1741_v14 = vshll.u32 %v1623_v54, 16  ;;  %v2656_v16 = vld [vmem:[%s9260_s1 + $0x78] sm:$0xff] }
 0x2c9   : > { %2714 = vperm.xlu1 %6865, %v2652_v42   ;;  %v1625_v58 = vsel %vm598_vm1, %v7875_v50, %v1580_v61  ;;  %v1801_v37 = vshll.u32 %v1609_v26, 16 }
 0x2ca   : > { %1453 = vmatmul.mubr.bf16.gmra.mrb[28].mxu0 %v1241_v35  ;;  %v6893_v35 = vld [vmem:[#allocation8 + $0xd0] sm:$0xff]   ;;  %v1709_v45 = vrot.slane %v1707_v1, 4  ;;  %v1740_v6 = vrot.slane %v1738_v60, 3  ;;  %v1755_v1 = vshrl.u32 %v1625_v58, 16  ;;  %v1758_v29 = vshll.u32 %v1625_v58, 16 }
 0x2cb   : > { %5854 = vmatprep.mubr.msk.bf16.mxu0 %vm598_vm1, %v1267_v30  ;;  %v1694_v30 = vsel %vm1116_vm6, %v1668_v57, %v1693_v10  ;;  %v6896_v57 = vld [vmem:[#allocation8 + $0xe8] sm:$0xff]   ;;  %v1803_v15 = vrot.slane %v1801_v37, 4 }
 0x2cc   : > { %2719 = vperm.xlu0 %6866, %v2653_v48   ;;  %v1798_v48 = vshrl.u32 %v1609_v26, 16 }
 0x2cd   : > { %2724 = vperm.xlu1 %6865, %v2654_v40  }
 0x2d0   : > { %2729 = vperm.xlu0 %6866, %v2655_v24  }
 0x2d1   : > { %2734 = vperm.xlu1 %6865, %v2656_v16   ;;  %v2055_v16 = vld [vmem:[#allocation2 + $0x10] sm:$0xf8] }
 0x2d2   : > { %1461 = vmatmul.mubr.bf16.gmra.mrb[32].mxu0 %v1258_v49  ;;  %v6895_v49 = vld [vmem:[#allocation8 + $0xe0] sm:$0xff]  }
 0x2d3   : > { %5867 = vmatprep.mubr.msk.bf16.mxu0 %vm598_vm1, %v7988_v18  ;;  %v6891_v18 = vld [vmem:[#allocation8 + $0xc0] sm:$0xff]  }
 0x2da   : > { %1943 = vmatmul.mubr.bf16.vlgmr.msra.gmra.mrb[4].mxu0 %v1669_v8  ;;  %v1743_v8 = vrot.slane %v1741_v14, 4 }
 0x2db   : > { %2481 = vmatpush1.bf16.msra.mxu0 %v6891_v18  ;;  %5868 = vmatprep.mubr.msk.bf16.mxu0 %vm598_vm1, %v8057_v39  ;;  %v1706_v39 = vrot.slane %v1704_v17, 3  ;;  %v6897_v18 = vld [vmem:[#allocation8 + $0xf0] sm:$0xff]  }
 0x2dc   : > { %2482 = vmatprep.subr.bf16.mxu0 %v7372_v22  ;;  %v1744_v17 = vor.u32 %v1743_v8, %v1740_v6 }
 0x2dd   : > { %v1710_v44 = vor.u32 %v1709_v45, %v1706_v39  ;;  %v6899_v39 = vld [vmem:[#allocation8 + $0x100] sm:$0xff]   ;;  %v1757_v45 = vrot.slane %v1755_v1, 3 }
 0x2de   : > { %v1745_v31 = vsel %vm1116_vm6, %v1727_v59, %v1744_v17 }
 0x2df   : > { %2483 = vmatpush1.bf16.msra.mxu0 %v6892_v55  ;;  %v1711_v13 = vsel %vm1116_vm6, %v1693_v10, %v1710_v44  ;;  %v1728_v11 = vsel %vm1116_vm6, %v1710_v44, %v1727_v59  ;;  %v6898_v55 = vld [vmem:[#allocation8 + $0xf8] sm:$0xff]   ;;  %v1610_v10 = vsel %vm1049_vm5, %v7959_v56, %v1609_v26 }
 0x2e0   : > { %2484 = vmatprep.subr.bf16.mxu0 %v7372_v22  ;;  %v1781_v28 = vshrl.u32 %v1610_v10, 16  ;;  %v1784_v7 = vshll.u32 %v1610_v10, 16  ;;  %v6902_v59 = vld [vmem:[#allocation8 + $0x118] sm:$0xff]  }
 0x2e2   : > { %1951 = vmatmul.mubr.bf16.gmra.mrb[8].mxu0 %v1694_v30  ;;  %v1760_v30 = vrot.slane %v1758_v29, 4  ;;  %v1783_v32 = vrot.slane %v1781_v28, 3  ;;  %v1786_v43 = vrot.slane %v1784_v7, 4 }
 0x2e3   : > { %5869 = vmatprep.mubr.msk.bf16.mxu0 %vm598_vm1, %v8071_v53  ;;  %2485 = vmatpush1.bf16.msra.mxu0 %v6893_v35  ;;  %v1582_v35 = vpop.permute.xlu0 %1581 }
 0x2e4   : > { %2486 = vmatprep.subr.bf16.mxu0 %v7372_v22  ;;  %v1627_v56 = vsel %vm598_vm1, %v7925_v33, %v1582_v35  ;;  %v1761_v44 = vor.u32 %v1760_v30, %v1757_v45  ;;  %v1787_v47 = vor.u32 %v1786_v43, %v1783_v32 }
 0x2e5   : > { %v1772_v41 = vshrl.u32 %v1627_v56, 16  ;;  %v1775_v46 = vshll.u32 %v1627_v56, 16 }
 0x2e6   : > { %v1762_v42 = vsel %vm1116_vm6, %v1744_v17, %v1761_v44  ;;  %v1788_v24 = vsel %vm1116_vm6, %v7990_v51, %v1787_v47 }
 0x2e7   : > { %2487 = vmatpush1.bf16.msra.mxu0 %v6894_v62  ;;  %v6900_v62 = vld [vmem:[#allocation8 + $0x108] sm:$0xff]   ;;  %v1774_v52 = vrot.slane %v1772_v41, 3  ;;  %v2138_v6 = vpop.permute.xlu0 %2137 }
 0x2e8   : > { %2488 = vmatprep.subr.bf16.mxu0 %v7372_v22 }
 0x2ea   : > { %1959 = vmatmul.mubr.bf16.gmra.mrb[12].mxu0 %v1711_v13  ;;  %v1777_v13 = vrot.slane %v1775_v46, 4 }
 0x2eb   : > { %5870 = vmatprep.mubr.msk.bf16.mxu0 %vm598_vm1, %v8081_v21  ;;  %2489 = vmatpush1.bf16.msra.mxu0 %v6895_v49  ;;  %v1584_v49 = vpop.permute.xlu1 %1583  ;;  %v2142_v29 = vpop.permute.xlu0 %2141 }
 0x2ec   : > { %2490 = vmatprep.subr.bf16.mxu0 %v7372_v22  ;;  %v1629_v54 = vsel %vm598_vm1, %v7929_v36, %v1584_v49  ;;  %v1778_v60 = vor.u32 %v1777_v13, %v1774_v52  ;;  %v7079_v52 = vld [vmem:[#allocation2 + $0x30] sm:$0xff] }
 0x2ed   : > { %v1789_v14 = vshrl.u32 %v1629_v54, 16  ;;  %v1792_v40 = vshll.u32 %v1629_v54, 16 }
 0x2ee   : > { %v1779_v8 = vsel %vm1116_vm6, %v1761_v44, %v1778_v60 }
 0x2ef   : > { %2491 = vmatpush1.bf16.msra.mxu0 %v6896_v57  ;;  %v1800_v57 = vrot.slane %v1798_v48, 3  ;;  %v1791_v26 = vrot.slane %v1789_v14, 3  ;;  %v1794_v36 = vrot.slane %v1792_v40, 4 }
 0x2f0   : > { %2492 = vmatprep.subr.bf16.mxu0 %v7372_v22 }
 0x2f1   : > { %v1804_v61 = vor.u32 %v1803_v15, %v1800_v57  ;;  %v1795_v58 = vor.u32 %v1794_v36, %v1791_v26 }
 0x2f2   : > { %1967 = vmatmul.mubr.bf16.gmra.mrb[16].mxu0 %v1728_v11 }
 0x2f3   : > { %5871 = vmatprep.mubr.msk.bf16.mxu0 %vm598_vm1, %v8094_v27  ;;  %2493 = vmatpush1.bf16.msra.mxu0 %v6897_v18  ;;  %v2140_v18 = vpop.permute.xlu1 %2139  ;;  %v1805_v11 = vsel %vm1116_vm6, %v1787_v47, %v1804_v61  ;;  %v1796_v35 = vsel %vm1116_vm6, %v1778_v60, %v1795_v58  ;;  %v2065_v60 = vld [vmem:[#allocation2 + $0x50] sm:$0x1f] }
 0x2f4   : > { %2494 = vmatprep.subr.bf16.mxu0 %v7372_v22  ;;  %v2185_v51 = vsel %vm598_vm1, %v7832_v0, %v2140_v18  ;;  %v2187_v0 = vsel %vm598_vm1, %v7846_v23, %v2142_v29  ;;  %v2179_v18 = vrot.slane %v2065_v60, 1  ;;  %v2821_v60 = vld [vmem:[#allocation11 + $0x50] sm:$0xff] }
 0x2f5   : > { %v2235_v10 = vshll.u32 %v2185_v51, 16  ;;  %v2260_v56 = vshll.u32 %v2187_v0, 16 }
 0x2f6   : > { %v2371_v29 = vshll.u32 %v2179_v18, 16 }
 0x2f7   : > { %2495 = vmatpush1.bf16.msra.mxu0 %v6898_v55  ;;  %v2232_v55 = vshrl.u32 %v2185_v51, 16  ;;  %v2237_v7 = vrot.slane %v2235_v10, 4  ;;  %v2144_v43 = vpop.permute.xlu1 %2143  ;;  %v2262_v44 = vrot.slane %v2260_v56, 4 }
 0x2f8   : > { %2496 = vmatprep.subr.bf16.mxu0 %v7372_v22  ;;  %v2189_v46 = vsel %vm598_vm1, %v7856_v34, %v2144_v43 }
 0x2f9   : > { %v2234_v28 = vrot.slane %v2232_v55, 3  ;;  %v2274_v47 = vshrl.u32 %v2189_v46, 16  ;;  %v2277_v48 = vshll.u32 %v2189_v46, 16 }
 0x2fa   : > { %1975 = vmatmul.mubr.bf16.gmra.mrb[20].mxu0 %v1745_v31  ;;  %v2257_v31 = vshrl.u32 %v2187_v0, 16 }
 0x2fb   : > { %5872 = vmatprep.mubr.msk.bf16.mxu0 %vm598_vm1, %v7998_v3  ;;  %2497 = vmatpush1.bf16.msra.mxu0 %v6899_v39  ;;  %v2238_v30 = vor.u32 %v2237_v7, %v2234_v28  ;;  %v2276_v37 = vrot.slane %v2274_v47, 3  ;;  %v2279_v49 = vrot.slane %v2277_v48, 4 }
 0x2fc   : > { %2498 = vmatprep.subr.bf16.mxu0 %v7372_v22 }
 0x2fd   : > { %v2280_v34 = vor.u32 %v2279_v49, %v2276_v37  ;;  %v2812_v37 = vld [vmem:[#allocation11 + $0x8] sm:$0xff] }
 0x2ff   : > { %2499 = vmatpush1.bf16.msra.mxu0 %v6900_v62  ;;  %v2259_v62 = vrot.slane %v2257_v31, 3 }
 0x300   : > { %2500 = vmatprep.subr.bf16.mxu0 %v7372_v22 }
 0x301   : > { %v2263_v23 = vor.u32 %v2262_v44, %v2259_v62 }
 0x302   : > { %1983 = vmatmul.mubr.bf16.gmra.mrb[24].mxu0 %v1762_v42 }
 0x303   : > { %5873 = vmatprep.mubr.msk.bf16.mxu0 %vm598_vm1, %v1788_v24  ;;  %2501 = vmatpush1.bf16.msra.mxu0 %v6901_v63  ;;  %v2264_v63 = vsel %vm1116_vm6, %v2238_v30, %v2263_v23  ;;  %v2148_v24 = vpop.permute.xlu1 %2147  ;;  %v2281_v15 = vsel %vm1116_vm6, %v2263_v23, %v2280_v34 }
 0x304   : > { %2502 = vmatprep.subr.bf16.mxu0 %v7372_v22  ;;  %v2183_v22 = vsel %vm598_vm1, %v2055_v16, %v2138_v6 }
 0x305   : > { %v2225_v17 = vshrl.u32 %v2183_v22, 16  ;;  %v2228_v1 = vshll.u32 %v2183_v22, 16 }
 0x307   : > { %2503 = vmatpush1.bf16.msra.mxu0 %v6902_v59  ;;  %v2227_v39 = vrot.slane %v2225_v17, 3  ;;  %v2230_v45 = vrot.slane %v2228_v1, 4  ;;  %v2193_v59 = vsel %vm598_vm1, %v7875_v50, %v2148_v24  ;;  %v2180_v50 = vsel %vm1049_vm5, %v2177_v2, %v2179_v18  ;;  %v2152_v58 = vpop.permute.xlu1 %2151  ;;  %v2817_v24 = vld [vmem:[#allocation11 + $0x30] sm:$0xff] }
 0x308   : > { %v2308_v40 = vshrl.u32 %v2193_v59, 16  ;;  %v2311_v61 = vshll.u32 %v2193_v59, 16  ;;  %v2351_v16 = vshrl.u32 %v2180_v50, 16  ;;  %v2354_v22 = vshll.u32 %v2180_v50, 16  ;;  %v2820_v59 = vld [vmem:[#allocation11 + $0x48] sm:$0xff] }
 0x309   : > { %v2231_v32 = vor.u32 %v2230_v45, %v2227_v39  ;;  %v2368_v2 = vshrl.u32 %v2179_v18, 16  ;;  %v2824_v18 = vld [vmem:[#allocation11 + $0x68] sm:$0xff] }
 0x30a   : > { %1991 = vmatmul.mubr.bf16.gmra.mrb[28].mxu0 %v1779_v8  ;;  %v2310_v26 = vrot.slane %v2308_v40, 3  ;;  %v2313_v36 = vrot.slane %v2311_v61, 4  ;;  %v2353_v1 = vrot.slane %v2351_v16, 3  ;;  %v2822_v40 = vld [vmem:[#allocation11 + $0x58] sm:$0xff] }
 0x30b   : > { %5874 = vmatprep.mubr.msk.bf16.mxu0 %vm598_vm1, %v1805_v11  ;;  %v2239_v41 = vsel %vm1116_vm6, %v2231_v32, %v2238_v30  ;;  %v2370_v45 = vrot.slane %v2368_v2, 3  ;;  %v2373_v30 = vrot.slane %v2371_v29, 4  ;;  %v8278_v61 = vpack.c.bf16 %v2822_v40, %v2821_v60 }
 0x30d   : > { %v2374_v43 = vor.u32 %v2373_v30, %v2370_v45 }
 0x312   : > { %1999 = vmatmul.mubr.bf16.gmra.mrb[32].mxu0 %v1796_v35 }
 0x313   : > { %5887 = vmatprep.mubr.msk.bf16.mxu0 %vm598_vm1, %v8010_v25  ;;  %v2146_v25 = vpop.permute.xlu0 %2145 }
 0x314   : > { %v2191_v13 = vsel %vm598_vm1, %v7079_v52, %v2146_v25  ;;  %v2814_v52 = vld [vmem:[#allocation11 + $0x18] sm:$0xff] }
 0x315   : > { %v2291_v42 = vshrl.u32 %v2191_v13, 16  ;;  %v2294_v54 = vshll.u32 %v2191_v13, 16 }
 0x317   : > { %v2296_v57 = vrot.slane %v2294_v54, 4 }
 0x31a   : > { %2513 = vmatmul.mubr.bf16.vlgmr.msra.gmra.mrb[4].mxu0 %v2239_v41 }
 0x31b   : > { %5888 = vmatprep.mubr.msk.bf16.mxu0 %vm598_vm1, %v8071_v53  ;;  %v2293_v53 = vrot.slane %v2291_v42, 3  ;;  %v2816_v42 = vld [vmem:[#allocation11 + $0x28] sm:$0xff] }
 0x31d   : > { %v2297_v14 = vor.u32 %v2296_v57, %v2293_v53  ;;  %v2818_v53 = vld [vmem:[#allocation11 + $0x38] sm:$0xff] }
 0x31e   : > { %v8271_v57 = vpack.c.bf16 %v2818_v53, %v2817_v24 }
 0x31f   : > { %v2298_v6 = vsel %vm1116_vm6, %v2280_v34, %v2297_v14  ;;  %v2815_v34 = vld [vmem:[#allocation11 + $0x20] sm:$0xff] }
 0x320   : > { %v8266_v54 = vpack.c.bf16 %v2816_v42, %v2815_v34 }
 0x322   : > { %2521 = vmatmul.mubr.bf16.gmra.mrb[8].mxu0 %v2264_v63  ;;  %v2813_v63 = vld [vmem:[#allocation11 + $0x10] sm:$0xff] }
 0x323   : > { %5889 = vmatprep.mubr.msk.bf16.mxu0 %vm598_vm1, %v8081_v21  ;;  %v2150_v21 = vpop.permute.xlu0 %2149  ;;  %v8263_v13 = vpack.c.bf16 %v2814_v52, %v2813_v63 }
 0x324   : > { %v2195_v8 = vsel %vm598_vm1, %v7925_v33, %v2150_v21  ;;  %v2197_v33 = vsel %vm598_vm1, %v7949_v12, %v2152_v58  ;;  %v2823_v21 = vld [vmem:[#allocation11 + $0x60] sm:$0xff] }
 0x325   : > { %v2325_v51 = vshrl.u32 %v2195_v8, 16  ;;  %v2328_v11 = vshll.u32 %v2195_v8, 16  ;;  %v2342_v7 = vshrl.u32 %v2197_v33, 16  ;;  %v2345_v35 = vshll.u32 %v2197_v33, 16 }
 0x327   : > { %v2327_v55 = vrot.slane %v2325_v51, 3  ;;  %v2330_v10 = vrot.slane %v2328_v11, 4  ;;  %v2154_v39 = vpop.permute.xlu0 %2153  ;;  %v2344_v31 = vrot.slane %v2342_v7, 3  ;;  %v2347_v56 = vrot.slane %v2345_v35, 4 }
 0x328   : > { %v2199_v12 = vsel %vm598_vm1, %v8006_v20, %v2154_v39 }
 0x329   : > { %v2331_v28 = vor.u32 %v2330_v10, %v2327_v55  ;;  %v2348_v62 = vor.u32 %v2347_v56, %v2344_v31  ;;  %v2359_v44 = vshrl.u32 %v2199_v12, 16  ;;  %v2362_v41 = vshll.u32 %v2199_v12, 16 }
 0x32a   : > { %2529 = vmatmul.mubr.bf16.gmra.mrb[12].mxu0 %v2281_v15  ;;  %v2819_v15 = vld [vmem:[#allocation11 + $0x40] sm:$0xff] }
 0x32b   : > { %5890 = vmatprep.mubr.msk.bf16.mxu0 %vm598_vm1, %v8094_v27  ;;  %v2314_v27 = vor.u32 %v2313_v36, %v2310_v26  ;;  %v2361_v23 = vrot.slane %v2359_v44, 3  ;;  %v2364_v47 = vrot.slane %v2362_v41, 4  ;;  %v2349_v48 = vsel %vm1116_vm6, %v2331_v28, %v2348_v62  ;;  %v2825_v36 = vld [vmem:[#allocation11 + $0x70] sm:$0xff] }
 0x32c   : > { %v8282_v26 = vpack.c.bf16 %v2824_v18, %v2823_v21 }
 0x32d   : > { %v2315_v17 = vsel %vm1116_vm6, %v2297_v14, %v2314_v27  ;;  %v2332_v32 = vsel %vm1116_vm6, %v2314_v27, %v2331_v28  ;;  %v2365_v20 = vor.u32 %v2364_v47, %v2361_v23  ;;  %v8275_v14 = vpack.c.bf16 %v2820_v59, %v2819_v15 }
 0x32f   : > { %v2366_v25 = vsel %vm1116_vm6, %v2348_v62, %v2365_v20 }
 0x330   : > { %v8291_v10 = vpop.permute.xlu1 %2659 }
 0x332   : > { %2537 = vmatmul.mubr.bf16.gmra.mrb[16].mxu0 %v2298_v6  ;;  %v2826_v6 = vld [vmem:[#allocation11 + $0x78] sm:$0xff] }
 0x333   : > { %5891 = vmatprep.mubr.msk.bf16.mxu0 %vm598_vm1, %v7998_v3  ;;  %v2356_v3 = vrot.slane %v2354_v22, 4  ;;  %v8286_v8 = vpack.c.bf16 %v2826_v6, %v2825_v36 }
 0x334   : > { %v8306_v7 = vpop.permute.xlu1 %2669 }
 0x335   : > { %v2357_v0 = vor.u32 %v2356_v3, %v2353_v1 }
 0x337   : > { %v2375_v46 = vsel %vm1116_vm6, %v2357_v0, %v2374_v43  ;;  %v8298_v1 = vpop.permute.xlu0 %2664 }
 0x338   : > { %v8320_v12 = vpop.permute.xlu1 %2674 }
 0x33a   : > { %2545 = vmatmul.mubr.bf16.gmra.mrb[20].mxu0 %v2315_v17  ;;  %v8293_v17 = vld [vmem:[#allocation10] ss:$0 sm:$0xff] }
 0x33b   : > { %5892 = vmatprep.mubr.msk.bf16.mxu0 %vm598_vm1, %v8016_v5  ;;  %v2358_v5 = vsel %vm1116_vm6, %v8004_v19, %v2357_v0  ;;  %v2811_v19 = vld [vmem:[#allocation11] sm:$0xff]  ;;  %v8324_v41 = vpop.permute.xlu0 %2679 }
 0x33c   : > { %v8259_v49 = vpack.c.bf16 %v2812_v37, %v2811_v19  ;;  %v8334_v19 = vpop.permute.xlu1 %2684 }
 0x33e   : > { %6561 = vmatpush3.bf16.msra.mxu1 %v8259_v49 }
 0x33f   : > { %6562 = vmatprep.subr.bf16.mxu1 %v9289_v4  ;;  %v8338_v52 = vpop.permute.xlu0 %2689 }
 0x340   : > { %v8349_v18 = vpop.permute.xlu1 %2694 }
 0x342   : > { %2553 = vmatmul.mubr.bf16.gmra.mrb[24].mxu0 %v2332_v32  ;;  %6564 = vmatpush3.bf16.msra.mxu1 %v8263_v13 }
 0x343   : > { %5893 = vmatprep.mubr.msk.bf16.mxu0 %vm598_vm1, %v2358_v5  ;;  %6565 = vmatprep.subr.bf16.mxu1 %v9289_v4 }
 0x346   : > { %6567 = vmatpush3.bf16.msra.mxu1 %v8266_v54 }
 0x347   : > { %6568 = vmatprep.subr.bf16.mxu1 %v9289_v4 }
 0x34a   : > { %2561 = vmatmul.mubr.bf16.gmra.mrb[28].mxu0 %v2349_v48  ;;  %6570 = vmatpush3.bf16.msra.mxu1 %v8271_v57 }
 0x34b   : > { %5894 = vmatprep.mubr.msk.bf16.mxu0 %vm598_vm1, %v2375_v46  ;;  %6571 = vmatprep.subr.bf16.mxu1 %v9289_v4 }
 0x34e   : > { %6573 = vmatpush3.bf16.msra.mxu1 %v8275_v14 }
 0x34f   : > { %6574 = vmatprep.subr.bf16.mxu1 %v9289_v4 }
 0x352   : > { %2569 = vmatmul.mubr.bf16.gmra.mrb[32].mxu0 %v2366_v25  ;;  %6576 = vmatpush3.bf16.msra.mxu1 %v8278_v61 }
 0x353   : > { %6577 = vmatprep.subr.bf16.mxu1 %v9289_v4 }
 0x356   : > { %6579 = vmatpush3.bf16.msra.mxu1 %v8282_v26 }
 0x357   : > { %6580 = vmatprep.subr.bf16.mxu1 %v9289_v4 }
 0x35a   : > { %6582 = vmatpush3.bf16.msra.mxu1 %v8286_v8 }
 0x35b   : > { %6583 = vmatprep.subr.bf16.mxu1 %v9289_v4 }
 0x3ed   : > { %v2514_v50 = vpop.f32.mrb[4].mxu0 }
 0x3ee   : > { %v2516_v27 = vpop.f32.mrb[5].mxu0  ;;  %v8301_v2 = vadd.f32 %v8293_v17, %v2514_v50 }
 0x3ef   : > { %v2517_v51 = vpop.f32.mrb[6].mxu0 }
 0x3f0   : > { %v2519_v11 = vpop.f32.mrb[7].mxu0  ;;  %v8296_v33 = vadd.f32 %v8293_v17, %v2517_v51  ;;  %v2737_v45 = vmul.f32 %v8301_v2, %v8291_v10  ;;  %v8355_v51 = vpop.permute.xlu0 %2699 }
 0x3f2   : > { %v2738_v0 = vmul.f32 %v8296_v33, %v8298_v1  ;;  %v2774_v50 = vmul.f32 %v8301_v2, %v2737_v45 }
 0x3f4   : > { %v2753_v56 = vadd.f32 %v2738_v0, %v2737_v45  ;;  %v2775_v21 = vmul.f32 %v8296_v33, %v2738_v0 }
 0x3f5   : > { %v2522_v16 = vpop.f32.mrb[8].mxu0 }
 0x3f6   : > { %v2524_v22 = vpop.f32.mrb[9].mxu0  ;;  %v8304_v29 = vadd.f32 %v8293_v17, %v2522_v16 }
 0x3f7   : > { %v2525_v58 = vpop.f32.mrb[10].mxu0  ;;  %v2790_v22 = vadd.f32 %v2775_v21, %v2774_v50 }
 0x3f8   : > { %v2527_v55 = vpop.f32.mrb[11].mxu0  ;;  %v2739_v30 = vmul.f32 %v8304_v29, %v8306_v7  ;;  %v8315_v31 = vadd.f32 %v8293_v17, %v2525_v58 }
 0x3fa   : > { %v2754_v43 = vadd.f32 %v2753_v56, %v2739_v30  ;;  %v2740_v62 = vmul.f32 %v8315_v31, %v8320_v12  ;;  %v2776_v27 = vmul.f32 %v8304_v29, %v2739_v30 }
 0x3fc   : > { %v2755_v20 = vadd.f32 %v2754_v43, %v2740_v62  ;;  %v2777_v0 = vmul.f32 %v8315_v31, %v2740_v62 }
 0x3fd   : > { %v2530_v3 = vpop.f32.mrb[12].mxu0 }
 0x3fe   : > { %v2532_v28 = vpop.f32.mrb[13].mxu0  ;;  %v8318_v32 = vadd.f32 %v8293_v17, %v2530_v3 }
 0x3ff   : > { %v2533_v35 = vpop.f32.mrb[14].mxu0 }
 0x400   : > { %v2535_v39 = vpop.f32.mrb[15].mxu0  ;;  %v2741_v23 = vmul.f32 %v8318_v32, %v8324_v41  ;;  %v8329_v47 = vadd.f32 %v8293_v17, %v2533_v35  ;;  %v2791_v35 = vadd.f32 %v2790_v22, %v2776_v27 }
 0x401   : > { %v8366_v39 = vpop.permute.xlu1 %2704 }
 0x402   : > { %v2756_v37 = vadd.f32 %v2755_v20, %v2741_v23  ;;  %v2742_v63 = vmul.f32 %v8329_v47, %v8334_v19  ;;  %v2778_v43 = vmul.f32 %v8318_v32, %v2741_v23  ;;  %v2792_v20 = vadd.f32 %v2791_v35, %v2777_v0 }
 0x404   : > { %v2757_v59 = vadd.f32 %v2756_v37, %v2742_v63  ;;  %v2793_v37 = vadd.f32 %v2792_v20, %v2778_v43 }
 0x405   : > { %v2538_v5 = vpop.f32.mrb[16].mxu0 }
 0x406   : > { %v2540_v44 = vpop.f32.mrb[17].mxu0  ;;  %v8332_v25 = vadd.f32 %v8293_v17, %v2538_v5 }
 0x407   : > { %v2541_v46 = vpop.f32.mrb[18].mxu0  ;;  %v8371_v44 = vpop.permute.xlu0 %2709 }
 0x408   : > { %v2543_v48 = vpop.f32.mrb[19].mxu0  ;;  %v2743_v42 = vmul.f32 %v8332_v25, %v8338_v52  ;;  %v8343_v24 = vadd.f32 %v8293_v17, %v2541_v46 }
 0x40a   : > { %v2758_v36 = vadd.f32 %v2757_v59, %v2743_v42  ;;  %v2744_v6 = vmul.f32 %v8343_v24, %v8349_v18  ;;  %v2780_v27 = vmul.f32 %v8332_v25, %v2743_v42 }
 0x40c   : > { %v2759_v55 = vadd.f32 %v2758_v36, %v2744_v6  ;;  %v8386_v36 = vpop.permute.xlu0 %2719 }
 0x40d   : > { %v2546_v34 = vpop.f32.mrb[20].mxu0 }
 0x40e   : > { %v2548_v53 = vpop.f32.mrb[21].mxu0  ;;  %v8346_v60 = vadd.f32 %v8293_v17, %v2546_v34  ;;  %v8378_v34 = vpop.permute.xlu1 %2714 }
 0x40f   : > { %v2549_v15 = vpop.f32.mrb[22].mxu0 }
 0x410   : > { %v2551_v40 = vpop.f32.mrb[23].mxu0  ;;  %v2745_v11 = vmul.f32 %v8346_v60, %v8355_v51  ;;  %v8360_v16 = vadd.f32 %v8293_v17, %v2549_v15  ;;  %v2779_v15 = vmul.f32 %v8329_v47, %v2742_v63 }
 0x412   : > { %v2760_v30 = vadd.f32 %v2759_v55, %v2745_v11  ;;  %v2746_v56 = vmul.f32 %v8360_v16, %v8366_v39  ;;  %v2794_v55 = vadd.f32 %v2793_v37, %v2779_v15  ;;  %v8394_v35 = vpop.permute.xlu1 %2724  ;;  %v2782_v42 = vmul.f32 %v8346_v60, %v2745_v11 }
 0x414   : > { %v2761_v62 = vadd.f32 %v2760_v30, %v2746_v56  ;;  %v2795_v0 = vadd.f32 %v2794_v55, %v2780_v27  ;;  %v2783_v11 = vmul.f32 %v8360_v16, %v2746_v56 }
 0x415   : > { %v2554_v58 = vpop.f32.mrb[24].mxu0 }
 0x416   : > { %v8363_v3 = vadd.f32 %v8293_v17, %v2554_v58  ;;  %v2556_v28 = vpop.f32.mrb[25].mxu0  ;;  %v8410_v27 = vpop.permute.xlu1 %2734 }
 0x417   : > { %v2557_v45 = vpop.f32.mrb[26].mxu0  ;;  %9331 = vst [vmem:[#allocation31_spill] sm:$0xff] %v8410_v27 }
 0x418   : > { %v2559_v5 = vpop.f32.mrb[27].mxu0  ;;  %v2747_v46 = vmul.f32 %v8363_v3, %v8371_v44  ;;  %v8376_v48 = vadd.f32 %v8293_v17, %v2557_v45  ;;  %v2781_v45 = vmul.f32 %v8343_v24, %v2744_v6 }
 0x41a   : > { %v2762_v59 = vadd.f32 %v2761_v62, %v2747_v46  ;;  %v2748_v23 = vmul.f32 %v8376_v48, %v8378_v34  ;;  %v2796_v15 = vadd.f32 %v2795_v0, %v2781_v45 }
 0x41c   : > { %v2763_v28 = vadd.f32 %v2762_v59, %v2748_v23  ;;  %v2785_v4 = vmul.f32 %v8376_v48, %v2748_v23 }
 0x41d   : > { %v2562_v53 = vpop.f32.mrb[28].mxu0 }
 0x41e   : > { %v8384_v40 = vadd.f32 %v8293_v17, %v2562_v53  ;;  %v2564_v21 = vpop.f32.mrb[29].mxu0  ;;  %v8403_v53 = vpop.permute.xlu0 %2729 }
 0x41f   : > { %v2565_v50 = vpop.f32.mrb[30].mxu0  ;;  %9330 = vst [vmem:[#allocation30_spill] sm:$0xff] %v8403_v53 }
 0x420   : > { %v2749_v22 = vmul.f32 %v8384_v40, %v8386_v36  ;;  %v8392_v58 = vadd.f32 %v8293_v17, %v2565_v50  ;;  %v2567_v63 = vpop.f32.mrb[31].mxu0 }
 0x421   : > { %v2797_v63 = vadd.f32 %v2796_v15, %v2782_v42 }
 0x422   : > { %v2764_v30 = vadd.f32 %v2763_v28, %v2749_v22  ;;  %v2750_v5 = vmul.f32 %v8392_v58, %v8394_v35 }
 0x423   : > { %v2798_v45 = vadd.f32 %v2797_v63, %v2783_v11  ;;  %v9332_v63 = vmov 0.0   ;;  %v9333_v11 = vmov 0.0|0.0  }
 0x424   : > { %v2765_v59 = vadd.f32 %v2764_v30, %v2750_v5  ;;  %v2787_v56 = vmul.f32 %v8392_v58, %v2750_v5 }
 0x425   : > { %v2570_v43 = vpop.f32.mrb[32].mxu0 }
 0x426   : > { %v8401_v20 = vadd.f32 %v8293_v17, %v2570_v43  ;;  %v2572_v62 = vpop.f32.mrb[33].mxu0  ;;  %v2784_v43 = vmul.f32 %v8363_v3, %v2747_v46 }
 0x427   : > { %v2573_v37 = vpop.f32.mrb[34].mxu0 }
 0x428   : > { %v2751_v21 = vmul.f32 %v8401_v20, %v8403_v53  ;;  %v8408_v6 = vadd.f32 %v8293_v17, %v2573_v37  ;;  %v2575_v50 = vpop.f32.mrb[35].mxu0  ;;  %v2799_v62 = vadd.f32 %v2798_v45, %v2784_v43  ;;  %v2786_v37 = vmul.f32 %v8384_v40, %v2749_v22  ;;  %v6910_v43 = vld [vmem:[#allocation16 + $0x188] sm:$0xff]   ;;  %v6914_v45 = vld [vmem:[#allocation16 + $0x190] sm:$0xff]  }
 0x42a   : > { %v2766_v55 = vadd.f32 %v2765_v59, %v2751_v21  ;;  %v2752_v28 = vmul.f32 %v8408_v6, %v8410_v27  ;;  %v2800_v9 = vadd.f32 %v2799_v62, %v2785_v4  ;;  %v2788_v27 = vmul.f32 %v8401_v20, %v2751_v21  ;;  %v6904_v21 = vld [vmem:[#allocation16] sm:$0xff]   ;;  %v6917_v62 = vld [vmem:[#allocation16 + $0x1d8] sm:$0xff]  }
 0x42c   : > { %v2767_v0 = vadd.f32 %v2766_v55, %v2752_v28  ;;  %v2801_v15 = vadd.f32 %v2800_v9, %v2786_v37  ;;  %v2789_v22 = vmul.f32 %v8408_v6, %v2752_v28  ;;  %v6907_v55 = vld [vmem:[#allocation16 + $0x48] sm:$0xff]   ;;  %v6918_v37 = vld [vmem:[#allocation16 + $0x198] sm:$0xff]  }
 0x42d   : > { %v6908_v28 = vld [vmem:[#allocation16 + $0x8] sm:$0xff]  }
 0x42e   : > { %v2768_v30 = vrot.slane %v2767_v0, 4  ;;  %v2802_v46 = vadd.f32 %v2801_v15, %v2787_v56  ;;  %v6920_v15 = vld [vmem:[#allocation16 + $0x20] sm:$0xff]  }
 0x42f   : > { %v6922_v56 = vld [vmem:[#allocation16 + $0x1a0] sm:$0xff]  }
 0x430   : > { %v2769_v17 = vadd.f32 %v2768_v30, %v2767_v0  ;;  %v2803_v23 = vadd.f32 %v2802_v46, %v2788_v27  ;;  %v6906_v27 = vld [vmem:[#allocation16 + $0x180] sm:$0xff]   ;;  %v6913_v0 = vld [vmem:[#allocation16 + $0x1d0] sm:$0xff]   ;;  %v6915_v30 = vld [vmem:[#allocation16 + $0x58] sm:$0xff]  }
 0x431   : > { %v6925_v46 = vld [vmem:[#allocation16 + $0x1e8] sm:$0xff]  }
 0x432   : > { %v2770_v50 = vrot.slane %v2769_v17, 2  ;;  %v2804_v4 = vadd.f32 %v2803_v23, %v2789_v22  ;;  %v6926_v23 = vld [vmem:[#allocation16 + $0x1a8] sm:$0xff]   ;;  %v6927_v22 = vld [vmem:[#allocation16 + $0x70] sm:$0xff]  }
 0x434   : > { %v2771_v42 = vadd.f32 %v2770_v50, %v2769_v17  ;;  %v2805_v9 = vrot.slane %v2804_v4, 4  ;;  %v6916_v17 = vld [vmem:[#allocation16 + $0x18] sm:$0xff]   ;;  %v6919_v50 = vld [vmem:[#allocation16 + $0x60] sm:$0xff]  }
 0x436   : > { %v2772_v59 = vrot.slane %v2771_v42, 1 }
 0x438   : > { %v2773_v53 = vadd.f32 %v2772_v59, %v2771_v42  ;;  %v6921_v42 = vld [vmem:[#allocation16 + $0x1e0] sm:$0xff]   ;;  %v6923_v59 = vld [vmem:[#allocation16 + $0x68] sm:$0xff]  }
 0x43a   : > { %6386 = vmatmul.mubr.f32.vlgmr.msra.gmra.mrb[2].mxu1 %v2773_v53  ;;  %v6903_v53 = vld [vmem:[#allocation16 + $0x40] sm:$0xff]  }
 0x43b   : > { %6585 = vmatpush3.bf16.msra.mxu1 %v8259_v49  ;;  %6420 = vmatprep.mubr.msk.f32.mxu1 %vm7370_vm2, %v9332_v63  ;;  %v2806_v49 = vadd.f32 %v2805_v9, %v2804_v4  ;;  %v6924_v63 = vld [vmem:[#allocation16 + $0x28] sm:$0xff]   ;;  %v6928_v4 = vld [vmem:[#allocation16 + $0x30] sm:$0xff]  }
 0x43c   : > { %6586 = vmatprep.subr.bf16.mxu1 %v9333_v11  ;;  %v6930_v9 = vld [vmem:[#allocation16 + $0x1b0] sm:$0xff]  }
 0x43d   : > { %v2807_v5 = vrot.slane %v2806_v49, 2 }
 0x43f   : > { %6588 = vmatpush3.bf16.msra.mxu1 %v8263_v13  ;;  %v2808_v13 = vadd.f32 %v2807_v5, %v2806_v49  ;;  %v6931_v49 = vld [vmem:[#allocation16 + $0x78] sm:$0xff]  }
 0x440   : > { %6589 = vmatprep.subr.bf16.mxu1 %v9333_v11  ;;  %v6933_v5 = vld [vmem:[#allocation16 + $0x1f8] sm:$0xff]  }
 0x443   : > { %6591 = vmatpush3.bf16.msra.mxu1 %v8266_v54  ;;  %v2809_v54 = vrot.slane %v2808_v13, 1 }
 0x444   : > { %6592 = vmatprep.subr.bf16.mxu1 %v9333_v11 }
 0x447   : > { %6594 = vmatpush3.bf16.msra.mxu1 %v8271_v57  ;;  %v2810_v57 = vadd.f32 %v2809_v54, %v2808_v13  ;;  %v6932_v13 = vld [vmem:[#allocation16 + $0x38] sm:$0xff]  }
 0x448   : > { %6595 = vmatprep.subr.bf16.mxu1 %v9333_v11  ;;  %v6934_v54 = vld [vmem:[#allocation16 + $0x1b8] sm:$0xff]  }
 0x44b   : > { %6597 = vmatpush3.bf16.msra.mxu1 %v8275_v14  ;;  %v6905_v14 = vld [vmem:[#allocation16 + $0x1c0] sm:$0xff]  }
 0x44c   : > { %6598 = vmatprep.subr.bf16.mxu1 %v9333_v11  ;;  %6227 = vmatprep.subr.bf16.mxu0 %v6905_v14 }
 0x44d   : > { %6228 = vmatpush3.bf16.msra.mxu0 %v6906_v27 }
 0x44f   : > { %6600 = vmatpush3.bf16.msra.mxu1 %v8278_v61  ;;  %v6909_v61 = vld [vmem:[#allocation16 + $0x1c8] sm:$0xff]  }
 0x450   : > { %6601 = vmatprep.subr.bf16.mxu1 %v9333_v11  ;;  %6229 = vmatprep.subr.bf16.mxu0 %v6909_v61 }
 0x451   : > { %6230 = vmatpush3.bf16.msra.mxu0 %v6910_v43 }
 0x452   : > { %6231 = vmatprep.subr.bf16.mxu0 %v6913_v0  ;;  %v2974_v0 = vld [vmem:[#allocation13] sm:$0x1] }
 0x453   : > { %6603 = vmatpush3.bf16.msra.mxu1 %v8282_v26  ;;  %v6911_v26 = vld [vmem:[#allocation16 + $0x50] sm:$0xff]  }
 0x454   : > { %6604 = vmatprep.subr.bf16.mxu1 %v9333_v11  ;;  %v6929_v11 = vld [vmem:[#allocation16 + $0x1f0] sm:$0xff]  }
 0x455   : > { %6232 = vmatpush3.bf16.msra.mxu0 %v6914_v45 }
 0x456   : > { %6233 = vmatprep.subr.bf16.mxu0 %v6917_v62 }
 0x457   : > { %6606 = vmatpush3.bf16.msra.mxu1 %v8286_v8  ;;  %v6912_v8 = vld [vmem:[#allocation16 + $0x10] sm:$0xff]  }
 0x458   : > { %6067 = vmatprep.subr.bf16.mxu1 %v6903_v53 }
 0x459   : > { %6234 = vmatpush3.bf16.msra.mxu0 %v6918_v37 }
 0x45a   : > { %6421 = vmatmul.mubr.f32.vlgmr.msra.gmra.mrb[4].mxu1 %v2810_v57  ;;  %6235 = vmatprep.subr.bf16.mxu0 %v6921_v42  ;;  %v8438_v57 = vld [vmem:[#allocation16 + $0x80] sm:$0xff]  }
 0x45b   : > { %6068 = vmatpush3.bf16.msra.mxu1 %v6904_v21 }
 0x45c   : > { %6069 = vmatprep.subr.bf16.mxu1 %v6907_v55 }
 0x45d   : > { %6236 = vmatpush3.bf16.msra.mxu0 %v6922_v56 }
 0x45e   : > { %6237 = vmatprep.subr.bf16.mxu0 %v6925_v46 }
 0x45f   : > { %6070 = vmatpush3.bf16.msra.mxu1 %v6908_v28 }
 0x460   : > { %6071 = vmatprep.subr.bf16.mxu1 %v6911_v26 }
 0x461   : > { %6238 = vmatpush3.bf16.msra.mxu0 %v6926_v23 }
 0x462   : > { %6239 = vmatprep.subr.bf16.mxu0 %v6929_v11 }
 0x463   : > { %6072 = vmatpush3.bf16.msra.mxu1 %v6912_v8 }
 0x464   : > { %6073 = vmatprep.subr.bf16.mxu1 %v6915_v30  ;;  %v2976_v30 = vld [vmem:[#allocation14] sm:$0x1] }
 0x465   : > { %6240 = vmatpush3.bf16.msra.mxu0 %v6930_v9 }
 0x466   : > { %6241 = vmatprep.subr.bf16.mxu0 %v6933_v5 }
 0x467   : > { %6074 = vmatpush3.bf16.msra.mxu1 %v6916_v17 }
 0x468   : > { %6075 = vmatprep.subr.bf16.mxu1 %v6919_v50 }
 0x469   : > { %6242 = vmatpush3.bf16.msra.mxu0 %v6934_v54 }
 0x46b   : > { %6076 = vmatpush3.bf16.msra.mxu1 %v6920_v15 }
 0x46c   : > { %6077 = vmatprep.subr.bf16.mxu1 %v6923_v59 }
 0x46f   : > { %6078 = vmatpush3.bf16.msra.mxu1 %v6924_v63 }
 0x470   : > { %6079 = vmatprep.subr.bf16.mxu1 %v6927_v22 }
 0x473   : > { %6080 = vmatpush3.bf16.msra.mxu1 %v6928_v4 }
 0x474   : > { %6081 = vmatprep.subr.bf16.mxu1 %v6931_v49 }
 0x477   : > { %6082 = vmatpush3.bf16.msra.mxu1 %v6932_v13 }
 0x478   : > { %6423 = vmatprep.subr.bf16.mxu1 %v8438_v57 }
 0x50d   : > { %v2893_v53 = vpop.f32.mrb[2].mxu1 }
 0x50e   : > { %v6387_v21 = vpop.f32.mrb[3].mxu1  ;;  %v2898_v14 = vmul.f32 0.00390625, %v2893_v53 }
 0x510   : > { %v2970_v55 = vmul.f32 %v2898_v14, %v2898_v14 }
 0x52d   : > { %v2965_v27 = vpop.f32.mrb[4].mxu1 }
 0x52e   : > { %v2969_v61 = vmul.f32 0.00390625, %v2965_v27  ;;  %v6422_v28 = vpop.f32.mrb[5].mxu1 }
 0x530   : > { %v2971_v43 = vsub.f32 %v2969_v61, %v2970_v55 }
 0x532   : > { %v2972_v26 = vadd.f32 1e-05, %v2971_v43 }
 0x534   : > { %7013 = vrsqrt.f32 %v2972_v26 }
 0x53e   : > { %v7014_v8 = vpop.eup %7013 }
 0x53f   : > { %v2975_v45 = vmul.f32 %v7014_v8, %v2974_v0 }
 0x541   : > { %v2977_v62 = vmul.f32 %v2975_v45, %v2898_v14  ;;  %v2982_v17 = vrot.slane %v2975_v45, %v7782_v38 }
 0x543   : > { %v2978_v37 = vsub.f32 %v2976_v30, %v2977_v62  ;;  %v2983_v50 = vmul.f32 %v8301_v2, %v2982_v17  ;;  %v2984_v42 = vmul.f32 %v8296_v33, %v2982_v17  ;;  %v2985_v15 = vmul.f32 %v8304_v29, %v2982_v17 }
 0x544   : > { %v2986_v56 = vmul.f32 %v8315_v31, %v2982_v17  ;;  %v2987_v46 = vmul.f32 %v8318_v32, %v2982_v17  ;;  %v2988_v63 = vmul.f32 %v8329_v47, %v2982_v17  ;;  %v2989_v23 = vmul.f32 %v8332_v25, %v2982_v17 }
 0x545   : > { %v3003_v59 = vrot.slane %v2978_v37, %v7782_v38  ;;  %v2990_v22 = vmul.f32 %v8343_v24, %v2982_v17  ;;  %v2991_v11 = vmul.f32 %v8346_v60, %v2982_v17  ;;  %v2992_v2 = vmul.f32 %v8360_v16, %v2982_v17 }
 0x546   : > { %v2993_v33 = vmul.f32 %v8363_v3, %v2982_v17  ;;  %v2994_v13 = vmul.f32 %v8376_v48, %v2982_v17  ;;  %v2995_v54 = vmul.f32 %v8384_v40, %v2982_v17  ;;  %v2996_v14 = vmul.f32 %v8392_v58, %v2982_v17 }
 0x547   : > { %v8454_v4 = vadd.f32 %v3003_v59, %v2983_v50  ;;  %v8456_v29 = vadd.f32 %v3003_v59, %v2984_v42  ;;  %v8458_v31 = vadd.f32 %v3003_v59, %v2985_v15  ;;  %v8460_v38 = vadd.f32 %v3003_v59, %v2986_v56 }
 0x548   : > { %v8462_v32 = vadd.f32 %v3003_v59, %v2987_v46  ;;  %v8464_v47 = vadd.f32 %v3003_v59, %v2988_v63  ;;  %v8466_v25 = vadd.f32 %v3003_v59, %v2989_v23  ;;  %v8468_v24 = vadd.f32 %v3003_v59, %v2990_v22 }
 0x549   : > { %v5895_v60 = vmul.f32 -1.442695, %v8454_v4  ;;  %v5896_v16 = vmul.f32 -1.442695, %v8456_v29  ;;  %v5897_v3 = vmul.f32 -1.442695, %v8458_v31  ;;  %v8473_v9 = vadd.f32 %v3003_v59, %v2991_v11 }
 0x54a   : > { %v5898_v49 = vmul.f32 -1.442695, %v8460_v38  ;;  %v8476_v5 = vadd.f32 %v3003_v59, %v2992_v2  ;;  %v5899_v53 = vmul.f32 -1.442695, %v8462_v32  ;;  %v5900_v21 = vmul.f32 -1.442695, %v8464_v47 }
 0x54b   : > { %7015 = vpow2.f32 %v5895_v60  ;;  %v5901_v27 = vmul.f32 -1.442695, %v8466_v25  ;;  %v8484_v55 = vadd.f32 %v3003_v59, %v2993_v33  ;;  %v8486_v61 = vadd.f32 %v3003_v59, %v2994_v13  ;;  %v3200_v13 = vld [vmem:[#allocation3] sm:$0xf8] }
 0x54c   : > { %7017 = vpow2.f32 %v5896_v16  ;;  %v8488_v28 = vadd.f32 %v3003_v59, %v2995_v54  ;;  %v8490_v48 = vadd.f32 %v3003_v59, %v2996_v14  ;;  %v2997_v40 = vmul.f32 %v8401_v20, %v2982_v17  ;;  %v8504_v16 = vld [vmem:[#allocation3] sm:$0xf0] }
 0x54d   : > { %7019 = vpow2.f32 %v5897_v3  ;;  %v5902_v43 = vmul.f32 -1.442695, %v8468_v24  ;;  %v2998_v26 = vmul.f32 %v8408_v6, %v2982_v17  ;;  %v5903_v58 = vmul.f32 -1.442695, %v8473_v9 }
 0x54e   : > { %7021 = vpow2.f32 %v5898_v49  ;;  %v8496_v0 = vadd.f32 %v3003_v59, %v2997_v40  ;;  %v5904_v8 = vmul.f32 -1.442695, %v8476_v5  ;;  %v5905_v30 = vmul.f32 -1.442695, %v8484_v55 }
 0x54f   : > { %7023 = vpow2.f32 %v5899_v53  ;;  %v8499_v45 = vadd.f32 %v3003_v59, %v2998_v26  ;;  %v5906_v20 = vmul.f32 -1.442695, %v8486_v61  ;;  %v5907_v62 = vmul.f32 -1.442695, %v8488_v28 }
 0x550   : > { %7025 = vpow2.f32 %v5900_v21 }
 0x551   : > { %7027 = vpow2.f32 %v5901_v27  ;;  %v3214_v27 = vshll.u32 %v8504_v16, 16 }
 0x552   : > { %7029 = vpow2.f32 %v5902_v43  ;;  %v5908_v43 = vmul.f32 -1.442695, %v8490_v48 }
 0x553   : > { %7031 = vpow2.f32 %v5903_v58  ;;  %v3363_v58 = vshrl.u32 %v3200_v13, 16 }
 0x554   : > { %7033 = vpow2.f32 %v5904_v8  ;;  %v3366_v8 = vshll.u32 %v3200_v13, 16 }
 0x555   : > { %v7016_v6 = vpop.eup %7015  ;;  %7035 = vpow2.f32 %v5905_v30 }
 0x556   : > { %v7018_v17 = vpop.eup %7017  ;;  %v3069_v37 = vadd.f32 1.0, %v7016_v6  ;;  %7037 = vpow2.f32 %v5906_v20 }
 0x557   : > { %v7020_v50 = vpop.eup %7019  ;;  %v3070_v42 = vadd.f32 1.0, %v7018_v17  ;;  %7039 = vpow2.f32 %v5907_v62 }
 0x558   : > { %v7022_v15 = vpop.eup %7021  ;;  %v3071_v56 = vadd.f32 1.0, %v7020_v50  ;;  %7041 = vrcp.f32 %v3069_v37  ;;  %v3212_v50 = vshrl.u32 %v8504_v16, 16 }
 0x559   : > { %v7024_v59 = vpop.eup %7023  ;;  %v3072_v46 = vadd.f32 1.0, %v7022_v15  ;;  %7043 = vrcp.f32 %v3070_v42  ;;  %v3216_v42 = vrot.slane %v3214_v27, 1 }
 0x55a   : > { %v7026_v63 = vpop.eup %7025  ;;  %7045 = vrcp.f32 %v3071_v56  ;;  %v3073_v23 = vadd.f32 1.0, %v7024_v59 }
 0x55b   : > { %v7028_v22 = vpop.eup %7027  ;;  %7047 = vrcp.f32 %v3072_v46  ;;  %v3074_v11 = vadd.f32 1.0, %v7026_v63  ;;  %v8513_v46 = vrot.slane %v3363_v58, 3  ;;  %v8515_v63 = vrot.slane %v3366_v8, 4 }
 0x55c   : > { %v7030_v2 = vpop.eup %7029  ;;  %v3075_v33 = vadd.f32 1.0, %v7028_v22  ;;  %7049 = vrcp.f32 %v3073_v23 }
 0x55d   : > { %v7032_v60 = vpop.eup %7031  ;;  %v3076_v3 = vadd.f32 1.0, %v7030_v2  ;;  %7051 = vrcp.f32 %v3074_v11 }
 0x55e   : > { %v7034_v49 = vpop.eup %7033  ;;  %7053 = vrcp.f32 %v3075_v33  ;;  %v3077_v54 = vadd.f32 1.0, %v7032_v60 }
 0x55f   : > { %v7036_v53 = vpop.eup %7035  ;;  %7055 = vrcp.f32 %v3076_v3  ;;  %v3078_v21 = vadd.f32 1.0, %v7034_v49  ;;  %v8522_v3 = vor.u32 %v3216_v42, %v3212_v50 }
 0x560   : > { %v7038_v14 = vpop.eup %7037  ;;  %7057 = vrcp.f32 %v3077_v54  ;;  %v3079_v40 = vadd.f32 1.0, %v7036_v53  ;;  %v5909_v54 = vmul.f32 -1.442695, %v8496_v0 }
 0x561   : > { %v7040_v26 = vpop.eup %7039  ;;  %7059 = vrcp.f32 %v3078_v21  ;;  %v3080_v30 = vadd.f32 1.0, %v7038_v14 }
 0x562   : > { %v7042_v20 = vpop.eup %7041  ;;  %7061 = vrcp.f32 %v3079_v40  ;;  %v3081_v33 = vadd.f32 1.0, %v7040_v26 }
 0x563   : > { %v7044_v62 = vpop.eup %7043  ;;  %v3117_v6 = vmul.f32 %v7042_v20, %v8454_v4  ;;  %7063 = vrcp.f32 %v3080_v30 }
 0x564   : > { %v7046_v17 = vpop.eup %7045  ;;  %v3118_v37 = vmul.f32 %v7044_v62, %v8456_v29  ;;  %7065 = vpow2.f32 %v5908_v43  ;;  %v5910_v43 = vmul.f32 -1.442695, %v8499_v45 }
 0x565   : > { %v7048_v15 = vpop.eup %7047  ;;  %v3119_v56 = vmul.f32 %v7046_v17, %v8458_v31  ;;  %v3133_v59 = vmul.f32 %v3117_v6, %v8291_v10  ;;  %7067 = vrcp.f32 %v3081_v33 }
 0x566   : > { %v7050_v23 = vpop.eup %7049  ;;  %v3120_v4 = vmul.f32 %v7048_v15, %v8460_v38  ;;  %v3134_v22 = vmul.f32 %v3118_v37, %v8298_v1  ;;  %v3369_v38 = vor.u32 %v8515_v63, %v8513_v46  ;;  %7069 = vpow2.f32 %v5909_v54 }
 0x567   : > { %v7052_v11 = vpop.eup %7051  ;;  %v3135_v29 = vmul.f32 %v3119_v56, %v8306_v7  ;;  %v3121_v2 = vmul.f32 %v7050_v23, %v8462_v32  ;;  %7071 = vpow2.f32 %v5910_v43 }
 0x568   : > { %v7054_v60 = vpop.eup %7053  ;;  %v3136_v31 = vmul.f32 %v3120_v4, %v8320_v12  ;;  %v3149_v10 = vpack.c.bf16 %v3134_v22, %v3133_v59  ;;  %v3122_v49 = vmul.f32 %v7052_v11, %v8464_v47 }
 0x569   : > { %v7056_v13 = vpop.eup %7055  ;;  %v3123_v1 = vmul.f32 %v7054_v60, %v8466_v25  ;;  %v3137_v7 = vmul.f32 %v3121_v2, %v8324_v41 }
 0x56a   : > { %v7058_v32 = vpop.eup %7057  ;;  %v3150_v53 = vpack.c.bf16 %v3136_v31, %v3135_v29  ;;  %v3166_v21 = vrot.slane %v3149_v10, 4  ;;  %v3124_v12 = vmul.f32 %v7056_v13, %v8468_v24  ;;  %v3138_v14 = vmul.f32 %v3122_v49, %v8334_v19 }
 0x56b   : > { %v7060_v27 = vpop.eup %7059  ;;  %v3139_v47 = vmul.f32 %v3123_v1, %v8338_v52  ;;  %v3125_v40 = vmul.f32 %v7058_v32, %v8473_v9  ;;  %v3291_v52 = vrot.slane %v8504_v16, 1  ;;  %v6939_v16 = vld [vmem:[#allocation16 + $0xa0] sm:$0xff]  }
 0x56c   : > { %v7062_v25 = vpop.eup %7061  ;;  %v3167_v26 = vrot.slane %v3150_v53, 4  ;;  %3190 = vst [vmem:[#allocation3 + $0x8] sm:$0xf0] %v3166_v21  ;;  %v3140_v41 = vmul.f32 %v3124_v12, %v8349_v18  ;;  %v3151_v58 = vpack.c.bf16 %v3138_v14, %v3137_v7  ;;  %v3126_v8 = vmul.f32 %v7060_v27, %v8476_v5 }
 0x56d   : > { %v7064_v30 = vpop.eup %7063  ;;  %v3141_v24 = vmul.f32 %v3125_v40, %v8355_v51  ;;  %v3127_v19 = vmul.f32 %v7062_v25, %v8484_v55 }
 0x56e   : > { %v7066_v9 = vpop.eup %7065  ;;  %v8541_v20 = vsel %vm3165_vm7, %v3166_v21, %v3167_v26  ;;  %v3152_v62 = vpack.c.bf16 %v3140_v41, %v3139_v47  ;;  %v3169_v6 = vrot.slane %v3151_v58, 4  ;;  %v3142_v17 = vmul.f32 %v3126_v8, %v8366_v39 }
 0x56f   : > { %3191 = vst [vmem:[#allocation3 + $0x10] sm:$0xff] %v8541_v20  ;;  %v3227_v18 = vshll.u32 %v8541_v20, 16  ;;  %v3231_v5 = vshrl.u32 %v8541_v20, 16  ;;  %v3128_v51 = vmul.f32 %v7064_v30, %v8486_v61  ;;  %v8552_v42 = vmul.f32 %v3127_v19, %v8371_v44  ;;  %v8581_v13 = vpop.eup %7067 }
 0x570   : > { %v8549_v55 = vsel %vm3165_vm7, %v3167_v26, %v3169_v6  ;;  %v3171_v37 = vrot.slane %v3152_v62, 4  ;;  %v3153_v50 = vpack.c.bf16 %v3142_v17, %v3141_v24  ;;  %v8557_v59 = vadd.f32 1.0, %v7066_v9  ;;  %v8587_v27 = vpop.eup %7069 }
 0x571   : > { %v3229_v15 = vrot.slane %v3227_v18, 1  ;;  %3192 = vst [vmem:[#allocation3 + $0x18] sm:$0xff] %v8549_v55  ;;  %v4726_v39 = vshll.u32 %v8549_v55, 16  ;;  %v4730_v56 = vshrl.u32 %v8549_v55, 16  ;;  %v8564_v4 = vrot.slane %v3231_v5, 3  ;;  %v8593_v30 = vpop.eup %7071 }
 0x572   : > { %v8560_v61 = vsel %vm3165_vm7, %v3169_v6, %v3171_v37  ;;  %v8562_v23 = vrot.slane %v3153_v50, 4  ;;  %v8566_v22 = vrot.slane %v3227_v18, 4  ;;  %v8573_v33 = vmul.f32 %v3128_v51, %v8378_v34 }
 0x573   : > { %v8568_v44 = vld [vmem:[#allocation3 + $0x8] sm:$0xff]  ;;  %3193 = vst [vmem:[#allocation3 + $0x20] sm:$0xff] %v8560_v61  ;;  %v4728_v11 = vrot.slane %v4726_v39, 1  ;;  %v4734_v29 = vshll.u32 %v8560_v61, 16  ;;  %v3233_v2 = vor.u32 %v3231_v5, %v3229_v15  ;;  %v4872_v10 = vrot.slane %v4730_v56, 3 }
 0x574   : > { %v3219_v60 = vshll.u32 %v8568_v44, 16  ;;  %v3223_v31 = vshrl.u32 %v8568_v44, 16  ;;  %v8579_v49 = vsel %vm3165_vm7, %v3171_v37, %v8562_v23  ;;  %v4873_v32 = vrot.slane %v4726_v39, 4 }
 0x575   : > { %v4732_v1 = vor.u32 %v4730_v56, %v4728_v11  ;;  %v4736_v7 = vrot.slane %v4734_v29, 1  ;;  %v3238_v54 = vsel %vm950_vm4, %v3233_v2, %v4728_v11  ;;  %3194 = vst [vmem:[#allocation3 + $0x28] sm:$0xff] %v8579_v49  ;;  %v4738_v25 = vshrl.u32 %v8560_v61, 16 }
 0x576   : > { %v3221_v34 = vrot.slane %v3219_v60, 1  ;;  %v3370_v53 = vrot.slane %v3223_v31, 3  ;;  %v3371_v21 = vrot.slane %v3219_v60, 4  ;;  %v4716_v12 = vld [vmem:[#allocation3 + $0x10] sm:$0xf0]  ;;  %v3413_v14 = vshrl.u32 %v3238_v54, 16 }
 0x577   : > { %v4719_v47 = vshrl.u32 %v4716_v12, 16  ;;  %v4721_v40 = vshll.u32 %v4716_v12, 16  ;;  %v4737_v43 = vsel %vm950_vm4, %v4732_v1, %v4736_v7  ;;  %v3416_v8 = vshll.u32 %v3238_v54, 16  ;;  %v4707_v6 = vld [vmem:[#allocation3 + $0x10] sm:$0xf8] }
 0x578   : > { %v3222_v26 = vsel %vm950_vm4, %v8522_v3, %v3221_v34  ;;  %v3225_v41 = vor.u32 %v3223_v31, %v3221_v34  ;;  %v4885_v58 = vshrl.u32 %v4737_v43, 16  ;;  %v4888_v62 = vshll.u32 %v4737_v43, 16 }
 0x579   : > { %v3375_v24 = vshrl.u32 %v3222_v26, 16  ;;  %v3378_v19 = vshll.u32 %v3222_v26, 16  ;;  %v4723_v9 = vrot.slane %v4721_v40, 1  ;;  %v8596_v18 = vor.u32 %v3371_v21, %v3370_v53 }
 0x57a   : > { %v3230_v17 = vsel %vm950_vm4, %v3225_v41, %v3229_v15  ;;  %v4887_v5 = vrot.slane %v4885_v58, 3  ;;  %v3415_v51 = vrot.slane %v3413_v14, 3  ;;  %v4890_v2 = vrot.slane %v4888_v62, 4 }
 0x57b   : > { %v3377_v37 = vrot.slane %v3375_v24, 3  ;;  %v3380_v50 = vrot.slane %v3378_v19, 4  ;;  %v3383_v39 = vshrl.u32 %v3230_v17, 16  ;;  %v3386_v3 = vshll.u32 %v3230_v17, 16 }
 0x57c   : > { %v4724_v56 = vor.u32 %v4723_v9, %v4719_v47  ;;  %v3418_v60 = vrot.slane %v3416_v8, 4  ;;  %v4865_v31 = vshrl.u32 %v4707_v6, 16  ;;  %v4868_v12 = vshll.u32 %v4707_v6, 16  ;;  %v6936_v6 = vld [vmem:[#allocation16 + $0x88] sm:$0xff]  }
 0x57d   : > { %v3381_v1 = vor.u32 %v3380_v50, %v3377_v37  ;;  %v3385_v54 = vrot.slane %v3383_v39, 3  ;;  %v3388_v34 = vrot.slane %v3386_v3, 4  ;;  %v8599_v43 = vor.u32 %v4890_v2, %v4887_v5 }
 0x57e   : > { %v4729_v40 = vsel %vm950_vm4, %v4724_v56, %v4728_v11  ;;  %v3419_v15 = vor.u32 %v3418_v60, %v3415_v51  ;;  %v4867_v53 = vrot.slane %v4865_v31, 3  ;;  %v4870_v41 = vrot.slane %v4868_v12, 4 }
 0x57f   : > { %v3389_v21 = vor.u32 %v3388_v34, %v3385_v54  ;;  %v4877_v14 = vshrl.u32 %v4729_v40, 16  ;;  %v4880_v26 = vshll.u32 %v4729_v40, 16  ;;  %v4874_v58 = vor.u32 %v4873_v32, %v4872_v10 }
 0x580   : > { %v4740_v24 = vor.u32 %v4738_v25, %v4736_v7  ;;  %v4742_v47 = vshll.u32 %v8579_v49, 16  ;;  %v3410_v8 = vor.u32 %v8566_v22, %v8564_v4  ;;  %v3373_v10 = vsel %vm1116_vm6, %v3369_v38, %v8596_v18 }
 0x581   : > { %v3390_v19 = vsel %vm1116_vm6, %v3381_v1, %v3389_v21  ;;  %v4879_v9 = vrot.slane %v4877_v14, 3  ;;  %v4882_v62 = vrot.slane %v4880_v26, 4  ;;  %v3420_v11 = vsel %vm1116_vm6, %v3389_v21, %v3419_v15  ;;  %v6938_v14 = vld [vmem:[#allocation16 + $0x98] sm:$0xff]  }
 0x582   : > { %3762 = vmatprep.mubr.bf16.mxu1 %v3390_v19  ;;  %v4871_v7 = vor.u32 %v4870_v41, %v4867_v53  ;;  %v4744_v32 = vrot.slane %v4742_v47, 1  ;;  %v3442_v17 = vsel %vm1116_vm6, %v3419_v15, %v8599_v43  ;;  %v4910_v22 = vrot.slane %v4738_v25, 3 }
 0x583   : > { %3763 = vmatmul.mubr.bf16.vlgmr.msra.gmra.mrb[8].mxu1 %v3373_v10  ;;  %v4883_v4 = vor.u32 %v4882_v62, %v4879_v9  ;;  %v4911_v5 = vrot.slane %v4734_v29, 4  ;;  %v3154_v51 = vpack.c.bf16 %v8573_v33, %v8552_v42  ;;  %v4746_v38 = vshrl.u32 %v8579_v49, 16  ;;  %v6937_v42 = vld [vmem:[#allocation16 + $0x90] sm:$0xff]  }
 0x584   : > { %6424 = vmatpush3.bf16.msra.mxu1 %v8438_v57  ;;  %3770 = vmatprep.mubr.bf16.mxu1 %v3420_v11  ;;  %v4875_v46 = vsel %vm1116_vm6, %v4871_v7, %v4874_v58  ;;  %v4745_v63 = vsel %vm950_vm4, %v4740_v24, %v4744_v32  ;;  %v8622_v37 = vsel %vm1116_vm6, %v3410_v8, %v4874_v58  ;;  %v4933_v56 = vrot.slane %v4742_v47, 4 }
 0x585   : > { %v4892_v25 = vsel %vm1116_vm6, %v4883_v4, %v8599_v43  ;;  %v4915_v50 = vshrl.u32 %v4745_v63, 16  ;;  %v4918_v29 = vshll.u32 %v4745_v63, 16  ;;  %6425 = vmatprep.subr.bf16.mxu1 %v6936_v6  ;;  %v4912_v39 = vor.u32 %v4911_v5, %v4910_v22 }
 0x586   : > { %5264 = vmatprep.mubr.bf16.mxu0 %v4892_v25  ;;  %v8626_v57 = vrot.slane %v3154_v51, 4  ;;  %v4748_v33 = vor.u32 %v4746_v38, %v4744_v32  ;;  %v4932_v3 = vrot.slane %v4746_v38, 3  ;;  %7073 = vrcp.f32 %v8557_v59  ;;  %v6940_v38 = vld [vmem:[#allocation16 + $0xa8] sm:$0xff]  }
 0x587   : > { %5265 = vmatmul.mubr.bf16.vlgmr.msra.gmra.mrb[36].mxu0 %v4875_v46  ;;  %v4917_v2 = vrot.slane %v4915_v50, 3  ;;  %v4920_v60 = vrot.slane %v4918_v29, 4  ;;  %v8629_v31 = vsel %vm1116_vm6, %v4874_v58, %v4912_v39  ;;  %v3129_v34 = vmul.f32 %v8581_v13, %v8488_v28 }
 0x588   : > { %6426 = vmatpush3.bf16.msra.mxu1 %v6936_v6  ;;  %v8635_v1 = vsel %vm3165_vm7, %v8562_v23, %v8626_v57  ;;  %v4934_v54 = vor.u32 %v4933_v56, %v4932_v3  ;;  %v3083_v12 = vadd.f32 1.0, %v8587_v27  ;;  %v3084_v59 = vadd.f32 1.0, %v8593_v30 }
 0x589   : > { %v8640_v40 = vor.u32 %v4920_v60, %v4917_v2  ;;  %v4750_v15 = vshll.u32 %v8635_v1, 16  ;;  %6427 = vmatprep.subr.bf16.mxu1 %v6937_v42  ;;  %v4754_v53 = vshrl.u32 %v8635_v1, 16  ;;  %v3411_v21 = vsel %vm1116_vm6, %v8596_v18, %v3410_v8 }
 0x58a   : > { %v8648_v23 = vsel %vm1116_vm6, %v4912_v39, %v4934_v54  ;;  %7075 = vrcp.f32 %v3083_v12  ;;  %v3292_v28 = vrot.slane %v8568_v44, 1  ;;  %v3294_v44 = vrot.slane %v8541_v20, 1  ;;  %v6965_v20 = vld [vmem:[%s9334_s13] sm:$0xff]  }
 0x58b   : > { %v4922_v13 = vsel %vm1116_vm6, %v8599_v43, %v8640_v40  ;;  %3771 = vmatmul.mubr.bf16.gmra.mrb[12].mxu1 %v3411_v21  ;;  %v8654_v27 = vrot.slane %v4750_v15, 1  ;;  %v4954_v30 = vrot.slane %v4754_v53, 3  ;;  %v4955_v26 = vrot.slane %v4750_v15, 4  ;;  %6519 = vmatprep.subr.bf16.mxu0 %v6965_v20  ;;  %v6941_v12 = vld [vmem:[#allocation16 + $0xb0] sm:$0xff]   ;;  %v9335_v15 = vld [vmem:[#allocation30_spill] sm:$0xff] }
 0x58c   : > { %5272 = vmatprep.mubr.bf16.mxu0 %v4922_v13  ;;  %3778 = vmatprep.mubr.bf16.mxu1 %v3442_v17  ;;  %7077 = vrcp.f32 %v3084_v59  ;;  %v3293_v18 = vsel %vm1049_vm5, %v3291_v52, %v3292_v28  ;;  %v8663_v41 = vrot.slane %v8549_v55, 1  ;;  %v3145_v58 = vmul.f32 %v3129_v34, %v8386_v36 }
 0x58d   : > { %v4753_v43 = vsel %vm950_vm4, %v4748_v33, %v8654_v27  ;;  %6428 = vmatpush3.bf16.msra.mxu1 %v6937_v42  ;;  %v8668_v24 = vor.u32 %v4955_v26, %v4954_v30  ;;  %v3392_v47 = vshrl.u32 %v3293_v18, 16  ;;  %v3295_v52 = vsel %vm1049_vm5, %v3292_v28, %v3294_v44  ;;  %6520 = vmatpush3.bf16.msra.mxu0 %v6965_v20  ;;  %v9336_v30 = vld [vmem:[#allocation31_spill] sm:$0xff] }
 0x58e   : > { %v4937_v8 = vshrl.u32 %v4753_v43, 16  ;;  %v4940_v19 = vshll.u32 %v4753_v43, 16  ;;  %6429 = vmatprep.subr.bf16.mxu1 %v6938_v14  ;;  %v3395_v9 = vshll.u32 %v3293_v18, 16  ;;  %v3400_v62 = vshrl.u32 %v3295_v52, 16 }
 0x58f   : > { %5273 = vmatmul.mubr.bf16.gmra.mrb[40].mxu0 %v8629_v31  ;;  %v8677_v55 = vsel %vm1116_vm6, %v4934_v54, %v8668_v24  ;;  %v3394_v36 = vrot.slane %v3392_v47, 3  ;;  %v3403_v11 = vshll.u32 %v3295_v52, 16  ;;  %v3297_v32 = vsel %vm1049_vm5, %v3294_v44, %v8663_v41 }
 0x590   : > { %v4939_v6 = vrot.slane %v4937_v8, 3  ;;  %v4942_v10 = vrot.slane %v4940_v19, 4  ;;  %v3397_v7 = vrot.slane %v3395_v9, 4  ;;  %v7074_v17 = vpop.eup %7073  ;;  %v3402_v4 = vrot.slane %v3400_v62, 3  ;;  %v8719_v9 = vld [vmem:[#allocation3 + $0x50] sm:$0xf] }
 0x591   : > { %6430 = vmatpush3.bf16.msra.mxu1 %v6938_v14  ;;  %v3405_v22 = vrot.slane %v3403_v11, 4  ;;  %v3422_v5 = vshrl.u32 %v3297_v32, 16  ;;  %v3425_v51 = vshll.u32 %v3297_v32, 16  ;;  %v3130_v63 = vmul.f32 %v7074_v17, %v8490_v48  ;;  %v6968_v17 = vld [vmem:[%s9334_s13 + $0x8] sm:$0xff]  }
 0x592   : > { %v8681_v46 = vor.u32 %v4942_v10, %v4939_v6  ;;  %6431 = vmatprep.subr.bf16.mxu1 %v6939_v16  ;;  %v3398_v25 = vor.u32 %v3397_v7, %v3394_v36  ;;  %v3298_v50 = vrot.slane %v8560_v61, 1  ;;  %v3300_v33 = vrot.slane %v8579_v49, 1  ;;  %6521 = vmatprep.subr.bf16.mxu0 %v6968_v17 }
 0x593   : > { %3779 = vmatmul.mubr.bf16.gmra.mrb[16].mxu1 %v8622_v37  ;;  %v3406_v29 = vor.u32 %v3405_v22, %v3402_v4  ;;  %v3424_v39 = vrot.slane %v3422_v5, 3  ;;  %v3427_v42 = vrot.slane %v3425_v51, 4  ;;  %v3146_v48 = vmul.f32 %v3130_v63, %v8394_v35  ;;  %6522 = vmatpush3.bf16.msra.mxu0 %v6968_v17 }
 0x594   : > { %v7076_v3 = vpop.eup %7075  ;;  %v4944_v56 = vsel %vm1116_vm6, %v8640_v40, %v8681_v46  ;;  %3786 = vmatprep.mubr.bf16.mxu1 %v4922_v13  ;;  %v8692_v2 = vrot.slane %v8635_v1, 1  ;;  %v3301_v35 = vsel %vm1049_vm5, %v3298_v50, %v3300_v33  ;;  %v4782_v10 = vshll.u32 %v8719_v9, 16 }
 0x595   : > { %5280 = vmatprep.mubr.bf16.mxu0 %v4944_v56  ;;  %v3131_v60 = vmul.f32 %v7076_v3, %v8496_v0  ;;  %6432 = vmatpush3.bf16.msra.mxu1 %v6939_v16  ;;  %v8696_v37 = vsel %vm1116_vm6, %v3398_v25, %v3406_v29  ;;  %v8698_v54 = vor.u32 %v3427_v42, %v3424_v39  ;;  %v3466_v28 = vshrl.u32 %v3301_v35, 16 }
 0x596   : > { %v7078_v49 = vpop.eup %7077  ;;  %v3155_v34 = vpack.c.bf16 %v3146_v48, %v3145_v58  ;;  %6433 = vmatprep.subr.bf16.mxu1 %v6940_v38  ;;  %v3303_v40 = vsel %vm1049_vm5, %v3300_v33, %v8692_v2  ;;  %v3469_v13 = vshll.u32 %v3301_v35, 16  ;;  %v6942_v58 = vld [vmem:[#allocation16 + $0xb8] sm:$0xff]  }
 0x597   : > { %5281 = vmatmul.mubr.bf16.gmra.mrb[44].mxu0 %v8648_v23  ;;  %v3132_v0 = vmul.f32 %v7078_v49, %v8499_v45  ;;  %v3147_v59 = vmul.f32 %v3131_v60, %v9335_v15  ;;  %v8710_v21 = vsel %vm1116_vm6, %v3406_v29, %v8698_v54  ;;  %v3488_v18 = vshrl.u32 %v3303_v40, 16 }
 0x598   : > { %v3177_v14 = vrot.slane %v3155_v34, 4  ;;  %v3491_v44 = vshll.u32 %v3303_v40, 16  ;;  %v4756_v45 = vor.u32 %v4754_v53, %v8654_v27  ;;  %v3468_v47 = vrot.slane %v3466_v28, 3 }
 0x599   : > { %v3148_v26 = vmul.f32 %v3132_v0, %v9336_v30  ;;  %6434 = vmatpush3.bf16.msra.mxu1 %v6940_v38  ;;  %v3471_v8 = vrot.slane %v3469_v13, 4  ;;  %v3490_v20 = vrot.slane %v3488_v18, 3 }
 0x59a   : > { %v3178_v43 = vsel %vm3165_vm7, %v8626_v57, %v3177_v14  ;;  %6435 = vmatprep.subr.bf16.mxu1 %v6941_v12  ;;  %v3493_v57 = vrot.slane %v3491_v44, 4 }
 0x59b   : > { %v4758_v19 = vshll.u32 %v3178_v43, 16  ;;  %3787 = vmatmul.mubr.bf16.gmra.mrb[20].mxu1 %v8629_v31  ;;  %v3156_v16 = vpack.c.bf16 %v3148_v26, %v3147_v59  ;;  %v4762_v52 = vshrl.u32 %v3178_v43, 16  ;;  %v8721_v36 = vor.u32 %v3471_v8, %v3468_v47  ;;  %v6943_v31 = vld [vmem:[#allocation16 + $0x100] sm:$0xff]  }
 0x59c   : > { %3794 = vmatprep.mubr.bf16.mxu1 %v4944_v56  ;;  %v8723_v62 = vrot.slane %v3178_v43, 1  ;;  %v3494_v7 = vor.u32 %v3493_v57, %v3490_v20  ;;  %v4786_v47 = vshrl.u32 %v8719_v9, 16 }
 0x59d   : > { %v4760_v1 = vrot.slane %v4758_v19, 1  ;;  %v3179_v53 = vrot.slane %v3156_v16, 4  ;;  %v4976_v11 = vrot.slane %v4762_v52, 3  ;;  %v4977_v6 = vrot.slane %v4758_v19, 4  ;;  %6436 = vmatpush3.bf16.msra.mxu1 %v6941_v12 }
 0x59e   : > { %6437 = vmatprep.subr.bf16.mxu1 %v6942_v58  ;;  %v3305_v32 = vsel %vm1049_vm5, %v8692_v2, %v8723_v62  ;;  %v8748_v42 = vsel %vm1116_vm6, %v8721_v36, %v3494_v7 }
 0x59f   : > { %v4761_v4 = vsel %vm950_vm4, %v4756_v45, %v4760_v1  ;;  %v8734_v22 = vsel %vm3165_vm7, %v3177_v14, %v3179_v53  ;;  %v4764_v5 = vor.u32 %v4762_v52, %v4760_v1  ;;  %3198 = vst [vmem:[#allocation3 + $0x48] sm:$0xf] %v3179_v53  ;;  %v8736_v51 = vor.u32 %v4977_v6, %v4976_v11 }
 0x5a0   : > { %v4959_v63 = vshrl.u32 %v4761_v4, 16  ;;  %v4962_v38 = vshll.u32 %v4761_v4, 16  ;;  %3197 = vst [vmem:[#allocation3 + $0x40] sm:$0xff] %v8734_v22  ;;  %v4766_v25 = vshll.u32 %v8734_v22, 16  ;;  %v4770_v29 = vshrl.u32 %v8734_v22, 16 }
 0x5a1   : > { %v8744_v39 = vsel %vm1116_vm6, %v8668_v24, %v8736_v51  ;;  %6438 = vmatpush3.bf16.msra.mxu1 %v6942_v58  ;;  %v3510_v33 = vshrl.u32 %v3305_v32, 16  ;;  %v3513_v3 = vshll.u32 %v3305_v32, 16 }
 0x5a2   : > { %v4961_v56 = vrot.slane %v4959_v63, 3  ;;  %v4964_v48 = vrot.slane %v4962_v38, 4  ;;  %v4768_v60 = vrot.slane %v4766_v25, 1  ;;  %v4998_v49 = vrot.slane %v4770_v29, 3  ;;  %6147 = vmatprep.subr.bf16.mxu1 %v6943_v31 }
 0x5a3   : > { %3795 = vmatmul.mubr.bf16.gmra.mrb[24].mxu1 %v8648_v23  ;;  %v4999_v34 = vrot.slane %v4766_v25, 4  ;;  %v3512_v12 = vrot.slane %v3510_v33, 3  ;;  %v3515_v35 = vrot.slane %v3513_v3, 4  ;;  %v4784_v23 = vrot.slane %v4782_v10, 1 }
 0x5a4   : > { %v8751_v40 = vor.u32 %v4964_v48, %v4961_v56  ;;  %v4769_v0 = vsel %vm950_vm4, %v4764_v5, %v4768_v60 }
 0x5a5   : > { %v4981_v15 = vshrl.u32 %v4769_v0, 16  ;;  %v4984_v59 = vshll.u32 %v4769_v0, 16  ;;  %v8754_v14 = vor.u32 %v4999_v34, %v4998_v49  ;;  %v8756_v28 = vor.u32 %v3515_v35, %v3512_v12  ;;  %v8802_v35 = vld [vmem:[#allocation3 + $0x8] sm:$0xf0] }
 0x5a6   : > { %v4966_v13 = vsel %vm1116_vm6, %v8681_v46, %v8751_v40  ;;  %v8761_v30 = vld [vmem:[#allocation3 + $0x48] sm:$0xff]  ;;  %v8772_v46 = vor.u32 %v4770_v29, %v4768_v60 }
 0x5a7   : > { %5288 = vmatprep.mubr.bf16.mxu0 %v4966_v13  ;;  %v4983_v26 = vrot.slane %v4981_v15, 3  ;;  %v4986_v18 = vrot.slane %v4984_v59, 4  ;;  %3802 = vmatprep.mubr.bf16.mxu1 %v4966_v13  ;;  %v4774_v44 = vshll.u32 %v8761_v30, 16  ;;  %v3208_v43 = vld [vmem:[#allocation3 + $0x40] sm:$0xf]  ;;  %v8769_v45 = vsel %vm1116_vm6, %v8736_v51, %v8754_v14 }
 0x5a8   : > { %5289 = vmatmul.mubr.bf16.gmra.mrb[48].mxu0 %v8677_v55  ;;  %v3275_v58 = vshll.u32 %v3208_v43, 16  ;;  %v8777_v8 = vsel %vm1116_vm6, %v3494_v7, %v8756_v28  ;;  %v3210_v19 = vld [vmem:[#allocation3 + $0x40] sm:$0x1f]  ;;  %v4778_v20 = vshrl.u32 %v8761_v30, 16  ;;  %v3279_v53 = vshrl.u32 %v3208_v43, 16 }
 0x5a9   : > { %9337 = vst [vmem:[#allocation30_spill] sm:$0xff] %v8777_v8  ;;  %v8779_v16 = vor.u32 %v4986_v18, %v4983_v26  ;;  %v4776_v52 = vrot.slane %v4774_v44, 1  ;;  %v8784_v57 = vrot.slane %v3210_v19, 1  ;;  %v4788_v7 = vor.u32 %v4786_v47, %v4784_v23 }
 0x5aa   : > { %v3277_v1 = vrot.slane %v3275_v58, 1 }
 0x5ab   : > { %v8789_v11 = vsel %vm1116_vm6, %v8751_v40, %v8779_v16  ;;  %v4777_v6 = vsel %vm950_vm4, %v8772_v46, %v4776_v52  ;;  %3803 = vmatmul.mubr.bf16.gmra.mrb[28].mxu1 %v8677_v55  ;;  %v4780_v31 = vor.u32 %v4778_v20, %v4776_v52  ;;  %v3307_v33 = vsel %vm1049_vm5, %v8723_v62, %v8784_v57 }
 0x5ac   : > { %5296 = vmatprep.mubr.bf16.mxu0 %v8789_v11  ;;  %v5003_v32 = vshrl.u32 %v4777_v6, 16  ;;  %v5006_v17 = vshll.u32 %v4777_v6, 16  ;;  %v3278_v4 = vsel %vm950_vm4, %v4764_v5, %v3277_v1  ;;  %v3281_v63 = vor.u32 %v3279_v53, %v3277_v1  ;;  %v6973_v1 = vld [vmem:[%s9334_s13 + $0x10] sm:$0xff]  }
 0x5ad   : > { %v3523_v38 = vshrl.u32 %v3278_v4, 16  ;;  %v3526_v25 = vshll.u32 %v3278_v4, 16  ;;  %v4785_v29 = vsel %vm950_vm4, %v4780_v31, %v4784_v23  ;;  %v5047_v26 = vshrl.u32 %v4788_v7, 16  ;;  %v8817_v4 = vld [vmem:[#allocation3 + $0x10] sm:$0xff]  ;;  %6523 = vmatprep.subr.bf16.mxu0 %v6973_v1 }
 0x5ae   : > { %v5005_v55 = vrot.slane %v5003_v32, 3  ;;  %v5008_v3 = vrot.slane %v5006_v17, 4  ;;  %v5025_v56 = vshrl.u32 %v4785_v29, 16  ;;  %v5028_v48 = vshll.u32 %v4785_v29, 16  ;;  %6524 = vmatpush3.bf16.msra.mxu0 %v6973_v1 }
 0x5af   : > { %v3525_v60 = vrot.slane %v3523_v38, 3  ;;  %v3528_v49 = vrot.slane %v3526_v25, 4  ;;  %v3545_v34 = vshrl.u32 %v3281_v63, 16  ;;  %v3548_v12 = vshll.u32 %v3281_v63, 16 }
 0x5b0   : > { %5297 = vmatmul.mubr.bf16.gmra.mrb[52].mxu0 %v8744_v39  ;;  %v5009_v5 = vor.u32 %v5008_v3, %v5005_v55  ;;  %v5027_v0 = vrot.slane %v5025_v56, 3  ;;  %v5030_v15 = vrot.slane %v5028_v48, 4  ;;  %v5050_v43 = vshll.u32 %v4788_v7, 16 }
 0x5b1   : > { %v3529_v59 = vor.u32 %v3528_v49, %v3525_v60  ;;  %v3547_v13 = vrot.slane %v3545_v34, 3  ;;  %v3550_v23 = vrot.slane %v3548_v12, 4  ;;  %v3532_v19 = vshrl.u32 %v3307_v33, 16 }
 0x5b2   : > { %v5010_v18 = vsel %vm1116_vm6, %v8779_v16, %v5009_v5  ;;  %v3954_v52 = vshll.u32 %v8802_v35, 16  ;;  %v3299_v32 = vsel %vm1049_vm5, %v8663_v41, %v3298_v50  ;;  %v3535_v17 = vshll.u32 %v3307_v33, 16 }
 0x5b3   : > { %5304 = vmatprep.mubr.bf16.mxu0 %v5010_v18  ;;  %v3530_v6 = vsel %vm1116_vm6, %v8751_v40, %v3529_v59  ;;  %v3551_v31 = vor.u32 %v3550_v23, %v3547_v13  ;;  %v5031_v7 = vor.u32 %v5030_v15, %v5027_v0  ;;  %v3540_v63 = vrot.slane %v3279_v53, 3 }
 0x5b4   : > { %3810 = vmatprep.mubr.bf16.mxu1 %v3530_v6  ;;  %v3541_v38 = vrot.slane %v3275_v58, 4  ;;  %v3534_v25 = vrot.slane %v3532_v19, 3  ;;  %v3537_v55 = vrot.slane %v3535_v17, 4  ;;  %v5049_v61 = vrot.slane %v5047_v26, 3 }
 0x5b5   : > { %3811 = vmatmul.mubr.bf16.gmra.mrb[32].mxu1 %v8744_v39  ;;  %v3552_v29 = vsel %vm1116_vm6, %v3529_v59, %v3551_v31  ;;  %v3444_v3 = vshrl.u32 %v3299_v32, 16  ;;  %v3956_v56 = vrot.slane %v3954_v52, 1  ;;  %v3959_v50 = vshll.u32 %v8817_v4, 16 }
 0x5b6   : > { %3818 = vmatprep.mubr.bf16.mxu1 %v3552_v29  ;;  %v5020_v33 = vrot.slane %v4778_v20, 3  ;;  %v5021_v48 = vrot.slane %v4774_v44, 4  ;;  %v3447_v53 = vshll.u32 %v3299_v32, 16  ;;  %v8824_v58 = vor.u32 %v3537_v55, %v3534_v25  ;;  %v8834_v20 = vld [vmem:[#allocation3 + $0x18] sm:$0xff] }
 0x5b7   : > { %v5032_v60 = vsel %vm1116_vm6, %v5009_v5, %v5031_v7  ;;  %v5052_v49 = vrot.slane %v5050_v43, 4  ;;  %v3542_v34 = vor.u32 %v3541_v38, %v3540_v63  ;;  %v3952_v12 = vshrl.u32 %v8802_v35, 16  ;;  %v8838_v5 = vld [vmem:[#allocation3 + $0x28] sm:$0xff] }
 0x5b8   : > { %5305 = vmatmul.mubr.bf16.gmra.mrb[56].mxu0 %v8769_v45  ;;  %v8832_v0 = vsel %vm1116_vm6, %v8756_v28, %v8824_v58  ;;  %v3961_v15 = vrot.slane %v3959_v50, 1  ;;  %v5022_v59 = vor.u32 %v5021_v48, %v5020_v33  ;;  %v3446_v13 = vrot.slane %v3444_v3, 3  ;;  %v3940_v3 = vld [vmem:[#allocation3 + $0x8] sm:$0xf8] }
 0x5b9   : > { %5312 = vmatprep.mubr.bf16.mxu0 %v5032_v60  ;;  %v3957_v44 = vor.u32 %v3956_v56, %v3952_v12  ;;  %v3449_v23 = vrot.slane %v3447_v53, 4  ;;  %v5053_v26 = vor.u32 %v5052_v49, %v5049_v61  ;;  %v3543_v18 = vsel %vm1116_vm6, %v8736_v51, %v3542_v34  ;;  %v6977_v51 = vld [vmem:[%s9334_s13 + $0x18] sm:$0xff]   ;;  %v8868_v56 = vld [vmem:[#allocation3 + $0x48] sm:$0xf] }
 0x5ba   : > { %v3963_v43 = vshrl.u32 %v8817_v4, 16  ;;  %v9298_v19 = vshll.u32 %v8834_v20, 16  ;;  %v5042_v52 = vrot.slane %v4786_v47, 3  ;;  %v5043_v1 = vrot.slane %v4782_v10, 4  ;;  %v4717_v10 = vld [vmem:[#allocation3 + $0x50] sm:$0x1f]  ;;  %6525 = vmatprep.subr.bf16.mxu0 %v6977_v51 }
 0x5bb   : > { %v3962_v6 = vsel %vm950_vm4, %v3957_v44, %v3961_v15  ;;  %v9295_v32 = vshll.u32 %v8838_v5, 16  ;;  %v5023_v17 = vsel %vm1116_vm6, %v8754_v14, %v5022_v59  ;;  %v8856_v63 = vor.u32 %v3449_v23, %v3446_v13  ;;  %6526 = vmatpush3.bf16.msra.mxu0 %v6977_v51  ;;  %v6945_v60 = vld [vmem:[#allocation16 + $0x108] sm:$0xff]  }
 0x5bc   : > { %v3965_v31 = vor.u32 %v3963_v43, %v3961_v15  ;;  %v3554_v47 = vshrl.u32 %v8784_v57, 16  ;;  %v3557_v9 = vshll.u32 %v8784_v57, 16  ;;  %v3969_v38 = vrot.slane %v9298_v19, 1  ;;  %v6944_v57 = vld [vmem:[#allocation16 + $0xc0] sm:$0xff]  }
 0x5bd   : > { %3819 = vmatmul.mubr.bf16.gmra.mrb[36].mxu1 %v3543_v18  ;;  %v8865_v25 = vrot.slane %v9295_v32, 1  ;;  %v9296_v29 = vshrl.u32 %v8838_v5, 16  ;;  %v5044_v55 = vor.u32 %v5043_v1, %v5042_v52  ;;  %v4110_v61 = vshrl.u32 %v3962_v6, 16  ;;  %v6946_v1 = vld [vmem:[#allocation16 + $0xc8] sm:$0xff]   ;;  %v6952_v32 = vld [vmem:[#allocation16 + $0xe0] sm:$0xff]  }
 0x5be   : > { %6439 = vmatprep.mubr.bf16.mxu1 %v8696_v37  ;;  %v5054_v37 = vsel %vm1116_vm6, %v5031_v7, %v5053_v26  ;;  %v3970_v7 = vsel %vm950_vm4, %v3965_v31, %v3969_v38  ;;  %v8874_v48 = vrot.slane %v4717_v10, 1  ;;  %v3451_v53 = vsel %vm1116_vm6, %v8698_v54, %v8856_v63  ;;  %v8895_v31 = vld [vmem:[#allocation3 + $0x20] sm:$0xff] }
 0x5bf   : > { %v3989_v33 = vor.u32 %v9296_v29, %v8865_v25  ;;  %v8879_v49 = vrot.slane %v3554_v47, 3  ;;  %v8881_v34 = vrot.slane %v3557_v9, 4  ;;  %v4113_v12 = vshll.u32 %v3962_v6, 16 }
 0x5c0   : > { %5313 = vmatmul.mubr.bf16.gmra.mrb[60].mxu0 %v5023_v17  ;;  %v8886_v44 = vsel %vm1116_vm6, %v8856_v63, %v8721_v36  ;;  %v4098_v15 = vshrl.u32 %v3940_v3, 16  ;;  %v9294_v23 = vshll.u32 %v8868_v56, 16  ;;  %v5045_v26 = vsel %vm1116_vm6, %v5022_v59, %v5044_v55  ;;  %v6947_v59 = vld [vmem:[#allocation16 + $0x110] sm:$0xff]  }
 0x5c1   : > { %5320 = vmatprep.mubr.bf16.mxu0 %v5054_v37  ;;  %v3994_v13 = vsel %vm950_vm4, %v3989_v33, %v8654_v27  ;;  %v8893_v54 = vrot.slane %v4110_v61, 3  ;;  %v4118_v18 = vshrl.u32 %v3970_v7, 16  ;;  %v4121_v6 = vshll.u32 %v3970_v7, 16 }
 0x5c2   : > { %v4192_v52 = vshrl.u32 %v3994_v13, 16  ;;  %v4101_v36 = vshll.u32 %v3940_v3, 16  ;;  %v4195_v51 = vshll.u32 %v3994_v13, 16  ;;  %v8899_v27 = vrot.slane %v9294_v23, 1  ;;  %v6949_v13 = vld [vmem:[#allocation16 + $0x118] sm:$0xff]  }
 0x5c3   : > { %v8903_v17 = vrot.slane %v4113_v12, 4  ;;  %v8905_v47 = vrot.slane %v3963_v43, 3  ;;  %v8907_v10 = vrot.slane %v4098_v15, 3  ;;  %v9299_v37 = vshrl.u32 %v8834_v20, 16 }
 0x5c4   : > { %v4194_v9 = vrot.slane %v4192_v52, 3  ;;  %v4197_v55 = vrot.slane %v4195_v51, 4  ;;  %v4018_v61 = vsel %vm950_vm4, %v8772_v46, %v8899_v27  ;;  %v4120_v3 = vrot.slane %v4118_v18, 3 }
 0x5c5   : > { %6440 = vmatmul.mubr.bf16.vlgmr.msra.gmra.mrb[40].mxu1 %v8710_v21  ;;  %v4258_v7 = vshrl.u32 %v4018_v61, 16  ;;  %v4261_v33 = vshll.u32 %v4018_v61, 16  ;;  %v4123_v43 = vrot.slane %v4121_v6, 4  ;;  %v4031_v12 = vrot.slane %v8802_v35, 1 }
 0x5c6   : > { %6148 = vmatpush3.bf16.msra.mxu1 %v6944_v57  ;;  %6443 = vmatprep.mubr.bf16.mxu1 %v3451_v53  ;;  %v9297_v57 = vshll.u32 %v8895_v31, 16  ;;  %v6948_v53 = vld [vmem:[#allocation16 + $0xd0] sm:$0xff]   ;;  %v4032_v15 = vrot.slane %v8817_v4, 1  ;;  %v3973_v46 = vor.u32 %v9299_v37, %v3969_v38  ;;  %v8926_v6 = vrot.slane %v3959_v50, 4  ;;  %v6950_v50 = vld [vmem:[#allocation16 + $0xd8] sm:$0xff]  }
 0x5c7   : > { %6149 = vmatprep.subr.bf16.mxu1 %v6945_v60  ;;  %v8914_v60 = vor.u32 %v4197_v55, %v4194_v9  ;;  %v4260_v18 = vrot.slane %v4258_v7, 3  ;;  %v4263_v52 = vrot.slane %v4261_v33, 4  ;;  %v9300_v51 = vshrl.u32 %v8895_v31, 16  ;;  %v6951_v7 = vld [vmem:[#allocation16 + $0x120] sm:$0xff]  }
 0x5c8   : > { %5321 = vmatmul.mubr.bf16.gmra.mrb[64].mxu0 %v5045_v26  ;;  %v8918_v26 = vrot.slane %v4101_v36, 4  ;;  %v4033_v36 = vsel %vm1049_vm5, %v4031_v12, %v4032_v15  ;;  %v3977_v38 = vrot.slane %v9297_v57, 1  ;;  %v4034_v4 = vrot.slane %v8834_v20, 1 }
 0x5c9   : > { %v8931_v35 = vsel %vm1116_vm6, %v8914_v60, %v8751_v40  ;;  %v8942_v9 = vor.u32 %v4123_v43, %v4120_v3  ;;  %v4127_v40 = vshrl.u32 %v4033_v36, 16  ;;  %v4130_v55 = vshll.u32 %v4033_v36, 16 }
 0x5ca   : > { %6150 = vmatpush3.bf16.msra.mxu1 %v6946_v1  ;;  %v4036_v61 = vrot.slane %v8895_v31, 1  ;;  %v8946_v33 = vsel %vm950_vm4, %v3973_v46, %v3977_v38 }
 0x5cb   : > { %6151 = vmatprep.subr.bf16.mxu1 %v6947_v59  ;;  %v8938_v59 = vor.u32 %v4263_v52, %v4260_v18  ;;  %v4038_v18 = vrot.slane %v8838_v5, 1  ;;  %v4129_v3 = vrot.slane %v4127_v40, 3  ;;  %v4132_v43 = vrot.slane %v4130_v55, 4 }
 0x5cc   : > { %v4037_v46 = vsel %vm1049_vm5, %v4034_v4, %v4036_v61 }
 0x5cd   : > { %6444 = vmatmul.mubr.bf16.gmra.mrb[44].mxu1 %v8886_v44  ;;  %v8951_v12 = vsel %vm1116_vm6, %v8779_v16, %v8938_v59  ;;  %v4039_v23 = vsel %vm1049_vm5, %v4036_v61, %v4038_v18  ;;  %v4041_v16 = vsel %vm1049_vm5, %v4038_v18, %v8692_v2  ;;  %v4133_v29 = vor.u32 %v4132_v43, %v4129_v3 }
 0x5ce   : > { %6152 = vmatpush3.bf16.msra.mxu1 %v6948_v53  ;;  %6447 = vmatprep.mubr.bf16.mxu1 %v8748_v42  ;;  %v4035_v53 = vsel %vm1049_vm5, %v4032_v15, %v4034_v4  ;;  %v6953_v15 = vld [vmem:[#allocation16 + $0x128] sm:$0xff]   ;;  %v4157_v55 = vshrl.u32 %v4037_v46, 16  ;;  %v4179_v19 = vshrl.u32 %v4039_v23, 16  ;;  %v4182_v37 = vshll.u32 %v4039_v23, 16 }
 0x5cf   : > { %6153 = vmatprep.subr.bf16.mxu1 %v6949_v13  ;;  %v4135_v52 = vshrl.u32 %v4035_v53, 16  ;;  %v4138_v36 = vshll.u32 %v4035_v53, 16  ;;  %v8957_v13 = vor.u32 %v9300_v51, %v3977_v38  ;;  %v4160_v53 = vshll.u32 %v4037_v46, 16  ;;  %v3950_v51 = vld [vmem:[#allocation3 + $0x48] sm:$0x1f] }
 0x5d0   : > { %v4201_v38 = vshrl.u32 %v4041_v16, 16  ;;  %v4159_v4 = vrot.slane %v4157_v55, 3  ;;  %v4204_v21 = vshll.u32 %v4041_v16, 16  ;;  %v8964_v61 = vrot.slane %v8734_v22, 1  ;;  %v5475_v55 = vld [vmem:[%s7684_s18 + $0x8] sm:$0xff] }
 0x5d1   : > { %v4137_v57 = vrot.slane %v4135_v52, 3  ;;  %v4140_v40 = vrot.slane %v4138_v36, 4  ;;  %v4162_v2 = vrot.slane %v4160_v53, 4  ;;  %v4184_v18 = vrot.slane %v4182_v37, 4  ;;  %v5476_v53 = vld [vmem:[%s7684_s18 + $0x10] sm:$0xff] }
 0x5d2   : > { %6154 = vmatpush3.bf16.msra.mxu1 %v6950_v50  ;;  %v4181_v50 = vrot.slane %v4179_v19, 3  ;;  %v4203_v3 = vrot.slane %v4201_v38, 3  ;;  %v4045_v22 = vsel %vm1049_vm5, %v8723_v62, %v8964_v61  ;;  %v8974_v43 = vrot.slane %v3950_v51, 1  ;;  %v6955_v19 = vld [vmem:[#allocation16 + $0x130] sm:$0xff]   ;;  %v5477_v38 = vld [vmem:[%s7684_s18 + $0x18] sm:$0xff] }
 0x5d3   : > { %6155 = vmatprep.subr.bf16.mxu1 %v6951_v7  ;;  %v4141_v1 = vor.u32 %v4140_v40, %v4137_v57  ;;  %v6954_v7 = vld [vmem:[#allocation16 + $0xe8] sm:$0xff]   ;;  %v4206_v57 = vrot.slane %v4204_v21, 4  ;;  %v4248_v52 = vshll.u32 %v4045_v22, 16  ;;  %v4148_v36 = vshrl.u32 %v8946_v33, 16 }
 0x5d4   : > { %v4185_v37 = vor.u32 %v4184_v18, %v4181_v50  ;;  %v4047_v62 = vsel %vm1049_vm5, %v8964_v61, %v8974_v43  ;;  %v5474_v51 = vld [vmem:[%s7684_s18] sm:$0xff] }
 0x5d5   : > { %6448 = vmatmul.mubr.bf16.gmra.mrb[48].mxu1 %v8777_v8  ;;  %v8969_v23 = vsel %vm1116_vm6, %v4133_v29, %v4141_v1  ;;  %v4151_v29 = vshll.u32 %v8946_v33, 16  ;;  %v4207_v21 = vor.u32 %v4206_v57, %v4203_v3  ;;  %v4250_v40 = vrot.slane %v4248_v52, 4  ;;  %v6956_v33 = vld [vmem:[#allocation16 + $0xf0] sm:$0xff]  }
 0x5d6   : > { %6156 = vmatpush3.bf16.msra.mxu1 %v6952_v32  ;;  %6451 = vmatprep.mubr.bf16.mxu1 %v8832_v0  ;;  %v4163_v32 = vor.u32 %v4162_v2, %v4159_v4  ;;  %v4245_v0 = vshrl.u32 %v4045_v22, 16  ;;  %v4267_v50 = vshrl.u32 %v4047_v62, 16  ;;  %v5478_v18 = vld [vmem:[%s7684_s18 + $0x20] sm:$0xff]  ;;  %v5479_v3 = vld [vmem:[%s7684_s18 + $0x28] sm:$0xff]  ;;  %v9338_v57 = vor.u32 %v8881_v34, %v8879_v49 }
 0x5d7   : > { %6157 = vmatprep.subr.bf16.mxu1 %v6953_v15  ;;  %v8992_v4 = vsel %vm1116_vm6, %v4185_v37, %v4207_v21  ;;  %v8996_v2 = vsel %vm1116_vm6, %v4207_v21, %v8756_v28  ;;  %v6011_v8 = vpack.c.bf16 %v5477_v38, %v5476_v53  ;;  %v4150_v49 = vrot.slane %v4148_v36, 3 }
 0x5d8   : > { %v8983_v46 = vsel %vm1116_vm6, %v4141_v1, %v4163_v32  ;;  %v8986_v16 = vsel %vm1116_vm6, %v4163_v32, %v4185_v37  ;;  %v4247_v15 = vrot.slane %v4245_v0, 3  ;;  %v4270_v1 = vshll.u32 %v4047_v62, 16  ;;  %v6957_v37 = vld [vmem:[#allocation16 + $0x138] sm:$0xff]  }
 0x5d9   : > { %v3561_v22 = vsel %vm1116_vm6, %v8824_v58, %v9338_v57  ;;  %v3986_v0 = vsel %vm950_vm4, %v8957_v13, %v8865_v25  ;;  %v4269_v21 = vrot.slane %v4267_v50, 3  ;;  %v6010_v62 = vpack.c.bf16 %v5475_v55, %v5474_v51  ;;  %v6959_v25 = vld [vmem:[#allocation16 + $0x140] sm:$0xff]  }
 0x5da   : > { %6158 = vmatpush3.bf16.msra.mxu1 %v6954_v7  ;;  %v9339_v7 = vor.u32 %v8903_v17, %v8893_v54  ;;  %v4251_v52 = vor.u32 %v4250_v40, %v4247_v15  ;;  %v4153_v34 = vrot.slane %v4151_v29, 4  ;;  %v6012_v54 = vpack.c.bf16 %v5479_v3, %v5478_v18  ;;  %v6958_v17 = vld [vmem:[#allocation16 + $0xf8] sm:$0xff]  }
 0x5db   : > { %6159 = vmatprep.subr.bf16.mxu1 %v6955_v19  ;;  %v4272_v19 = vrot.slane %v4270_v1, 4  ;;  %v4104_v13 = vor.u32 %v8918_v26, %v8907_v10  ;;  %v4107_v36 = vor.u32 %v8926_v6, %v8905_v47  ;;  %6527 = vmatprep.mubr.msk.bf16.mxu0 %vm598_vm1, %v6010_v62  ;;  %v4170_v29 = vshrl.u32 %v3986_v0, 16  ;;  %v5480_v55 = vld [vmem:[%s7684_s18 + $0x30] sm:$0xff]  ;;  %v5481_v10 = vld [vmem:[%s7684_s18 + $0x38] sm:$0xff]  ;;  %s7281_s18 = sshll.u32 %s7374_s29, 4  ;;  %s7282_s18 = int_to_ptr.vmem [resolvable:$false] %s7281_s18 }
 0x5dc   : > { %v4125_v32 = vsel %vm1116_vm6, %v9339_v7, %v8942_v9  ;;  %v9015_v58 = vsel %vm1116_vm6, %v8756_v28, %v4251_v52  ;;  %v4811_v28 = vrot.slane %v8761_v30, 1  ;;  %6528 = vmatmul.mubr.msk.bf16.vlgmr.msra.gmra.mrb[68].mxu0 %vm598_vm1, %v6011_v8  ;;  %v4154_v15 = vor.u32 %v4153_v34, %v4150_v49  ;;  %v6960_v8 = vld [vmem:[#allocation16 + $0x148] sm:$0xff]   ;;  %v6961_v49 = vld [vmem:[#allocation16 + $0x150] sm:$0xff]   ;;  %s7283_s16 = scalar_lea.vmem %s7282_s18, 2048  ;;  %p7284_p1 = scmp.lt.s32.totalorder %s9212_s12, %s7282_s18 }
 0x5dd   : > { %6452 = vmatmul.mubr.bf16.gmra.mrb[52].mxu1 %v3561_v22  ;;  %v9017_v57 = vor.u32 %v4272_v19, %v4269_v21  ;;  %v4173_v40 = vshll.u32 %v3986_v0, 16  ;;  %6531 = vmatprep.mubr.msk.bf16.mxu0 %vm598_vm1, %v6012_v54  ;;  %v4108_v38 = vsel %vm1116_vm6, %v4104_v13, %v4107_v36  ;;  %v9341_v1 = vshll.u32 %v8834_v20, 16  ;;  %p7285_p6 = scmp.lt.s32.totalorder %s7283_s16, %s7277_s15 }
 0x5de   : > { %6160 = vmatpush3.bf16.msra.mxu1 %v6956_v33  ;;  %4497 = vmatprep.mubr.bf16.mxu1 %v4125_v32  ;;  %v4812_v47 = vsel %vm1049_vm5, %v8964_v61, %v4811_v28  ;;  %v4814_v26 = vsel %vm1049_vm5, %v4811_v28, %v8874_v48  ;;  %v9340_v33 = vshrl.u32 %v8834_v20, 16  ;;  %v6013_v22 = vpack.c.bf16 %v5481_v10, %v5480_v55  ;;  %v6963_v10 = vld [vmem:[#allocation16 + $0x160] sm:$0xff]  }
 0x5df   : > { %6161 = vmatprep.subr.bf16.mxu1 %v6957_v37  ;;  %v9027_v51 = vsel %vm1116_vm6, %v4251_v52, %v9017_v57  ;;  %v5012_v30 = vshrl.u32 %v4812_v47, 16  ;;  %v5015_v6 = vshll.u32 %v4812_v47, 16  ;;  %v5034_v53 = vshrl.u32 %v4814_v26, 16  ;;  %p7286_p9 = por %p7285_p6, %p7284_p1 }
 0x5e0   : > { %v4143_v50 = vrot.slane %v9340_v33, 3  ;;  %v4144_v18 = vrot.slane %v9341_v1, 4  ;;  %v5037_v3 = vshll.u32 %v4814_v26, 16  ;;  %v4155_v37 = vsel %vm1116_vm6, %v8942_v9, %v4154_v15  ;;  %v6964_v26 = vld [vmem:[#allocation16 + $0x168] sm:$0xff]   ;;  %v6967_v33 = vld [vmem:[#allocation16 + $0x178] sm:$0xff]  }
 0x5e1   : > { %v5014_v61 = vrot.slane %v5012_v30, 3  ;;  %v5017_v7 = vrot.slane %v5015_v6, 4  ;;  %v5036_v32 = vrot.slane %v5034_v53, 3  ;;  %v4172_v0 = vrot.slane %v4170_v29, 3  ;;  %p7287_p10 = pnand %p7286_p9, %p7280_p5 }
 0x5e2   : > { %6162 = vmatpush3.bf16.msra.mxu1 %v6958_v17  ;;  %v4175_v21 = vrot.slane %v4173_v40, 4  ;;  %v5039_v19 = vrot.slane %v5037_v3, 4  ;;  %v4145_v20 = vor.u32 %v4144_v18, %v4143_v50  ;;  %v9342_v28 = vshrl.u32 %v8895_v31, 16 }
 0x5e3   : > { %6455 = vmatprep.subr.bf16.mxu1 %v6959_v25  ;;  %v5018_v62 = vor.u32 %v5017_v7, %v5014_v61  ;;  %v9343_v40 = vshll.u32 %v8895_v31, 16  ;;  %v9345_v53 = vshll.u32 %v8838_v5, 16  ;;  %v4019_v1 = vshrl.u32 %v8868_v56, 16 }
 0x5e4   : > { %v9044_v34 = vor.u32 %v5039_v19, %v5036_v32  ;;  %6532 = vmatmul.mubr.msk.bf16.gmra.mrb[72].mxu0 %vm598_vm1, %v6013_v22  ;;  %v4176_v17 = vor.u32 %v4175_v21, %v4172_v0  ;;  %v4146_v13 = vsel %vm1116_vm6, %v4107_v36, %v4145_v20  ;;  %v4165_v29 = vrot.slane %v9342_v28, 3 }
 0x5e5   : > { %4498 = vmatmul.mubr.bf16.vlgmr.msra.gmra.mrb[56].mxu1 %v4108_v38  ;;  %v9048_v54 = vsel %vm1116_vm6, %v4251_v52, %v5018_v62  ;;  %v4166_v55 = vrot.slane %v9343_v40, 4  ;;  %v9344_v36 = vshrl.u32 %v8838_v5, 16  ;;  %v4188_v31 = vrot.slane %v9345_v53, 4  ;;  %v6966_v38 = vld [vmem:[#allocation16 + $0x170] sm:$0xff]   ;;  %v6969_v5 = vld [vmem:[#allocation16 + $0x200] sm:$0xff]  }
 0x5e6   : > { %6456 = vmatpush3.bf16.msra.mxu1 %v6959_v25  ;;  %4505 = vmatprep.mubr.bf16.mxu1 %v4155_v37  ;;  %v9052_v9 = vsel %vm1116_vm6, %v5018_v62, %v9044_v34  ;;  %v6962_v25 = vld [vmem:[#allocation16 + $0x158] sm:$0xff]   ;;  %v4177_v52 = vsel %vm1116_vm6, %v4154_v15, %v4176_v17  ;;  %v4199_v15 = vsel %vm1116_vm6, %v4176_v17, %v8914_v60  ;;  %v4275_v32 = vrot.slane %v4019_v1, 3  ;;  %v6975_v62 = vld [vmem:[#allocation16 + $0x228] sm:$0xff]  }
 0x5e7   : > { %6457 = vmatprep.subr.bf16.mxu1 %v6960_v8  ;;  %v4167_v47 = vor.u32 %v4166_v55, %v4165_v29  ;;  %v4187_v6 = vrot.slane %v9344_v36, 3  ;;  %v4021_v18 = vor.u32 %v4019_v1, %v8899_v27  ;;  %v9346_v37 = vshll.u32 %v8868_v56, 16  ;;  %v6971_v56 = vld [vmem:[#allocation16 + $0x210] sm:$0xff]  }
 0x5e8   : > { %v5056_v29 = vshrl.u32 %v8874_v48, 16 }
 0x5e9   : > { %v4168_v30 = vsel %vm1116_vm6, %v4145_v20, %v4167_v47  ;;  %v4280_v3 = vshrl.u32 %v4021_v18, 16  ;;  %v4283_v22 = vshll.u32 %v4021_v18, 16  ;;  %v4276_v0 = vrot.slane %v9346_v37, 4 }
 0x5ea   : > { %6458 = vmatpush3.bf16.msra.mxu1 %v6960_v8  ;;  %v4189_v8 = vor.u32 %v4188_v31, %v4187_v6  ;;  %v5058_v40 = vrot.slane %v5056_v29, 3 }
 0x5eb   : > { %6459 = vmatprep.subr.bf16.mxu1 %v6961_v49  ;;  %v4285_v61 = vrot.slane %v4283_v22, 4 }
 0x5ec   : > { %v4190_v50 = vsel %vm1116_vm6, %v4167_v47, %v4189_v8  ;;  %v4212_v60 = vsel %vm1116_vm6, %v4189_v8, %v8668_v24 }
 0x5ed   : > { %4506 = vmatmul.mubr.bf16.gmra.mrb[60].mxu1 %v4146_v13 }
 0x5ee   : > { %4513 = vmatprep.mubr.bf16.mxu1 %v4177_v52  ;;  %6460 = vmatpush3.bf16.msra.mxu1 %v6961_v49 }
 0x5ef   : > { %6461 = vmatprep.subr.bf16.mxu1 %v6962_v25 }
 0x5f2   : > { %6462 = vmatpush3.bf16.msra.mxu1 %v6962_v25 }
 0x5f3   : > { %6463 = vmatprep.subr.bf16.mxu1 %v6963_v10 }
 0x5f5   : > { %4514 = vmatmul.mubr.bf16.gmra.mrb[64].mxu1 %v4168_v30 }
 0x5f6   : > { %4521 = vmatprep.mubr.bf16.mxu1 %v4199_v15  ;;  %6464 = vmatpush3.bf16.msra.mxu1 %v6963_v10 }
 0x5f7   : > { %6465 = vmatprep.subr.bf16.mxu1 %v6964_v26 }
 0x5fa   : > { %6466 = vmatpush3.bf16.msra.mxu1 %v6964_v26 }
 0x5fb   : > { %6467 = vmatprep.subr.bf16.mxu1 %v6966_v38 }
 0x5fd   : > { %4522 = vmatmul.mubr.bf16.gmra.mrb[68].mxu1 %v4190_v50 }
 0x5fe   : > { %4529 = vmatprep.mubr.bf16.mxu1 %v8931_v35  ;;  %6468 = vmatpush3.bf16.msra.mxu1 %v6966_v38  ;;  %v4282_v35 = vrot.slane %v4280_v3, 3 }
 0x5ff   : > { %6469 = vmatprep.subr.bf16.mxu1 %v6967_v33 }
 0x600   : > { %v4286_v7 = vor.u32 %v4285_v61, %v4282_v35 }
 0x602   : > { %6470 = vmatpush3.bf16.msra.mxu1 %v6967_v33  ;;  %v4287_v24 = vsel %vm1116_vm6, %v8938_v59, %v4286_v7  ;;  %v6972_v59 = vld [vmem:[#allocation16 + $0x218] sm:$0xff]  }
 0x603   : > { %6487 = vmatprep.subr.bf16.mxu1 %v6969_v5 }
 0x605   : > { %4530 = vmatmul.mubr.bf16.gmra.mrb[72].mxu1 %v4212_v60 }
 0x606   : > { %4537 = vmatprep.mubr.bf16.mxu1 %v8789_v11  ;;  %v4277_v11 = vor.u32 %v4276_v0, %v4275_v32 }
 0x608   : > { %v4278_v27 = vsel %vm1116_vm6, %v8754_v14, %v4277_v11 }
 0x60d   : > { %4538 = vmatmul.mubr.bf16.gmra.mrb[76].mxu1 %v8744_v39  ;;  %v6970_v39 = vld [vmem:[#allocation16 + $0x208] sm:$0xff]  }
 0x60e   : > { %4545 = vmatprep.mubr.bf16.mxu1 %v8951_v12 }
 0x615   : > { %4546 = vmatmul.mubr.bf16.gmra.mrb[80].mxu1 %v8769_v45  ;;  %v7080_v45 = vld [vmem:[#allocation3 + $0x10] sm:$0xf0] }
 0x616   : > { %4553 = vmatprep.mubr.bf16.mxu1 %v4287_v24  ;;  %v4798_v12 = vrot.slane %v7080_v45, 1 }
 0x618   : > { %v4800_v14 = vsel %vm1049_vm5, %v4798_v12, %v8663_v41  ;;  %v6976_v41 = vld [vmem:[#allocation16 + $0x230] sm:$0xff]  }
 0x619   : > { %v4894_v21 = vshrl.u32 %v4800_v14, 16  ;;  %v4897_v19 = vshll.u32 %v4800_v14, 16 }
 0x61d   : > { %4554 = vmatmul.mubr.bf16.gmra.mrb[84].mxu1 %v4278_v27 }
 0x61e   : > { %6471 = vmatprep.mubr.bf16.mxu1 %v8969_v23  ;;  %v6974_v23 = vld [vmem:[#allocation16 + $0x220] sm:$0xff]  }
 0x625   : > { %6472 = vmatmul.mubr.bf16.vlgmr.msra.gmra.mrb[40].mxu1 %v8983_v46  ;;  %v4289_v46 = vshrl.u32 %v8974_v43, 16 }
 0x626   : > { %6488 = vmatpush3.bf16.msra.mxu1 %v6969_v5  ;;  %6475 = vmatprep.mubr.bf16.mxu1 %v8986_v16  ;;  %v4292_v16 = vshll.u32 %v8974_v43, 16  ;;  %v6978_v43 = vld [vmem:[#allocation16 + $0x238] sm:$0xff]  }
 0x627   : > { %6489 = vmatprep.subr.bf16.mxu1 %v6970_v39  ;;  %v4291_v49 = vrot.slane %v4289_v46, 3 }
 0x628   : > { %v4294_v20 = vrot.slane %v4292_v16, 4 }
 0x62a   : > { %6490 = vmatpush3.bf16.msra.mxu1 %v6970_v39  ;;  %v4295_v17 = vor.u32 %v4294_v20, %v4291_v49 }
 0x62b   : > { %6491 = vmatprep.subr.bf16.mxu1 %v6971_v56 }
 0x62c   : > { %v4296_v13 = vsel %vm1116_vm6, %v9017_v57, %v4295_v17  ;;  %v5059_v57 = vshll.u32 %v8874_v48, 16 }
 0x62d   : > { %6476 = vmatmul.mubr.bf16.gmra.mrb[44].mxu1 %v8992_v4  ;;  %v4896_v4 = vrot.slane %v4894_v21, 3 }
 0x62e   : > { %6492 = vmatpush3.bf16.msra.mxu1 %v6971_v56  ;;  %6479 = vmatprep.mubr.bf16.mxu1 %v8996_v2  ;;  %v4899_v2 = vrot.slane %v4897_v19, 4  ;;  %v5061_v55 = vrot.slane %v5059_v57, 4 }
 0x62f   : > { %6493 = vmatprep.subr.bf16.mxu1 %v6972_v59 }
 0x630   : > { %v4900_v25 = vor.u32 %v4899_v2, %v4896_v4 }
 0x632   : > { %6494 = vmatpush3.bf16.msra.mxu1 %v6972_v59  ;;  %v4909_v28 = vsel %vm1116_vm6, %v4900_v25, %v8856_v63 }
 0x633   : > { %6495 = vmatprep.subr.bf16.mxu1 %v6974_v23 }
 0x635   : > { %6480 = vmatmul.mubr.bf16.gmra.mrb[48].mxu1 %v9015_v58 }
 0x636   : > { %6496 = vmatpush3.bf16.msra.mxu1 %v6974_v23  ;;  %6483 = vmatprep.mubr.bf16.mxu1 %v9027_v51  ;;  %v9347_v51 = vld [vmem:[#allocation30_spill] sm:$0xff] }
 0x637   : > { %6497 = vmatprep.subr.bf16.mxu1 %v6975_v62 }
 0x63a   : > { %6498 = vmatpush3.bf16.msra.mxu1 %v6975_v62 }
 0x63b   : > { %6499 = vmatprep.subr.bf16.mxu1 %v6976_v41 }
 0x63d   : > { %6484 = vmatmul.mubr.bf16.gmra.mrb[52].mxu1 %v4296_v13 }
 0x63e   : > { %6500 = vmatpush3.bf16.msra.mxu1 %v6976_v41  ;;  %6503 = vmatprep.mubr.bf16.mxu1 %v4909_v28 }
 0x63f   : > { %6501 = vmatprep.subr.bf16.mxu1 %v6978_v43 }
 0x642   : > { %6502 = vmatpush3.bf16.msra.mxu1 %v6978_v43 }
 0x645   : > { %6504 = vmatmul.mubr.bf16.vlgmr.msra.gmra.mrb[40].mxu1 %v8886_v44 }
 0x646   : > { %6507 = vmatprep.mubr.bf16.mxu1 %v8748_v42  ;;  %v5062_v42 = vor.u32 %v5061_v55, %v5058_v40 }
 0x648   : > { %v5063_v48 = vsel %vm1116_vm6, %v9044_v34, %v5062_v42 }
 0x64d   : > { %6508 = vmatmul.mubr.bf16.gmra.mrb[44].mxu1 %v9347_v51 }
 0x64e   : > { %6511 = vmatprep.mubr.bf16.mxu1 %v9015_v58 }
 0x655   : > { %6512 = vmatmul.mubr.bf16.gmra.mrb[48].mxu1 %v9048_v54 }
 0x656   : > { %6515 = vmatprep.mubr.bf16.mxu1 %v9052_v9  ;;  %v6083_v63 = vpop.f32.mrb[8].mxu1 }
 0x657   : > { %v6084_v52 = vpop.f32.mrb[9].mxu1 }
 0x658   : > { %v9106_v10 = vadd.f32 %v6084_v52, %v6083_v63  ;;  %v6086_v44 = vpop.f32.mrb[10].mxu1 }
 0x659   : > { %v6087_v47 = vpop.f32.mrb[11].mxu1 }
 0x65a   : > { %v6243_v26 = vpop.f32.mrb[36].mxu0 }
 0x65b   : > { %v6244_v30 = vpop.f32.mrb[37].mxu0 }
 0x65c   : > { %v9108_v58 = vadd.f32 %v6244_v30, %v6243_v26  ;;  %v6246_v36 = vpop.f32.mrb[38].mxu0 }
 0x65d   : > { %v6247_v6 = vpop.f32.mrb[39].mxu0  ;;  %6516 = vmatmul.mubr.bf16.gmra.mrb[52].mxu1 %v5063_v48 }
 0x65e   : > { %v6089_v54 = vpop.f32.mrb[12].mxu1 }
 0x65f   : > { %v6090_v53 = vpop.f32.mrb[13].mxu1 }
 0x660   : > { %v9112_v9 = vadd.f32 %v6090_v53, %v6089_v54  ;;  %v6092_v31 = vpop.f32.mrb[14].mxu1 }
 0x661   : > { %v6093_v15 = vpop.f32.mrb[15].mxu1 }
 0x662   : > { %v6249_v38 = vpop.f32.mrb[40].mxu0 }
 0x663   : > { %v6250_v8 = vpop.f32.mrb[41].mxu0 }
 0x664   : > { %v9114_v33 = vadd.f32 %v6250_v8, %v6249_v38  ;;  %v6252_v50 = vpop.f32.mrb[42].mxu0 }
 0x665   : > { %v6253_v5 = vpop.f32.mrb[43].mxu0 }
 0x666   : > { %v6095_v1 = vpop.f32.mrb[16].mxu1 }
 0x667   : > { %v6096_v60 = vpop.f32.mrb[17].mxu1 }
 0x668   : > { %v9116_v18 = vadd.f32 %v6096_v60, %v6095_v1  ;;  %v6098_v3 = vpop.f32.mrb[18].mxu1 }
 0x669   : > { %v6099_v34 = vpop.f32.mrb[19].mxu1 }
 0x66a   : > { %v6255_v22 = vpop.f32.mrb[44].mxu0 }
 0x66b   : > { %v6256_v35 = vpop.f32.mrb[45].mxu0 }
 0x66c   : > { %v9118_v61 = vadd.f32 %v6256_v35, %v6255_v22  ;;  %v6258_v7 = vpop.f32.mrb[46].mxu0  ;;  %v9151_v22 = vld [vmem:[%s9348_s22] ss:$0 sm:$0xff] }
 0x66d   : > { %v6259_v32 = vpop.f32.mrb[47].mxu0 }
 0x66e   : > { %v6101_v37 = vpop.f32.mrb[20].mxu1  ;;  %v3765_v32 = vadd.f32 %v9106_v10, %v9151_v22  ;;  %v3773_v10 = vadd.f32 %v9112_v9, %v9151_v22 }
 0x66f   : > { %v6102_v0 = vpop.f32.mrb[21].mxu1 }
 0x670   : > { %v9120_v24 = vadd.f32 %v6102_v0, %v6101_v37  ;;  %v6104_v11 = vpop.f32.mrb[22].mxu1 }
 0x671   : > { %v6105_v27 = vpop.f32.mrb[23].mxu1 }
 0x672   : > { %v3789_v9 = vadd.f32 %v9120_v24, %v9151_v22 }
 0x676   : > { %v6107_v39 = vpop.f32.mrb[24].mxu1 }
 0x677   : > { %v6108_v56 = vpop.f32.mrb[25].mxu1 }
 0x678   : > { %v9122_v45 = vadd.f32 %v6108_v56, %v6107_v39  ;;  %v6110_v12 = vpop.f32.mrb[26].mxu1 }
 0x679   : > { %v6111_v59 = vpop.f32.mrb[27].mxu1 }
 0x67b   : > { %v6261_v14 = vpop.f32.mrb[48].mxu0 }
 0x67c   : > { %v6262_v23 = vpop.f32.mrb[49].mxu0 }
 0x67d   : > { %v9124_v46 = vadd.f32 %v6262_v23, %v6261_v14  ;;  %v6264_v16 = vpop.f32.mrb[50].mxu0 }
 0x67e   : > { %v6265_v21 = vpop.f32.mrb[51].mxu0  ;;  %v6113_v19 = vpop.f32.mrb[28].mxu1 }
 0x67f   : > { %v6114_v62 = vpop.f32.mrb[29].mxu1 }
 0x680   : > { %v9126_v49 = vadd.f32 %v6114_v62, %v6113_v19  ;;  %v6116_v20 = vpop.f32.mrb[30].mxu1 }
 0x681   : > { %v6117_v4 = vpop.f32.mrb[31].mxu1 }
 0x682   : > { %v3805_v24 = vadd.f32 %v9126_v49, %v9151_v22 }
 0x683   : > { %v6267_v2 = vpop.f32.mrb[52].mxu0 }
 0x684   : > { %v6268_v41 = vpop.f32.mrb[53].mxu0 }
 0x685   : > { %v9128_v17 = vadd.f32 %v6268_v41, %v6267_v2  ;;  %v6270_v25 = vpop.f32.mrb[54].mxu0 }
 0x686   : > { %v6271_v43 = vpop.f32.mrb[55].mxu0  ;;  %v3781_v25 = vadd.f32 %v9116_v18, %v9151_v22  ;;  %v3797_v18 = vadd.f32 %v9122_v45, %v9151_v22 }
 0x688   : > { %v6119_v13 = vpop.f32.mrb[32].mxu1 }
 0x689   : > { %v6120_v28 = vpop.f32.mrb[33].mxu1 }
 0x68a   : > { %v9130_v51 = vadd.f32 %v6120_v28, %v6119_v13  ;;  %v6122_v29 = vpop.f32.mrb[34].mxu1 }
 0x68b   : > { %v6273_v57 = vpop.f32.mrb[56].mxu0  ;;  %v6123_v40 = vpop.f32.mrb[35].mxu1 }
 0x68c   : > { %v6274_v55 = vpop.f32.mrb[57].mxu0  ;;  %v3813_v45 = vadd.f32 %v9130_v51, %v9151_v22  ;;  %v5984_v51 = vld [vmem:[%s9349_s20] ss:$0 sm:$0xff] }
 0x68d   : > { %v9132_v63 = vadd.f32 %v6274_v55, %v6273_v57  ;;  %v6276_v52 = vpop.f32.mrb[58].mxu0 }
 0x68e   : > { %v6277_v44 = vpop.f32.mrb[59].mxu0 }
 0x690   : > { %v6125_v42 = vpop.f32.mrb[36].mxu1 }
 0x691   : > { %v6126_v47 = vpop.f32.mrb[37].mxu1 }
 0x692   : > { %v9134_v26 = vadd.f32 %v6126_v47, %v6125_v42  ;;  %v6128_v30 = vpop.f32.mrb[38].mxu1 }
 0x693   : > { %v6279_v36 = vpop.f32.mrb[60].mxu0  ;;  %v6129_v48 = vpop.f32.mrb[39].mxu1 }
 0x694   : > { %v6280_v6 = vpop.f32.mrb[61].mxu0  ;;  %v3821_v49 = vadd.f32 %v9134_v26, %v9151_v22 }
 0x695   : > { %v9136_v54 = vadd.f32 %v6280_v6, %v6279_v36  ;;  %v6282_v53 = vpop.f32.mrb[62].mxu0 }
 0x696   : > { %v6283_v31 = vpop.f32.mrb[63].mxu0 }
 0x69b   : > { %v6285_v15 = vpop.f32.mrb[64].mxu0 }
 0x69c   : > { %v6286_v38 = vpop.f32.mrb[65].mxu0 }
 0x69d   : > { %v9138_v8 = vadd.f32 %v6286_v38, %v6285_v15  ;;  %v6288_v50 = vpop.f32.mrb[66].mxu0 }
 0x69e   : > { %v6289_v5 = vpop.f32.mrb[67].mxu0 }
 0x6af   : > { %v9140_v1 = vpop.f32.mrb[68].mxu0 }
 0x6b0   : > { %v9142_v60 = vpop.f32.mrb[69].mxu0 }
 0x6b1   : > { %v9144_v3 = vpop.f32.mrb[70].mxu0 }
 0x6b2   : > { %v9146_v34 = vpop.f32.mrb[71].mxu0 }
 0x6b7   : > { %v9155_v27 = vpop.f32.mrb[72].mxu0 }
 0x6b8   : > { %v6163_v35 = vpop.f32.mrb[56].mxu1  ;;  %v9157_v56 = vpop.f32.mrb[73].mxu0 }
 0x6b9   : > { %v6164_v7 = vpop.f32.mrb[57].mxu1  ;;  %v9159_v12 = vpop.f32.mrb[74].mxu0 }
 0x6ba   : > { %v6165_v37 = vadd.f32 %v6164_v7, %v6163_v35  ;;  %v6166_v0 = vpop.f32.mrb[58].mxu1  ;;  %v9164_v14 = vpop.f32.mrb[75].mxu0 }
 0x6bb   : > { %v6167_v11 = vpop.f32.mrb[59].mxu1 }
 0x6bc   : > { %v6626_v39 = vadd.f32 %v6165_v37, %v3765_v32 }
 0x6be   : > { %v9162_v59 = vadd.f32 %v6626_v39, %v9108_v58 }
 0x6c0   : > { %v6169_v23 = vpop.f32.mrb[60].mxu1 }
 0x6c1   : > { %v6170_v16 = vpop.f32.mrb[61].mxu1 }
 0x6c2   : > { %v6171_v21 = vadd.f32 %v6170_v16, %v6169_v23  ;;  %v6172_v19 = vpop.f32.mrb[62].mxu1 }
 0x6c3   : > { %v6173_v62 = vpop.f32.mrb[63].mxu1 }
 0x6c4   : > { %v6623_v20 = vadd.f32 %v6171_v21, %v3773_v10 }
 0x6c6   : > { %v6624_v4 = vadd.f32 %v6623_v20, %v9114_v33  ;;  %v5599_v20 = vadd.f32 %v5984_v51, %v9146_v34 }
 0x6c8   : > { %v6175_v2 = vpop.f32.mrb[64].mxu1 }
 0x6c9   : > { %v6176_v41 = vpop.f32.mrb[65].mxu1 }
 0x6ca   : > { %v6177_v58 = vadd.f32 %v6176_v41, %v6175_v2  ;;  %v6178_v43 = vpop.f32.mrb[66].mxu1 }
 0x6cb   : > { %v6179_v13 = vpop.f32.mrb[67].mxu1 }
 0x6cc   : > { %v6632_v28 = vadd.f32 %v6177_v58, %v3781_v25 }
 0x6ce   : > { %v6633_v29 = vadd.f32 %v6632_v28, %v9118_v61  ;;  %v5604_v28 = vadd.f32 %v9140_v1, %v5984_v51 }
 0x6d0   : > { %v6181_v57 = vpop.f32.mrb[68].mxu1 }
 0x6d1   : > { %v6182_v40 = vpop.f32.mrb[69].mxu1 }
 0x6d2   : > { %v6183_v55 = vadd.f32 %v6182_v40, %v6181_v57  ;;  %v6184_v52 = vpop.f32.mrb[70].mxu1 }
 0x6d3   : > { %v6185_v44 = vpop.f32.mrb[71].mxu1  ;;  %v5615_v52 = vadd.f32 %v5984_v51, %v9164_v14  ;;  %v5623_v14 = vadd.f32 %v9159_v12, %v5984_v51 }
 0x6d4   : > { %v6629_v33 = vadd.f32 %v6183_v55, %v3789_v9 }
 0x6d6   : > { %v6630_v42 = vadd.f32 %v6629_v33, %v9124_v46 }
 0x6d8   : > { %v6187_v47 = vpop.f32.mrb[72].mxu1 }
 0x6d9   : > { %v6188_v30 = vpop.f32.mrb[73].mxu1 }
 0x6da   : > { %v6189_v36 = vadd.f32 %v6188_v30, %v6187_v47  ;;  %v6190_v48 = vpop.f32.mrb[74].mxu1 }
 0x6db   : > { %v6191_v6 = vpop.f32.mrb[75].mxu1 }
 0x6dc   : > { %v6638_v61 = vadd.f32 %v6189_v36, %v3797_v18  ;;  %v5620_v6 = vadd.f32 %v9155_v27, %v5984_v51 }
 0x6de   : > { %v6639_v53 = vadd.f32 %v6638_v61, %v9128_v17 }
 0x6e0   : > { %v6193_v31 = vpop.f32.mrb[76].mxu1 }
 0x6e1   : > { %v6194_v15 = vpop.f32.mrb[77].mxu1 }
 0x6e2   : > { %v6195_v38 = vadd.f32 %v6194_v15, %v6193_v31  ;;  %v6196_v50 = vpop.f32.mrb[78].mxu1 }
 0x6e3   : > { %v6197_v5 = vpop.f32.mrb[79].mxu1 }
 0x6e4   : > { %v6635_v46 = vadd.f32 %v6195_v38, %v3805_v24 }
 0x6e6   : > { %v6636_v35 = vadd.f32 %v6635_v46, %v9132_v63 }
 0x6e8   : > { %v6199_v7 = vpop.f32.mrb[80].mxu1 }
 0x6e9   : > { %v6200_v32 = vpop.f32.mrb[81].mxu1 }
 0x6ea   : > { %v6201_v37 = vadd.f32 %v6200_v32, %v6199_v7  ;;  %v6202_v0 = vpop.f32.mrb[82].mxu1 }
 0x6eb   : > { %v6203_v11 = vpop.f32.mrb[83].mxu1 }
 0x6ec   : > { %v6644_v17 = vadd.f32 %v6201_v37, %v3813_v45 }
 0x6ee   : > { %v6645_v39 = vadd.f32 %v6644_v17, %v9136_v54  ;;  %v5596_v54 = vadd.f32 %v5984_v51, %v9142_v60 }
 0x6f0   : > { %v6205_v23 = vpop.f32.mrb[84].mxu1 }
 0x6f1   : > { %v6206_v16 = vpop.f32.mrb[85].mxu1 }
 0x6f2   : > { %v6207_v10 = vadd.f32 %v6206_v16, %v6205_v23  ;;  %v6208_v21 = vpop.f32.mrb[86].mxu1 }
 0x6f3   : > { %v6209_v63 = vpop.f32.mrb[87].mxu1 }
 0x6f4   : > { %v6641_v19 = vadd.f32 %v6207_v10, %v3821_v49 }
 0x6f6   : > { %v6642_v62 = vadd.f32 %v6641_v19, %v9138_v8  ;;  %v5607_v8 = vadd.f32 %v9144_v3, %v5984_v51  ;;  %v5612_v3 = vadd.f32 %v5984_v51, %v9157_v56 }
 0x718   : > { %v6505_v2 = vpop.f32.mrb[40].mxu1 }
 0x719   : > { %v6625_v41 = vadd.f32 %v6624_v4, %v6505_v2  ;;  %v5363_v25 = vpop.f32.mrb[41].mxu1 }
 0x71a   : > { %v6628_v26 = vadd.f32 %v9162_v59, %v5363_v25  ;;  %v6506_v22 = vpop.f32.mrb[42].mxu1 }
 0x71b   : > { %v5630_v58 = vadd.f32 %v6625_v41, %v5599_v20  ;;  %v5366_v43 = vpop.f32.mrb[43].mxu1 }
 0x71c   : > { %v5627_v13 = vadd.f32 %v6628_v26, %v5596_v54 }
 0x71d   : > { %5997 = vst [vmem:[%s7686_s19 + $0x8] sm:$0xff] %v5630_v58 }
 0x71e   : > { %5628 = vst [vmem:[%s7686_s19] sm:$0xff] %v5627_v13 }
 0x720   : > { %v6509_v34 = vpop.f32.mrb[44].mxu1 }
 0x721   : > { %v6631_v57 = vadd.f32 %v6630_v42, %v6509_v34  ;;  %v5379_v60 = vpop.f32.mrb[45].mxu1 }
 0x722   : > { %v6634_v40 = vadd.f32 %v6633_v29, %v5379_v60  ;;  %v6510_v4 = vpop.f32.mrb[46].mxu1 }
 0x723   : > { %v5638_v9 = vadd.f32 %v6631_v57, %v5607_v8  ;;  %v5382_v59 = vpop.f32.mrb[47].mxu1 }
 0x724   : > { %v5634_v55 = vadd.f32 %v6634_v40, %v5604_v28 }
 0x725   : > { %5999 = vst [vmem:[%s7686_s19 + $0x18] sm:$0xff] %v5638_v9 }
 0x726   : > { %5998 = vst [vmem:[%s7686_s19 + $0x10] sm:$0xff] %v5634_v55 }
 0x728   : > { %v6513_v44 = vpop.f32.mrb[48].mxu1 }
 0x729   : > { %v6637_v1 = vadd.f32 %v6636_v35, %v6513_v44  ;;  %v5395_v33 = vpop.f32.mrb[49].mxu1 }
 0x72a   : > { %v6640_v42 = vadd.f32 %v6639_v53, %v5395_v33  ;;  %v6514_v47 = vpop.f32.mrb[50].mxu1 }
 0x72b   : > { %v5646_v29 = vadd.f32 %v6637_v1, %v5615_v52  ;;  %v5398_v30 = vpop.f32.mrb[51].mxu1 }
 0x72c   : > { %v5642_v18 = vadd.f32 %v6640_v42, %v5612_v3 }
 0x72d   : > { %6001 = vst [vmem:[%s7686_s19 + $0x28] sm:$0xff] %v5646_v29 }
 0x72e   : > { %6000 = vst [vmem:[%s7686_s19 + $0x20] sm:$0xff] %v5642_v18 }
 0x730   : > { %v6517_v36 = vpop.f32.mrb[52].mxu1 }
 0x731   : > { %v6643_v56 = vadd.f32 %v6642_v62, %v6517_v36  ;;  %v5411_v48 = vpop.f32.mrb[53].mxu1 }
 0x732   : > { %v6646_v61 = vadd.f32 %v6645_v39, %v5411_v48  ;;  %v6518_v53 = vpop.f32.mrb[54].mxu1 }
 0x733   : > { %v5654_v31 = vadd.f32 %v6643_v56, %v5623_v14  ;;  %v5414_v15 = vpop.f32.mrb[55].mxu1 }
 0x734   : > { %v5650_v12 = vadd.f32 %v6646_v61, %v5620_v6 }
 0x735   : > { %6003 = vst [vmem:[%s7686_s19 + $0x38] sm:$0xff] %v5654_v31 }
 0x736   : > { %6002 = vst [vmem:[%s7686_s19 + $0x30] sm:$0xff] %v5650_v12 }
 0x737   : > { %7290 = shalt.err (!%p7287_p10)
}
 0x738   : > { %s7291_s25 = scalar_lea.hbm %s9210_s23, 1024  ;;  %s7295_s27 = scalar_lea.hbm %s9351_s14, 2048 }
 0x739   : > { %p7292_p11 = scmp.ne.s32.totalorder %s9210_s23, %s7291_s25  ;;  %p7296_p2 = scmp.lt.u32.totalorder %s9210_s23, %s9351_s14 }
 0x73a   : > { %p7297_p3 = scmp.lt.u32.totalorder %s7295_s27, %s7291_s25  ;;  %p7299_p7 = scmp.lt.u32.totalorder %s7291_s25, %s9210_s23 }
 0x73b   : > { %p7293_p13 = pnand %p7292_p11, %p9352_p8 }
 0x73c   : > { %p7298_p4 = por %p7297_p3, %p7296_p2 }
 0x73d   : > { %p7294_p0 = pneg %p7293_p13 }
 0x73e   : > { %p7300_p12 = por %p7299_p7, %p7298_p4 }
 0x740   : > { %p7301_p5 = pnand %p7300_p12, %p7294_p0 }
 0x742   : > { %7304 = shalt.err (!%p7301_p5)
}
 0x743   : > { %s7375_s24 = smov 128   ;;  %s7376_s28 = smov 8  }
 0x744   : > { %6771 = dma.vmem_to_hbm [thread:$0]  (%p9352_p8), %s9212_s12, 1024, %s9210_s23, %s9218_s17, %s7375_s24, %s7375_s24, %s7376_s28  }
 0x745 PF: > { %s9353_s26 = sld [smem:[#allocation25_spill]]  ;;  %s9354_s15 = sld [smem:[#allocation23_spill]] }
 0x746   : > { %s9355_s29 = sld [smem:[#allocation29_spill]] }
 0x74b   : > { %p6813_p1 = scmp.ge.s32.totalorder %s9353_s26, 2  ;;  %s5686_s18 = sand.u32 1, %s9354_s15  }
 0x74c   : > { %p9356_p6 = scmp.ne.s32.totalorder %s9355_s29, 0  ;;  %s5687_s16 = scalar_lea.sflag [#allocation7], %s5686_s18 }
 0x74e   : > { %p6796_p9 = pnand %p6813_p1, %p9356_p6 }
 0x750   : > { %7338 = dma.done.wait (!%p6796_p9), %s5687_s16, 1024  }
 0x751   : > { %7340 = vsyncadd (!%p6796_p9), %s5687_s16, 4294966272  ;;  %s9357_s16 = sld [smem:[#allocation26_spill]]  ;;  %s9358_s25 = sld [smem:[#allocation24_spill]] }
 0x752   : > { %s9359_s15 = sld [smem:[#allocation27_spill]]  ;;  %s9360_s29 = smov %s7347_s30 }
 0x757   : > { %p28_p10 = scmp.ge.s32.totalorder %s9357_s16, 4   ;;  %s9361_s30 = smov %s9358_s25 }
 0x759   :  { %30 = sbr.rel (!%p28_p10) target bundleno = 12 (0xc), region = 155 }
 0x760   :  { %5692 = vsyncpa [#allocation6], 1 }
 0x761   :  { %5694 = vsyncpa [#allocation6 + $0x1], 1 }
 0x762   :  { %5695 = vsyncpa [#allocation9], 1 }
 0x763   :  { %5696 = vsyncpa [#allocation12], 1 }
 0x764   :  { %5697 = vsyncpa [#allocation15], 1 }
 0x765   :  { %5698 = vsyncpa [#allocation7], 1 }
 0x766   :  { %5700 = vsyncpa [#allocation7 + $0x1], 1 }

</bundles_post_ra>
